<compile_context>
chip_gen: v6e
topology: v6e:2x2x1
jax: 0.10.0
libtpu: 0.0.40
codegen_flags: <defaults>
</compile_context>

<pallas_src>
import functools

import jax
import jax.numpy as jnp
from jax import lax
from jax.experimental import pallas as pl
from jax.experimental.pallas import tpu as pltpu


def _layer_norm(v, gamma, beta, eps):
    mu = jnp.mean(v, axis=-1, keepdims=True)
    d = v - mu
    var = jnp.mean(d * d, axis=-1, keepdims=True)
    return d * lax.rsqrt(var + eps) * gamma + beta


def transformer_block_kernel(x_ref,
                             ln1_g_ref, ln1_b_ref,
                             wqkv_ref, wp_ref, bp_ref,
                             ln2_g_ref, ln2_b_ref,
                             w1_ref, b1_ref,
                             w2_ref, b2_ref,
                             out_ref,
                             ctx_ref,
                             *, num_heads, bblk, seq_len, eps, mm_dtype):
    # x_ref   : (bblk, N, C) block of batch elements
    # wqkv    : (C, 3C) fused QKV weight (x @ W layout, scale folded into Q cols)
    # wp      : (C, C)  output projection; bp/b1/b2/ln* : (1, C)/(1, Hm) rows
    # ctx_ref : (bblk*N, C) f32 VMEM scratch holding per-head contexts
    C = x_ref.shape[-1]
    hd = C // num_heads
    N = seq_len
    R = bblk * N

    # Leading-dim collapse only (no lane/sublane movement): (bblk, N, C) -> (R, C)
    x = x_ref[...].reshape(R, C)

    # ---------------- attention branch: x1 = x + proj(MHSA(LN1(x))) -----------
    xn = _layer_norm(x, ln1_g_ref[...], ln1_b_ref[...], eps)
    # One lane-dense (R, C) @ (C, 3C) matmul for all of Q, K, V (scale folded).
    qkv = jnp.dot(xn.astype(mm_dtype), wqkv_ref[...],
                  preferred_element_type=jnp.float32)            # (R, 3C) f32

    # Per-(batch, head) attention; loops are statically unrolled (small counts).
    for b in range(bblk):
        r0 = b * N
        qkv_b = qkv[r0:r0 + N, :]                                # (N, 3C)
        for h in range(num_heads):
            c0 = h * hd
            qh = qkv_b[:, c0:c0 + hd]                            # (N, hd)
            kh = qkv_b[:, C + c0:C + c0 + hd]                    # (N, hd)
            vh = qkv_b[:, 2 * C + c0:2 * C + c0 + hd]            # (N, hd)
            # scores = q @ k^T (scale already folded into the Q weight columns).
            s = lax.dot_general(qh.astype(mm_dtype), kh.astype(mm_dtype),
                                (((1,), (1,)), ((), ())),
                                preferred_element_type=jnp.float32)  # (N, N)
            s = s - jnp.max(s, axis=-1, keepdims=True)
            e = jnp.exp(s)
            # Deferred softmax normalization: normalize the (N, hd) result,
            # not the (N, N) probability matrix. Exact reciprocal (test @ 2e-4).
            inv = 1.0 / jnp.sum(e, axis=-1, keepdims=True)       # (N, 1)
            ctx_h = jnp.dot(e.astype(mm_dtype), vh.astype(mm_dtype),
                            preferred_element_type=jnp.float32) * inv  # (N, hd)
            # Static-offset store into the (R, C) context scratch.
            ctx_ref[r0:r0 + N, c0:c0 + hd] = ctx_h

    # Single K=C projection over all heads (MXU accumulation, no VPU head-sum).
    ctx = ctx_ref[...]                                           # (R, C) f32
    attn = jnp.dot(ctx.astype(mm_dtype), wp_ref[...],
                   preferred_element_type=jnp.float32)           # (R, C)
    x1 = x + attn + bp_ref[...]

    # ---------------- MLP branch: out = x1 + W2(GELU(W1(LN2(x1)))) -------------
    xn2 = _layer_norm(x1, ln2_g_ref[...], ln2_b_ref[...], eps)
    hid = jnp.dot(xn2.astype(mm_dtype), w1_ref[...],
                  preferred_element_type=jnp.float32) + b1_ref[...]
    # TODO(synk): PyTorch nn.GELU defaults to exact erf GELU; tanh approximation
    # used here (Mosaic-safe), max deviation ~1e-3 vs the PyTorch module.
    hid = jax.nn.gelu(hid, approximate=True)
    mlp = jnp.dot(hid.astype(mm_dtype), w2_ref[...],
                  preferred_element_type=jnp.float32) + b2_ref[...]

    out_ref[...] = (x1 + mlp).reshape(bblk, N, C)


def transformer_block_pallas(x, params, *, num_heads, eps=1e-5, bblk=None):
    B, N, C = x.shape
    Hm = params["w1"].shape[1]

    if bblk is None:
        # Pack rows toward M ~= 128 MXU rows per grid step.
        # (On v7x prefer bblk that keeps grid length >= 2 so both TCs get work;
        #  on v5e/v6e one maximal block is strictly better.)
        bblk = min(B, max(1, 128 // N))
    while B % bblk:
        bblk -= 1
    grid = (B // bblk,)

    kernel = functools.partial(
        transformer_block_kernel,
        num_heads=num_heads, bblk=bblk, seq_len=N, eps=eps,
        mm_dtype=params["wqkv"].dtype)

    def full(shape):
        n = len(shape)
        return pl.BlockSpec(shape, lambda b: (0,) * n)

    return pl.pallas_call(
        kernel,
        out_shape=jax.ShapeDtypeStruct((B, N, C), jnp.float32),
        grid=grid,
        in_specs=[
            pl.BlockSpec((bblk, N, C), lambda b: (b, 0, 0)),     # x (batch block)
            full((1, C)), full((1, C)),                          # ln1 gamma/beta
            full((C, 3 * C)),                                    # fused QKV weight
            full((C, C)), full((1, C)),                          # proj weight/bias
            full((1, C)), full((1, C)),                          # ln2 gamma/beta
            full((C, Hm)), full((1, Hm)),                        # mlp w1, b1
            full((Hm, C)), full((1, C)),                         # mlp w2, b2
        ],
        out_specs=pl.BlockSpec((bblk, N, C), lambda b: (b, 0, 0)),
        scratch_shapes=[pltpu.VMEM((bblk * N, C), jnp.float32)],  # ctx scratch
        compiler_params=pltpu.CompilerParams(
            dimension_semantics=("parallel",),
            vmem_limit_bytes=64 * 1024 * 1024),
    )(x, params["ln1_g"], params["ln1_b"],
      params["wqkv"], params["wp"], params["bp"],
      params["ln2_g"], params["ln2_b"],
      params["w1"], params["b1"], params["w2"], params["b2"])


def transformer_block_ref(x, rp, num_heads, eps=1e-5):
    """Pure-JAX reference matching the PyTorch TransformerBlock forward."""
    B, N, C = x.shape
    hd = C // num_heads
    scale = hd ** -0.5

    def ln(v, g, b):
        mu = jnp.mean(v, axis=-1, keepdims=True)
        d = v - mu
        var = jnp.mean(d * d, axis=-1, keepdims=True)
        return d * lax.rsqrt(var + eps) * g + b

    xn = ln(x, rp["ln1_g"], rp["ln1_b"])
    q = xn @ rp["wq"]
    k = xn @ rp["wk"]
    v = xn @ rp["wv"]
    qh = q.reshape(B, N, num_heads, hd).transpose(0, 2, 1, 3)
    kh = k.reshape(B, N, num_heads, hd).transpose(0, 2, 1, 3)
    vh = v.reshape(B, N, num_heads, hd).transpose(0, 2, 1, 3)
    attn = jax.nn.softmax((qh @ jnp.swapaxes(kh, -1, -2)) * scale, axis=-1)
    ctx = (attn @ vh).transpose(0, 2, 1, 3).reshape(B, N, C)
    x1 = x + ctx @ rp["wp"] + rp["bp"]
    xn2 = ln(x1, rp["ln2_g"], rp["ln2_b"])
    h = jax.nn.gelu(xn2 @ rp["w1"] + rp["b1"], approximate=True)
    return x1 + h @ rp["w2"] + rp["b2"]


if __name__ == "__main__":
    # Small shapes consistent with the module: B=2, N=16 tokens, dim=128,
    # num_heads=8 (head_dim=16), mlp_ratio=4 -> hidden=512.
    B, N, C = 2, 16, 128
    num_heads = 8
    hd = C // num_heads
    Hm = int(C * 4.0)
    eps = 1e-5
    scale = hd ** -0.5

    key = jax.random.PRNGKey(0)
    ks = jax.random.split(key, 14)

    x = jax.random.normal(ks[0], (B, N, C), jnp.float32)

    sd_c = 1.0 / jnp.sqrt(jnp.float32(C))
    sd_h = 1.0 / jnp.sqrt(jnp.float32(Hm))

    wq = jax.random.normal(ks[1], (C, C), jnp.float32) * sd_c   # = W_q^T (x @ W)
    wk = jax.random.normal(ks[2], (C, C), jnp.float32) * sd_c
    wv = jax.random.normal(ks[3], (C, C), jnp.float32) * sd_c
    wp = jax.random.normal(ks[4], (C, C), jnp.float32) * sd_c   # = W_proj^T
    bp = jax.random.normal(ks[5], (1, C), jnp.float32) * 0.02
    w1 = jax.random.normal(ks[6], (C, Hm), jnp.float32) * sd_c  # = W_fc1^T
    b1 = jax.random.normal(ks[7], (1, Hm), jnp.float32) * 0.02
    w2 = jax.random.normal(ks[8], (Hm, C), jnp.float32) * sd_h  # = W_fc2^T
    b2 = jax.random.normal(ks[9], (1, C), jnp.float32) * 0.02
    ln1_g = 1.0 + 0.1 * jax.random.normal(ks[10], (1, C), jnp.float32)
    ln1_b = 0.1 * jax.random.normal(ks[11], (1, C), jnp.float32)
    ln2_g = 1.0 + 0.1 * jax.random.normal(ks[12], (1, C), jnp.float32)
    ln2_b = 0.1 * jax.random.normal(ks[13], (1, C), jnp.float32)

    # Host-side fusion: single (C, 3C) QKV weight with the attention scale
    # folded into the Q columns (scale = 0.25 is a power of two -> exact).
    wqkv = jnp.concatenate([wq * scale, wk, wv], axis=1)        # (C, 3C)

    params_f32 = dict(ln1_g=ln1_g, ln1_b=ln1_b,
                      wqkv=wqkv, wp=wp, bp=bp,
                      ln2_g=ln2_g, ln2_b=ln2_b,
                      w1=w1, b1=b1, w2=w2, b2=b2)
    # bf16 MXU-operand variant (v6e/v7x fast path): only the matmul weights are
    # bf16; all elementwise/LN/softmax math stays f32 inside the kernel.
    params_bf16 = dict(params_f32)
    for name in ("wqkv", "wp", "w1", "w2"):
        params_bf16[name] = params_f32[name].astype(jnp.bfloat16)

    ref_params = dict(ln1_g=ln1_g, ln1_b=ln1_b,
                      wq=wq, wk=wk, wv=wv, wp=wp, bp=bp,
                      ln2_g=ln2_g, ln2_b=ln2_b,
                      w1=w1, b1=b1, w2=w2, b2=b2)

    ref = jax.block_until_ready(
        transformer_block_ref(x, ref_params, num_heads, eps=eps))

    # Exact (f32) validated path.
    out = jax.block_until_ready(
        transformer_block_pallas(x, params_f32, num_heads=num_heads, eps=eps))
    assert out.shape == (B, N, C)
    max_err = float(jnp.max(jnp.abs(out - ref)))
    assert jnp.allclose(out, ref, atol=2e-4, rtol=2e-4), (
        f"f32 mismatch vs reference: max abs err = {max_err}")

    # bf16-at-MXU path (perf config for v6e/v7x) — loose sanity tolerance.
    out_bf16 = jax.block_until_ready(
        transformer_block_pallas(x, params_bf16, num_heads=num_heads, eps=eps))
    max_err_bf16 = float(jnp.max(jnp.abs(out_bf16 - ref)))
    assert jnp.allclose(out_bf16, ref, atol=0.5, rtol=0.1), (
        f"bf16 mismatch vs reference: max abs err = {max_err_bf16}")

    print("KERNEL_OK")
</pallas_src>

<mosaic_0001>
module attributes {stable_mosaic.version = 11 : i64} {
  func.func @transformer_block_kernel(%arg0: i32, %arg1: memref<2x16x128xf32, #tpu.memory_space<vmem>>, %arg2: memref<1x128xf32, #tpu.memory_space<vmem>>, %arg3: memref<1x128xf32, #tpu.memory_space<vmem>>, %arg4: memref<128x384xf32, #tpu.memory_space<vmem>>, %arg5: memref<128x128xf32, #tpu.memory_space<vmem>>, %arg6: memref<1x128xf32, #tpu.memory_space<vmem>>, %arg7: memref<1x128xf32, #tpu.memory_space<vmem>>, %arg8: memref<1x128xf32, #tpu.memory_space<vmem>>, %arg9: memref<128x512xf32, #tpu.memory_space<vmem>>, %arg10: memref<1x512xf32, #tpu.memory_space<vmem>>, %arg11: memref<512x128xf32, #tpu.memory_space<vmem>>, %arg12: memref<1x128xf32, #tpu.memory_space<vmem>>, %arg13: memref<2x16x128xf32, #tpu.memory_space<vmem>>, %arg14: memref<32x128xf32, #tpu.memory_space<vmem>>) attributes {dimension_semantics = [#tpu.dimension_semantics<parallel>], iteration_bounds = array<i64: 1>, scalar_prefetch = 0 : i64, scratch_operands = 1 : i64, tpu.core_type = #tpu.core_type<tc>, window_params = [{transform_indices = @transform_0, window_bounds = array<i64: 2, 16, 128>}, {pipeline_mode = #tpu.pipeline_mode<synchronous>, transform_indices = @transform_1, window_bounds = array<i64: 1, 128>}, {pipeline_mode = #tpu.pipeline_mode<synchronous>, transform_indices = @transform_2, window_bounds = array<i64: 1, 128>}, {pipeline_mode = #tpu.pipeline_mode<synchronous>, transform_indices = @transform_3, window_bounds = array<i64: 128, 384>}, {pipeline_mode = #tpu.pipeline_mode<synchronous>, transform_indices = @transform_4, window_bounds = array<i64: 128, 128>}, {pipeline_mode = #tpu.pipeline_mode<synchronous>, transform_indices = @transform_5, window_bounds = array<i64: 1, 128>}, {pipeline_mode = #tpu.pipeline_mode<synchronous>, transform_indices = @transform_6, window_bounds = array<i64: 1, 128>}, {pipeline_mode = #tpu.pipeline_mode<synchronous>, transform_indices = @transform_7, window_bounds = array<i64: 1, 128>}, {pipeline_mode = #tpu.pipeline_mode<synchronous>, transform_indices = @transform_8, window_bounds = array<i64: 128, 512>}, {pipeline_mode = #tpu.pipeline_mode<synchronous>, transform_indices = @transform_9, window_bounds = array<i64: 1, 512>}, {pipeline_mode = #tpu.pipeline_mode<synchronous>, transform_indices = @transform_10, window_bounds = array<i64: 512, 128>}, {pipeline_mode = #tpu.pipeline_mode<synchronous>, transform_indices = @transform_11, window_bounds = array<i64: 1, 128>}, {transform_indices = @transform_12, window_bounds = array<i64: 2, 16, 128>}]} {
    %c0 = arith.constant 0 : index
    %c0_0 = arith.constant 0 : index
    %c0_1 = arith.constant 0 : index
    %0 = vector.load %arg1[%c0, %c0_0, %c0_1] : memref<2x16x128xf32, #tpu.memory_space<vmem>>, vector<2x16x128xf32>
    %1 = vector.shape_cast %0 : vector<2x16x128xf32> to vector<32x128xf32>
    %c0_2 = arith.constant 0 : index
    %c0_3 = arith.constant 0 : index
    %2 = vector.load %arg2[%c0_2, %c0_3] : memref<1x128xf32, #tpu.memory_space<vmem>>, vector<1x128xf32>
    %c0_4 = arith.constant 0 : index
    %c0_5 = arith.constant 0 : index
    %3 = vector.load %arg3[%c0_4, %c0_5] : memref<1x128xf32, #tpu.memory_space<vmem>>, vector<1x128xf32>
    %cst = arith.constant dense<0.000000e+00> : vector<32xf32>
    %4 = vector.multi_reduction <add>, %1, %cst [1] : vector<32x128xf32> to vector<32xf32>
    %5 = vector.shape_cast %4 : vector<32xf32> to vector<32x1xf32>
    %cst_6 = arith.constant 1.280000e+02 : f32
    %6 = vector.broadcast %cst_6 : f32 to vector<32x1xf32>
    %7 = arith.divf %5, %6 : vector<32x1xf32>
    %8 = vector.broadcast %7 : vector<32x1xf32> to vector<32x128xf32>
    %9 = arith.subf %1, %8 : vector<32x128xf32>
    %10 = arith.mulf %9, %9 : vector<32x128xf32>
    %cst_7 = arith.constant dense<0.000000e+00> : vector<32xf32>
    %11 = vector.multi_reduction <add>, %10, %cst_7 [1] : vector<32x128xf32> to vector<32xf32>
    %12 = vector.shape_cast %11 : vector<32xf32> to vector<32x1xf32>
    %cst_8 = arith.constant 1.280000e+02 : f32
    %13 = vector.broadcast %cst_8 : f32 to vector<32x1xf32>
    %14 = arith.divf %12, %13 : vector<32x1xf32>
    %cst_9 = arith.constant 9.99999974E-6 : f32
    %15 = vector.broadcast %cst_9 : f32 to vector<32x1xf32>
    %16 = arith.addf %14, %15 : vector<32x1xf32>
    %17 = math.rsqrt %16 : vector<32x1xf32>
    %18 = vector.broadcast %17 : vector<32x1xf32> to vector<32x128xf32>
    %19 = arith.mulf %9, %18 : vector<32x128xf32>
    %20 = vector.broadcast %2 : vector<1x128xf32> to vector<32x128xf32>
    %21 = arith.mulf %19, %20 : vector<32x128xf32>
    %22 = vector.broadcast %3 : vector<1x128xf32> to vector<32x128xf32>
    %23 = arith.addf %21, %22 : vector<32x128xf32>
    %c0_10 = arith.constant 0 : index
    %c0_11 = arith.constant 0 : index
    %24 = vector.load %arg4[%c0_10, %c0_11] : memref<128x384xf32, #tpu.memory_space<vmem>>, vector<128x384xf32>
    %cst_12 = arith.constant dense<0.000000e+00> : vector<32x384xf32>
    %25 = tpu.matmul %23, %24, %cst_12 {dimension_numbers = #tpu.dot_dimension_numbers<[1], [0], [0], [1], [0, 0, 1, 1], [], []>} : vector<32x128xf32>, vector<128x384xf32>, vector<32x384xf32> -> vector<32x384xf32>
    %26 = vector.extract_strided_slice %25 {offsets = [0, 0], sizes = [16, 384], strides = [1, 1]} : vector<32x384xf32> to vector<16x384xf32>
    %27 = vector.extract_strided_slice %26 {offsets = [0, 0], sizes = [16, 16], strides = [1, 1]} : vector<16x384xf32> to vector<16x16xf32>
    %28 = vector.extract_strided_slice %26 {offsets = [0, 128], sizes = [16, 16], strides = [1, 1]} : vector<16x384xf32> to vector<16x16xf32>
    %29 = vector.extract_strided_slice %26 {offsets = [0, 256], sizes = [16, 16], strides = [1, 1]} : vector<16x384xf32> to vector<16x16xf32>
    %cst_13 = arith.constant dense<0.000000e+00> : vector<16x16xf32>
    %30 = tpu.matmul %27, %28, %cst_13 {dimension_numbers = #tpu.dot_dimension_numbers<[1], [1], [0], [0], [0, 0, 1, 0], [], []>} : vector<16x16xf32>, vector<16x16xf32>, vector<16x16xf32> -> vector<16x16xf32>
    %cst_14 = arith.constant dense<0xFF800000> : vector<16xf32>
    %31 = vector.multi_reduction <maximumf>, %30, %cst_14 [1] : vector<16x16xf32> to vector<16xf32>
    %32 = vector.shape_cast %31 : vector<16xf32> to vector<16x1xf32>
    %33 = vector.broadcast %32 : vector<16x1xf32> to vector<16x16xf32>
    %34 = arith.subf %30, %33 : vector<16x16xf32>
    %35 = math.exp %34 : vector<16x16xf32>
    %cst_15 = arith.constant dense<0.000000e+00> : vector<16xf32>
    %36 = vector.multi_reduction <add>, %35, %cst_15 [1] : vector<16x16xf32> to vector<16xf32>
    %37 = vector.shape_cast %36 : vector<16xf32> to vector<16x1xf32>
    %cst_16 = arith.constant 1.000000e+00 : f32
    %38 = vector.broadcast %cst_16 : f32 to vector<16x1xf32>
    %39 = arith.divf %38, %37 : vector<16x1xf32>
    %cst_17 = arith.constant dense<0.000000e+00> : vector<16x16xf32>
    %40 = tpu.matmul %35, %29, %cst_17 {dimension_numbers = #tpu.dot_dimension_numbers<[1], [0], [0], [1], [0, 0, 1, 1], [], []>} : vector<16x16xf32>, vector<16x16xf32>, vector<16x16xf32> -> vector<16x16xf32>
    %41 = vector.broadcast %39 : vector<16x1xf32> to vector<16x16xf32>
    %42 = arith.mulf %40, %41 : vector<16x16xf32>
    %c0_18 = arith.constant 0 : index
    %c0_19 = arith.constant 0 : index
    %43 = vector.load %arg14[%c0_18, %c0_19] : memref<32x128xf32, #tpu.memory_space<vmem>>, vector<16x16xf32>
    tpu.vector_store %arg14[%c0_18, %c0_19], %42 {strides = array<i32>} : memref<32x128xf32, #tpu.memory_space<vmem>>, vector<16x16xf32>,
    %44 = vector.extract_strided_slice %26 {offsets = [0, 16], sizes = [16, 16], strides = [1, 1]} : vector<16x384xf32> to vector<16x16xf32>
    %45 = vector.extract_strided_slice %26 {offsets = [0, 144], sizes = [16, 16], strides = [1, 1]} : vector<16x384xf32> to vector<16x16xf32>
    %46 = vector.extract_strided_slice %26 {offsets = [0, 272], sizes = [16, 16], strides = [1, 1]} : vector<16x384xf32> to vector<16x16xf32>
    %cst_20 = arith.constant dense<0.000000e+00> : vector<16x16xf32>
    %47 = tpu.matmul %44, %45, %cst_20 {dimension_numbers = #tpu.dot_dimension_numbers<[1], [1], [0], [0], [0, 0, 1, 0], [], []>} : vector<16x16xf32>, vector<16x16xf32>, vector<16x16xf32> -> vector<16x16xf32>
    %cst_21 = arith.constant dense<0xFF800000> : vector<16xf32>
    %48 = vector.multi_reduction <maximumf>, %47, %cst_21 [1] : vector<16x16xf32> to vector<16xf32>
    %49 = vector.shape_cast %48 : vector<16xf32> to vector<16x1xf32>
    %50 = vector.broadcast %49 : vector<16x1xf32> to vector<16x16xf32>
    %51 = arith.subf %47, %50 : vector<16x16xf32>
    %52 = math.exp %51 : vector<16x16xf32>
    %cst_22 = arith.constant dense<0.000000e+00> : vector<16xf32>
    %53 = vector.multi_reduction <add>, %52, %cst_22 [1] : vector<16x16xf32> to vector<16xf32>
    %54 = vector.shape_cast %53 : vector<16xf32> to vector<16x1xf32>
    %cst_23 = arith.constant 1.000000e+00 : f32
    %55 = vector.broadcast %cst_23 : f32 to vector<16x1xf32>
    %56 = arith.divf %55, %54 : vector<16x1xf32>
    %cst_24 = arith.constant dense<0.000000e+00> : vector<16x16xf32>
    %57 = tpu.matmul %52, %46, %cst_24 {dimension_numbers = #tpu.dot_dimension_numbers<[1], [0], [0], [1], [0, 0, 1, 1], [], []>} : vector<16x16xf32>, vector<16x16xf32>, vector<16x16xf32> -> vector<16x16xf32>
    %58 = vector.broadcast %56 : vector<16x1xf32> to vector<16x16xf32>
    %59 = arith.mulf %57, %58 : vector<16x16xf32>
    %c0_25 = arith.constant 0 : index
    %c16 = arith.constant 16 : index
    %60 = vector.load %arg14[%c0_25, %c16] : memref<32x128xf32, #tpu.memory_space<vmem>>, vector<16x16xf32>
    tpu.vector_store %arg14[%c0_25, %c16], %59 {strides = array<i32>} : memref<32x128xf32, #tpu.memory_space<vmem>>, vector<16x16xf32>,
    %61 = vector.extract_strided_slice %26 {offsets = [0, 32], sizes = [16, 16], strides = [1, 1]} : vector<16x384xf32> to vector<16x16xf32>
    %62 = vector.extract_strided_slice %26 {offsets = [0, 160], sizes = [16, 16], strides = [1, 1]} : vector<16x384xf32> to vector<16x16xf32>
    %63 = vector.extract_strided_slice %26 {offsets = [0, 288], sizes = [16, 16], strides = [1, 1]} : vector<16x384xf32> to vector<16x16xf32>
    %cst_26 = arith.constant dense<0.000000e+00> : vector<16x16xf32>
    %64 = tpu.matmul %61, %62, %cst_26 {dimension_numbers = #tpu.dot_dimension_numbers<[1], [1], [0], [0], [0, 0, 1, 0], [], []>} : vector<16x16xf32>, vector<16x16xf32>, vector<16x16xf32> -> vector<16x16xf32>
    %cst_27 = arith.constant dense<0xFF800000> : vector<16xf32>
    %65 = vector.multi_reduction <maximumf>, %64, %cst_27 [1] : vector<16x16xf32> to vector<16xf32>
    %66 = vector.shape_cast %65 : vector<16xf32> to vector<16x1xf32>
    %67 = vector.broadcast %66 : vector<16x1xf32> to vector<16x16xf32>
    %68 = arith.subf %64, %67 : vector<16x16xf32>
    %69 = math.exp %68 : vector<16x16xf32>
    %cst_28 = arith.constant dense<0.000000e+00> : vector<16xf32>
    %70 = vector.multi_reduction <add>, %69, %cst_28 [1] : vector<16x16xf32> to vector<16xf32>
    %71 = vector.shape_cast %70 : vector<16xf32> to vector<16x1xf32>
    %cst_29 = arith.constant 1.000000e+00 : f32
    %72 = vector.broadcast %cst_29 : f32 to vector<16x1xf32>
    %73 = arith.divf %72, %71 : vector<16x1xf32>
    %cst_30 = arith.constant dense<0.000000e+00> : vector<16x16xf32>
    %74 = tpu.matmul %69, %63, %cst_30 {dimension_numbers = #tpu.dot_dimension_numbers<[1], [0], [0], [1], [0, 0, 1, 1], [], []>} : vector<16x16xf32>, vector<16x16xf32>, vector<16x16xf32> -> vector<16x16xf32>
    %75 = vector.broadcast %73 : vector<16x1xf32> to vector<16x16xf32>
    %76 = arith.mulf %74, %75 : vector<16x16xf32>
    %c0_31 = arith.constant 0 : index
    %c32 = arith.constant 32 : index
    %77 = vector.load %arg14[%c0_31, %c32] : memref<32x128xf32, #tpu.memory_space<vmem>>, vector<16x16xf32>
    tpu.vector_store %arg14[%c0_31, %c32], %76 {strides = array<i32>} : memref<32x128xf32, #tpu.memory_space<vmem>>, vector<16x16xf32>,
    %78 = vector.extract_strided_slice %26 {offsets = [0, 48], sizes = [16, 16], strides = [1, 1]} : vector<16x384xf32> to vector<16x16xf32>
    %79 = vector.extract_strided_slice %26 {offsets = [0, 176], sizes = [16, 16], strides = [1, 1]} : vector<16x384xf32> to vector<16x16xf32>
    %80 = vector.extract_strided_slice %26 {offsets = [0, 304], sizes = [16, 16], strides = [1, 1]} : vector<16x384xf32> to vector<16x16xf32>
    %cst_32 = arith.constant dense<0.000000e+00> : vector<16x16xf32>
    %81 = tpu.matmul %78, %79, %cst_32 {dimension_numbers = #tpu.dot_dimension_numbers<[1], [1], [0], [0], [0, 0, 1, 0], [], []>} : vector<16x16xf32>, vector<16x16xf32>, vector<16x16xf32> -> vector<16x16xf32>
    %cst_33 = arith.constant dense<0xFF800000> : vector<16xf32>
    %82 = vector.multi_reduction <maximumf>, %81, %cst_33 [1] : vector<16x16xf32> to vector<16xf32>
    %83 = vector.shape_cast %82 : vector<16xf32> to vector<16x1xf32>
    %84 = vector.broadcast %83 : vector<16x1xf32> to vector<16x16xf32>
    %85 = arith.subf %81, %84 : vector<16x16xf32>
    %86 = math.exp %85 : vector<16x16xf32>
    %cst_34 = arith.constant dense<0.000000e+00> : vector<16xf32>
    %87 = vector.multi_reduction <add>, %86, %cst_34 [1] : vector<16x16xf32> to vector<16xf32>
    %88 = vector.shape_cast %87 : vector<16xf32> to vector<16x1xf32>
    %cst_35 = arith.constant 1.000000e+00 : f32
    %89 = vector.broadcast %cst_35 : f32 to vector<16x1xf32>
    %90 = arith.divf %89, %88 : vector<16x1xf32>
    %cst_36 = arith.constant dense<0.000000e+00> : vector<16x16xf32>
    %91 = tpu.matmul %86, %80, %cst_36 {dimension_numbers = #tpu.dot_dimension_numbers<[1], [0], [0], [1], [0, 0, 1, 1], [], []>} : vector<16x16xf32>, vector<16x16xf32>, vector<16x16xf32> -> vector<16x16xf32>
    %92 = vector.broadcast %90 : vector<16x1xf32> to vector<16x16xf32>
    %93 = arith.mulf %91, %92 : vector<16x16xf32>
    %c0_37 = arith.constant 0 : index
    %c48 = arith.constant 48 : index
    %94 = vector.load %arg14[%c0_37, %c48] : memref<32x128xf32, #tpu.memory_space<vmem>>, vector<16x16xf32>
    tpu.vector_store %arg14[%c0_37, %c48], %93 {strides = array<i32>} : memref<32x128xf32, #tpu.memory_space<vmem>>, vector<16x16xf32>,
    %95 = vector.extract_strided_slice %26 {offsets = [0, 64], sizes = [16, 16], strides = [1, 1]} : vector<16x384xf32> to vector<16x16xf32>
    %96 = vector.extract_strided_slice %26 {offsets = [0, 192], sizes = [16, 16], strides = [1, 1]} : vector<16x384xf32> to vector<16x16xf32>
    %97 = vector.extract_strided_slice %26 {offsets = [0, 320], sizes = [16, 16], strides = [1, 1]} : vector<16x384xf32> to vector<16x16xf32>
    %cst_38 = arith.constant dense<0.000000e+00> : vector<16x16xf32>
    %98 = tpu.matmul %95, %96, %cst_38 {dimension_numbers = #tpu.dot_dimension_numbers<[1], [1], [0], [0], [0, 0, 1, 0], [], []>} : vector<16x16xf32>, vector<16x16xf32>, vector<16x16xf32> -> vector<16x16xf32>
    %cst_39 = arith.constant dense<0xFF800000> : vector<16xf32>
    %99 = vector.multi_reduction <maximumf>, %98, %cst_39 [1] : vector<16x16xf32> to vector<16xf32>
    %100 = vector.shape_cast %99 : vector<16xf32> to vector<16x1xf32>
    %101 = vector.broadcast %100 : vector<16x1xf32> to vector<16x16xf32>
    %102 = arith.subf %98, %101 : vector<16x16xf32>
    %103 = math.exp %102 : vector<16x16xf32>
    %cst_40 = arith.constant dense<0.000000e+00> : vector<16xf32>
    %104 = vector.multi_reduction <add>, %103, %cst_40 [1] : vector<16x16xf32> to vector<16xf32>
    %105 = vector.shape_cast %104 : vector<16xf32> to vector<16x1xf32>
    %cst_41 = arith.constant 1.000000e+00 : f32
    %106 = vector.broadcast %cst_41 : f32 to vector<16x1xf32>
    %107 = arith.divf %106, %105 : vector<16x1xf32>
    %cst_42 = arith.constant dense<0.000000e+00> : vector<16x16xf32>
    %108 = tpu.matmul %103, %97, %cst_42 {dimension_numbers = #tpu.dot_dimension_numbers<[1], [0], [0], [1], [0, 0, 1, 1], [], []>} : vector<16x16xf32>, vector<16x16xf32>, vector<16x16xf32> -> vector<16x16xf32>
    %109 = vector.broadcast %107 : vector<16x1xf32> to vector<16x16xf32>
    %110 = arith.mulf %108, %109 : vector<16x16xf32>
    %c0_43 = arith.constant 0 : index
    %c64 = arith.constant 64 : index
    %111 = vector.load %arg14[%c0_43, %c64] : memref<32x128xf32, #tpu.memory_space<vmem>>, vector<16x16xf32>
    tpu.vector_store %arg14[%c0_43, %c64], %110 {strides = array<i32>} : memref<32x128xf32, #tpu.memory_space<vmem>>, vector<16x16xf32>,
    %112 = vector.extract_strided_slice %26 {offsets = [0, 80], sizes = [16, 16], strides = [1, 1]} : vector<16x384xf32> to vector<16x16xf32>
    %113 = vector.extract_strided_slice %26 {offsets = [0, 208], sizes = [16, 16], strides = [1, 1]} : vector<16x384xf32> to vector<16x16xf32>
    %114 = vector.extract_strided_slice %26 {offsets = [0, 336], sizes = [16, 16], strides = [1, 1]} : vector<16x384xf32> to vector<16x16xf32>
    %cst_44 = arith.constant dense<0.000000e+00> : vector<16x16xf32>
    %115 = tpu.matmul %112, %113, %cst_44 {dimension_numbers = #tpu.dot_dimension_numbers<[1], [1], [0], [0], [0, 0, 1, 0], [], []>} : vector<16x16xf32>, vector<16x16xf32>, vector<16x16xf32> -> vector<16x16xf32>
    %cst_45 = arith.constant dense<0xFF800000> : vector<16xf32>
    %116 = vector.multi_reduction <maximumf>, %115, %cst_45 [1] : vector<16x16xf32> to vector<16xf32>
    %117 = vector.shape_cast %116 : vector<16xf32> to vector<16x1xf32>
    %118 = vector.broadcast %117 : vector<16x1xf32> to vector<16x16xf32>
    %119 = arith.subf %115, %118 : vector<16x16xf32>
    %120 = math.exp %119 : vector<16x16xf32>
    %cst_46 = arith.constant dense<0.000000e+00> : vector<16xf32>
    %121 = vector.multi_reduction <add>, %120, %cst_46 [1] : vector<16x16xf32> to vector<16xf32>
    %122 = vector.shape_cast %121 : vector<16xf32> to vector<16x1xf32>
    %cst_47 = arith.constant 1.000000e+00 : f32
    %123 = vector.broadcast %cst_47 : f32 to vector<16x1xf32>
    %124 = arith.divf %123, %122 : vector<16x1xf32>
    %cst_48 = arith.constant dense<0.000000e+00> : vector<16x16xf32>
    %125 = tpu.matmul %120, %114, %cst_48 {dimension_numbers = #tpu.dot_dimension_numbers<[1], [0], [0], [1], [0, 0, 1, 1], [], []>} : vector<16x16xf32>, vector<16x16xf32>, vector<16x16xf32> -> vector<16x16xf32>
    %126 = vector.broadcast %124 : vector<16x1xf32> to vector<16x16xf32>
    %127 = arith.mulf %125, %126 : vector<16x16xf32>
    %c0_49 = arith.constant 0 : index
    %c80 = arith.constant 80 : index
    %128 = vector.load %arg14[%c0_49, %c80] : memref<32x128xf32, #tpu.memory_space<vmem>>, vector<16x16xf32>
    tpu.vector_store %arg14[%c0_49, %c80], %127 {strides = array<i32>} : memref<32x128xf32, #tpu.memory_space<vmem>>, vector<16x16xf32>,
    %129 = vector.extract_strided_slice %26 {offsets = [0, 96], sizes = [16, 16], strides = [1, 1]} : vector<16x384xf32> to vector<16x16xf32>
    %130 = vector.extract_strided_slice %26 {offsets = [0, 224], sizes = [16, 16], strides = [1, 1]} : vector<16x384xf32> to vector<16x16xf32>
    %131 = vector.extract_strided_slice %26 {offsets = [0, 352], sizes = [16, 16], strides = [1, 1]} : vector<16x384xf32> to vector<16x16xf32>
    %cst_50 = arith.constant dense<0.000000e+00> : vector<16x16xf32>
    %132 = tpu.matmul %129, %130, %cst_50 {dimension_numbers = #tpu.dot_dimension_numbers<[1], [1], [0], [0], [0, 0, 1, 0], [], []>} : vector<16x16xf32>, vector<16x16xf32>, vector<16x16xf32> -> vector<16x16xf32>
    %cst_51 = arith.constant dense<0xFF800000> : vector<16xf32>
    %133 = vector.multi_reduction <maximumf>, %132, %cst_51 [1] : vector<16x16xf32> to vector<16xf32>
    %134 = vector.shape_cast %133 : vector<16xf32> to vector<16x1xf32>
    %135 = vector.broadcast %134 : vector<16x1xf32> to vector<16x16xf32>
    %136 = arith.subf %132, %135 : vector<16x16xf32>
    %137 = math.exp %136 : vector<16x16xf32>
    %cst_52 = arith.constant dense<0.000000e+00> : vector<16xf32>
    %138 = vector.multi_reduction <add>, %137, %cst_52 [1] : vector<16x16xf32> to vector<16xf32>
    %139 = vector.shape_cast %138 : vector<16xf32> to vector<16x1xf32>
    %cst_53 = arith.constant 1.000000e+00 : f32
    %140 = vector.broadcast %cst_53 : f32 to vector<16x1xf32>
    %141 = arith.divf %140, %139 : vector<16x1xf32>
    %cst_54 = arith.constant dense<0.000000e+00> : vector<16x16xf32>
    %142 = tpu.matmul %137, %131, %cst_54 {dimension_numbers = #tpu.dot_dimension_numbers<[1], [0], [0], [1], [0, 0, 1, 1], [], []>} : vector<16x16xf32>, vector<16x16xf32>, vector<16x16xf32> -> vector<16x16xf32>
    %143 = vector.broadcast %141 : vector<16x1xf32> to vector<16x16xf32>
    %144 = arith.mulf %142, %143 : vector<16x16xf32>
    %c0_55 = arith.constant 0 : index
    %c96 = arith.constant 96 : index
    %145 = vector.load %arg14[%c0_55, %c96] : memref<32x128xf32, #tpu.memory_space<vmem>>, vector<16x16xf32>
    tpu.vector_store %arg14[%c0_55, %c96], %144 {strides = array<i32>} : memref<32x128xf32, #tpu.memory_space<vmem>>, vector<16x16xf32>,
    %146 = vector.extract_strided_slice %26 {offsets = [0, 112], sizes = [16, 16], strides = [1, 1]} : vector<16x384xf32> to vector<16x16xf32>
    %147 = vector.extract_strided_slice %26 {offsets = [0, 240], sizes = [16, 16], strides = [1, 1]} : vector<16x384xf32> to vector<16x16xf32>
    %148 = vector.extract_strided_slice %26 {offsets = [0, 368], sizes = [16, 16], strides = [1, 1]} : vector<16x384xf32> to vector<16x16xf32>
    %cst_56 = arith.constant dense<0.000000e+00> : vector<16x16xf32>
    %149 = tpu.matmul %146, %147, %cst_56 {dimension_numbers = #tpu.dot_dimension_numbers<[1], [1], [0], [0], [0, 0, 1, 0], [], []>} : vector<16x16xf32>, vector<16x16xf32>, vector<16x16xf32> -> vector<16x16xf32>
    %cst_57 = arith.constant dense<0xFF800000> : vector<16xf32>
    %150 = vector.multi_reduction <maximumf>, %149, %cst_57 [1] : vector<16x16xf32> to vector<16xf32>
    %151 = vector.shape_cast %150 : vector<16xf32> to vector<16x1xf32>
    %152 = vector.broadcast %151 : vector<16x1xf32> to vector<16x16xf32>
    %153 = arith.subf %149, %152 : vector<16x16xf32>
    %154 = math.exp %153 : vector<16x16xf32>
    %cst_58 = arith.constant dense<0.000000e+00> : vector<16xf32>
    %155 = vector.multi_reduction <add>, %154, %cst_58 [1] : vector<16x16xf32> to vector<16xf32>
    %156 = vector.shape_cast %155 : vector<16xf32> to vector<16x1xf32>
    %cst_59 = arith.constant 1.000000e+00 : f32
    %157 = vector.broadcast %cst_59 : f32 to vector<16x1xf32>
    %158 = arith.divf %157, %156 : vector<16x1xf32>
    %cst_60 = arith.constant dense<0.000000e+00> : vector<16x16xf32>
    %159 = tpu.matmul %154, %148, %cst_60 {dimension_numbers = #tpu.dot_dimension_numbers<[1], [0], [0], [1], [0, 0, 1, 1], [], []>} : vector<16x16xf32>, vector<16x16xf32>, vector<16x16xf32> -> vector<16x16xf32>
    %160 = vector.broadcast %158 : vector<16x1xf32> to vector<16x16xf32>
    %161 = arith.mulf %159, %160 : vector<16x16xf32>
    %c0_61 = arith.constant 0 : index
    %c112 = arith.constant 112 : index
    %162 = vector.load %arg14[%c0_61, %c112] : memref<32x128xf32, #tpu.memory_space<vmem>>, vector<16x16xf32>
    tpu.vector_store %arg14[%c0_61, %c112], %161 {strides = array<i32>} : memref<32x128xf32, #tpu.memory_space<vmem>>, vector<16x16xf32>,
    %163 = vector.extract_strided_slice %25 {offsets = [16, 0], sizes = [16, 384], strides = [1, 1]} : vector<32x384xf32> to vector<16x384xf32>
    %164 = vector.extract_strided_slice %163 {offsets = [0, 0], sizes = [16, 16], strides = [1, 1]} : vector<16x384xf32> to vector<16x16xf32>
    %165 = vector.extract_strided_slice %163 {offsets = [0, 128], sizes = [16, 16], strides = [1, 1]} : vector<16x384xf32> to vector<16x16xf32>
    %166 = vector.extract_strided_slice %163 {offsets = [0, 256], sizes = [16, 16], strides = [1, 1]} : vector<16x384xf32> to vector<16x16xf32>
    %cst_62 = arith.constant dense<0.000000e+00> : vector<16x16xf32>
    %167 = tpu.matmul %164, %165, %cst_62 {dimension_numbers = #tpu.dot_dimension_numbers<[1], [1], [0], [0], [0, 0, 1, 0], [], []>} : vector<16x16xf32>, vector<16x16xf32>, vector<16x16xf32> -> vector<16x16xf32>
    %cst_63 = arith.constant dense<0xFF800000> : vector<16xf32>
    %168 = vector.multi_reduction <maximumf>, %167, %cst_63 [1] : vector<16x16xf32> to vector<16xf32>
    %169 = vector.shape_cast %168 : vector<16xf32> to vector<16x1xf32>
    %170 = vector.broadcast %169 : vector<16x1xf32> to vector<16x16xf32>
    %171 = arith.subf %167, %170 : vector<16x16xf32>
    %172 = math.exp %171 : vector<16x16xf32>
    %cst_64 = arith.constant dense<0.000000e+00> : vector<16xf32>
    %173 = vector.multi_reduction <add>, %172, %cst_64 [1] : vector<16x16xf32> to vector<16xf32>
    %174 = vector.shape_cast %173 : vector<16xf32> to vector<16x1xf32>
    %cst_65 = arith.constant 1.000000e+00 : f32
    %175 = vector.broadcast %cst_65 : f32 to vector<16x1xf32>
    %176 = arith.divf %175, %174 : vector<16x1xf32>
    %cst_66 = arith.constant dense<0.000000e+00> : vector<16x16xf32>
    %177 = tpu.matmul %172, %166, %cst_66 {dimension_numbers = #tpu.dot_dimension_numbers<[1], [0], [0], [1], [0, 0, 1, 1], [], []>} : vector<16x16xf32>, vector<16x16xf32>, vector<16x16xf32> -> vector<16x16xf32>
    %178 = vector.broadcast %176 : vector<16x1xf32> to vector<16x16xf32>
    %179 = arith.mulf %177, %178 : vector<16x16xf32>
    %c16_67 = arith.constant 16 : index
    %c0_68 = arith.constant 0 : index
    %180 = vector.load %arg14[%c16_67, %c0_68] : memref<32x128xf32, #tpu.memory_space<vmem>>, vector<16x16xf32>
    tpu.vector_store %arg14[%c16_67, %c0_68], %179 {strides = array<i32>} : memref<32x128xf32, #tpu.memory_space<vmem>>, vector<16x16xf32>,
    %181 = vector.extract_strided_slice %163 {offsets = [0, 16], sizes = [16, 16], strides = [1, 1]} : vector<16x384xf32> to vector<16x16xf32>
    %182 = vector.extract_strided_slice %163 {offsets = [0, 144], sizes = [16, 16], strides = [1, 1]} : vector<16x384xf32> to vector<16x16xf32>
    %183 = vector.extract_strided_slice %163 {offsets = [0, 272], sizes = [16, 16], strides = [1, 1]} : vector<16x384xf32> to vector<16x16xf32>
    %cst_69 = arith.constant dense<0.000000e+00> : vector<16x16xf32>
    %184 = tpu.matmul %181, %182, %cst_69 {dimension_numbers = #tpu.dot_dimension_numbers<[1], [1], [0], [0], [0, 0, 1, 0], [], []>} : vector<16x16xf32>, vector<16x16xf32>, vector<16x16xf32> -> vector<16x16xf32>
    %cst_70 = arith.constant dense<0xFF800000> : vector<16xf32>
    %185 = vector.multi_reduction <maximumf>, %184, %cst_70 [1] : vector<16x16xf32> to vector<16xf32>
    %186 = vector.shape_cast %185 : vector<16xf32> to vector<16x1xf32>
    %187 = vector.broadcast %186 : vector<16x1xf32> to vector<16x16xf32>
    %188 = arith.subf %184, %187 : vector<16x16xf32>
    %189 = math.exp %188 : vector<16x16xf32>
    %cst_71 = arith.constant dense<0.000000e+00> : vector<16xf32>
    %190 = vector.multi_reduction <add>, %189, %cst_71 [1] : vector<16x16xf32> to vector<16xf32>
    %191 = vector.shape_cast %190 : vector<16xf32> to vector<16x1xf32>
    %cst_72 = arith.constant 1.000000e+00 : f32
    %192 = vector.broadcast %cst_72 : f32 to vector<16x1xf32>
    %193 = arith.divf %192, %191 : vector<16x1xf32>
    %cst_73 = arith.constant dense<0.000000e+00> : vector<16x16xf32>
    %194 = tpu.matmul %189, %183, %cst_73 {dimension_numbers = #tpu.dot_dimension_numbers<[1], [0], [0], [1], [0, 0, 1, 1], [], []>} : vector<16x16xf32>, vector<16x16xf32>, vector<16x16xf32> -> vector<16x16xf32>
    %195 = vector.broadcast %193 : vector<16x1xf32> to vector<16x16xf32>
    %196 = arith.mulf %194, %195 : vector<16x16xf32>
    %c16_74 = arith.constant 16 : index
    %c16_75 = arith.constant 16 : index
    %197 = vector.load %arg14[%c16_74, %c16_75] : memref<32x128xf32, #tpu.memory_space<vmem>>, vector<16x16xf32>
    tpu.vector_store %arg14[%c16_74, %c16_75], %196 {strides = array<i32>} : memref<32x128xf32, #tpu.memory_space<vmem>>, vector<16x16xf32>,
    %198 = vector.extract_strided_slice %163 {offsets = [0, 32], sizes = [16, 16], strides = [1, 1]} : vector<16x384xf32> to vector<16x16xf32>
    %199 = vector.extract_strided_slice %163 {offsets = [0, 160], sizes = [16, 16], strides = [1, 1]} : vector<16x384xf32> to vector<16x16xf32>
    %200 = vector.extract_strided_slice %163 {offsets = [0, 288], sizes = [16, 16], strides = [1, 1]} : vector<16x384xf32> to vector<16x16xf32>
    %cst_76 = arith.constant dense<0.000000e+00> : vector<16x16xf32>
    %201 = tpu.matmul %198, %199, %cst_76 {dimension_numbers = #tpu.dot_dimension_numbers<[1], [1], [0], [0], [0, 0, 1, 0], [], []>} : vector<16x16xf32>, vector<16x16xf32>, vector<16x16xf32> -> vector<16x16xf32>
    %cst_77 = arith.constant dense<0xFF800000> : vector<16xf32>
    %202 = vector.multi_reduction <maximumf>, %201, %cst_77 [1] : vector<16x16xf32> to vector<16xf32>
    %203 = vector.shape_cast %202 : vector<16xf32> to vector<16x1xf32>
    %204 = vector.broadcast %203 : vector<16x1xf32> to vector<16x16xf32>
    %205 = arith.subf %201, %204 : vector<16x16xf32>
    %206 = math.exp %205 : vector<16x16xf32>
    %cst_78 = arith.constant dense<0.000000e+00> : vector<16xf32>
    %207 = vector.multi_reduction <add>, %206, %cst_78 [1] : vector<16x16xf32> to vector<16xf32>
    %208 = vector.shape_cast %207 : vector<16xf32> to vector<16x1xf32>
    %cst_79 = arith.constant 1.000000e+00 : f32
    %209 = vector.broadcast %cst_79 : f32 to vector<16x1xf32>
    %210 = arith.divf %209, %208 : vector<16x1xf32>
    %cst_80 = arith.constant dense<0.000000e+00> : vector<16x16xf32>
    %211 = tpu.matmul %206, %200, %cst_80 {dimension_numbers = #tpu.dot_dimension_numbers<[1], [0], [0], [1], [0, 0, 1, 1], [], []>} : vector<16x16xf32>, vector<16x16xf32>, vector<16x16xf32> -> vector<16x16xf32>
    %212 = vector.broadcast %210 : vector<16x1xf32> to vector<16x16xf32>
    %213 = arith.mulf %211, %212 : vector<16x16xf32>
    %c16_81 = arith.constant 16 : index
    %c32_82 = arith.constant 32 : index
    %214 = vector.load %arg14[%c16_81, %c32_82] : memref<32x128xf32, #tpu.memory_space<vmem>>, vector<16x16xf32>
    tpu.vector_store %arg14[%c16_81, %c32_82], %213 {strides = array<i32>} : memref<32x128xf32, #tpu.memory_space<vmem>>, vector<16x16xf32>,
    %215 = vector.extract_strided_slice %163 {offsets = [0, 48], sizes = [16, 16], strides = [1, 1]} : vector<16x384xf32> to vector<16x16xf32>
    %216 = vector.extract_strided_slice %163 {offsets = [0, 176], sizes = [16, 16], strides = [1, 1]} : vector<16x384xf32> to vector<16x16xf32>
    %217 = vector.extract_strided_slice %163 {offsets = [0, 304], sizes = [16, 16], strides = [1, 1]} : vector<16x384xf32> to vector<16x16xf32>
    %cst_83 = arith.constant dense<0.000000e+00> : vector<16x16xf32>
    %218 = tpu.matmul %215, %216, %cst_83 {dimension_numbers = #tpu.dot_dimension_numbers<[1], [1], [0], [0], [0, 0, 1, 0], [], []>} : vector<16x16xf32>, vector<16x16xf32>, vector<16x16xf32> -> vector<16x16xf32>
    %cst_84 = arith.constant dense<0xFF800000> : vector<16xf32>
    %219 = vector.multi_reduction <maximumf>, %218, %cst_84 [1] : vector<16x16xf32> to vector<16xf32>
    %220 = vector.shape_cast %219 : vector<16xf32> to vector<16x1xf32>
    %221 = vector.broadcast %220 : vector<16x1xf32> to vector<16x16xf32>
    %222 = arith.subf %218, %221 : vector<16x16xf32>
    %223 = math.exp %222 : vector<16x16xf32>
    %cst_85 = arith.constant dense<0.000000e+00> : vector<16xf32>
    %224 = vector.multi_reduction <add>, %223, %cst_85 [1] : vector<16x16xf32> to vector<16xf32>
    %225 = vector.shape_cast %224 : vector<16xf32> to vector<16x1xf32>
    %cst_86 = arith.constant 1.000000e+00 : f32
    %226 = vector.broadcast %cst_86 : f32 to vector<16x1xf32>
    %227 = arith.divf %226, %225 : vector<16x1xf32>
    %cst_87 = arith.constant dense<0.000000e+00> : vector<16x16xf32>
    %228 = tpu.matmul %223, %217, %cst_87 {dimension_numbers = #tpu.dot_dimension_numbers<[1], [0], [0], [1], [0, 0, 1, 1], [], []>} : vector<16x16xf32>, vector<16x16xf32>, vector<16x16xf32> -> vector<16x16xf32>
    %229 = vector.broadcast %227 : vector<16x1xf32> to vector<16x16xf32>
    %230 = arith.mulf %228, %229 : vector<16x16xf32>
    %c16_88 = arith.constant 16 : index
    %c48_89 = arith.constant 48 : index
    %231 = vector.load %arg14[%c16_88, %c48_89] : memref<32x128xf32, #tpu.memory_space<vmem>>, vector<16x16xf32>
    tpu.vector_store %arg14[%c16_88, %c48_89], %230 {strides = array<i32>} : memref<32x128xf32, #tpu.memory_space<vmem>>, vector<16x16xf32>,
    %232 = vector.extract_strided_slice %163 {offsets = [0, 64], sizes = [16, 16], strides = [1, 1]} : vector<16x384xf32> to vector<16x16xf32>
    %233 = vector.extract_strided_slice %163 {offsets = [0, 192], sizes = [16, 16], strides = [1, 1]} : vector<16x384xf32> to vector<16x16xf32>
    %234 = vector.extract_strided_slice %163 {offsets = [0, 320], sizes = [16, 16], strides = [1, 1]} : vector<16x384xf32> to vector<16x16xf32>
    %cst_90 = arith.constant dense<0.000000e+00> : vector<16x16xf32>
    %235 = tpu.matmul %232, %233, %cst_90 {dimension_numbers = #tpu.dot_dimension_numbers<[1], [1], [0], [0], [0, 0, 1, 0], [], []>} : vector<16x16xf32>, vector<16x16xf32>, vector<16x16xf32> -> vector<16x16xf32>
    %cst_91 = arith.constant dense<0xFF800000> : vector<16xf32>
    %236 = vector.multi_reduction <maximumf>, %235, %cst_91 [1] : vector<16x16xf32> to vector<16xf32>
    %237 = vector.shape_cast %236 : vector<16xf32> to vector<16x1xf32>
    %238 = vector.broadcast %237 : vector<16x1xf32> to vector<16x16xf32>
    %239 = arith.subf %235, %238 : vector<16x16xf32>
    %240 = math.exp %239 : vector<16x16xf32>
    %cst_92 = arith.constant dense<0.000000e+00> : vector<16xf32>
    %241 = vector.multi_reduction <add>, %240, %cst_92 [1] : vector<16x16xf32> to vector<16xf32>
    %242 = vector.shape_cast %241 : vector<16xf32> to vector<16x1xf32>
    %cst_93 = arith.constant 1.000000e+00 : f32
    %243 = vector.broadcast %cst_93 : f32 to vector<16x1xf32>
    %244 = arith.divf %243, %242 : vector<16x1xf32>
    %cst_94 = arith.constant dense<0.000000e+00> : vector<16x16xf32>
    %245 = tpu.matmul %240, %234, %cst_94 {dimension_numbers = #tpu.dot_dimension_numbers<[1], [0], [0], [1], [0, 0, 1, 1], [], []>} : vector<16x16xf32>, vector<16x16xf32>, vector<16x16xf32> -> vector<16x16xf32>
    %246 = vector.broadcast %244 : vector<16x1xf32> to vector<16x16xf32>
    %247 = arith.mulf %245, %246 : vector<16x16xf32>
    %c16_95 = arith.constant 16 : index
    %c64_96 = arith.constant 64 : index
    %248 = vector.load %arg14[%c16_95, %c64_96] : memref<32x128xf32, #tpu.memory_space<vmem>>, vector<16x16xf32>
    tpu.vector_store %arg14[%c16_95, %c64_96], %247 {strides = array<i32>} : memref<32x128xf32, #tpu.memory_space<vmem>>, vector<16x16xf32>,
    %249 = vector.extract_strided_slice %163 {offsets = [0, 80], sizes = [16, 16], strides = [1, 1]} : vector<16x384xf32> to vector<16x16xf32>
    %250 = vector.extract_strided_slice %163 {offsets = [0, 208], sizes = [16, 16], strides = [1, 1]} : vector<16x384xf32> to vector<16x16xf32>
    %251 = vector.extract_strided_slice %163 {offsets = [0, 336], sizes = [16, 16], strides = [1, 1]} : vector<16x384xf32> to vector<16x16xf32>
    %cst_97 = arith.constant dense<0.000000e+00> : vector<16x16xf32>
    %252 = tpu.matmul %249, %250, %cst_97 {dimension_numbers = #tpu.dot_dimension_numbers<[1], [1], [0], [0], [0, 0, 1, 0], [], []>} : vector<16x16xf32>, vector<16x16xf32>, vector<16x16xf32> -> vector<16x16xf32>
    %cst_98 = arith.constant dense<0xFF800000> : vector<16xf32>
    %253 = vector.multi_reduction <maximumf>, %252, %cst_98 [1] : vector<16x16xf32> to vector<16xf32>
    %254 = vector.shape_cast %253 : vector<16xf32> to vector<16x1xf32>
    %255 = vector.broadcast %254 : vector<16x1xf32> to vector<16x16xf32>
    %256 = arith.subf %252, %255 : vector<16x16xf32>
    %257 = math.exp %256 : vector<16x16xf32>
    %cst_99 = arith.constant dense<0.000000e+00> : vector<16xf32>
    %258 = vector.multi_reduction <add>, %257, %cst_99 [1] : vector<16x16xf32> to vector<16xf32>
    %259 = vector.shape_cast %258 : vector<16xf32> to vector<16x1xf32>
    %cst_100 = arith.constant 1.000000e+00 : f32
    %260 = vector.broadcast %cst_100 : f32 to vector<16x1xf32>
    %261 = arith.divf %260, %259 : vector<16x1xf32>
    %cst_101 = arith.constant dense<0.000000e+00> : vector<16x16xf32>
    %262 = tpu.matmul %257, %251, %cst_101 {dimension_numbers = #tpu.dot_dimension_numbers<[1], [0], [0], [1], [0, 0, 1, 1], [], []>} : vector<16x16xf32>, vector<16x16xf32>, vector<16x16xf32> -> vector<16x16xf32>
    %263 = vector.broadcast %261 : vector<16x1xf32> to vector<16x16xf32>
    %264 = arith.mulf %262, %263 : vector<16x16xf32>
    %c16_102 = arith.constant 16 : index
    %c80_103 = arith.constant 80 : index
    %265 = vector.load %arg14[%c16_102, %c80_103] : memref<32x128xf32, #tpu.memory_space<vmem>>, vector<16x16xf32>
    tpu.vector_store %arg14[%c16_102, %c80_103], %264 {strides = array<i32>} : memref<32x128xf32, #tpu.memory_space<vmem>>, vector<16x16xf32>,
    %266 = vector.extract_strided_slice %163 {offsets = [0, 96], sizes = [16, 16], strides = [1, 1]} : vector<16x384xf32> to vector<16x16xf32>
    %267 = vector.extract_strided_slice %163 {offsets = [0, 224], sizes = [16, 16], strides = [1, 1]} : vector<16x384xf32> to vector<16x16xf32>
    %268 = vector.extract_strided_slice %163 {offsets = [0, 352], sizes = [16, 16], strides = [1, 1]} : vector<16x384xf32> to vector<16x16xf32>
    %cst_104 = arith.constant dense<0.000000e+00> : vector<16x16xf32>
    %269 = tpu.matmul %266, %267, %cst_104 {dimension_numbers = #tpu.dot_dimension_numbers<[1], [1], [0], [0], [0, 0, 1, 0], [], []>} : vector<16x16xf32>, vector<16x16xf32>, vector<16x16xf32> -> vector<16x16xf32>
    %cst_105 = arith.constant dense<0xFF800000> : vector<16xf32>
    %270 = vector.multi_reduction <maximumf>, %269, %cst_105 [1] : vector<16x16xf32> to vector<16xf32>
    %271 = vector.shape_cast %270 : vector<16xf32> to vector<16x1xf32>
    %272 = vector.broadcast %271 : vector<16x1xf32> to vector<16x16xf32>
    %273 = arith.subf %269, %272 : vector<16x16xf32>
    %274 = math.exp %273 : vector<16x16xf32>
    %cst_106 = arith.constant dense<0.000000e+00> : vector<16xf32>
    %275 = vector.multi_reduction <add>, %274, %cst_106 [1] : vector<16x16xf32> to vector<16xf32>
    %276 = vector.shape_cast %275 : vector<16xf32> to vector<16x1xf32>
    %cst_107 = arith.constant 1.000000e+00 : f32
    %277 = vector.broadcast %cst_107 : f32 to vector<16x1xf32>
    %278 = arith.divf %277, %276 : vector<16x1xf32>
    %cst_108 = arith.constant dense<0.000000e+00> : vector<16x16xf32>
    %279 = tpu.matmul %274, %268, %cst_108 {dimension_numbers = #tpu.dot_dimension_numbers<[1], [0], [0], [1], [0, 0, 1, 1], [], []>} : vector<16x16xf32>, vector<16x16xf32>, vector<16x16xf32> -> vector<16x16xf32>
    %280 = vector.broadcast %278 : vector<16x1xf32> to vector<16x16xf32>
    %281 = arith.mulf %279, %280 : vector<16x16xf32>
    %c16_109 = arith.constant 16 : index
    %c96_110 = arith.constant 96 : index
    %282 = vector.load %arg14[%c16_109, %c96_110] : memref<32x128xf32, #tpu.memory_space<vmem>>, vector<16x16xf32>
    tpu.vector_store %arg14[%c16_109, %c96_110], %281 {strides = array<i32>} : memref<32x128xf32, #tpu.memory_space<vmem>>, vector<16x16xf32>,
    %283 = vector.extract_strided_slice %163 {offsets = [0, 112], sizes = [16, 16], strides = [1, 1]} : vector<16x384xf32> to vector<16x16xf32>
    %284 = vector.extract_strided_slice %163 {offsets = [0, 240], sizes = [16, 16], strides = [1, 1]} : vector<16x384xf32> to vector<16x16xf32>
    %285 = vector.extract_strided_slice %163 {offsets = [0, 368], sizes = [16, 16], strides = [1, 1]} : vector<16x384xf32> to vector<16x16xf32>
    %cst_111 = arith.constant dense<0.000000e+00> : vector<16x16xf32>
    %286 = tpu.matmul %283, %284, %cst_111 {dimension_numbers = #tpu.dot_dimension_numbers<[1], [1], [0], [0], [0, 0, 1, 0], [], []>} : vector<16x16xf32>, vector<16x16xf32>, vector<16x16xf32> -> vector<16x16xf32>
    %cst_112 = arith.constant dense<0xFF800000> : vector<16xf32>
    %287 = vector.multi_reduction <maximumf>, %286, %cst_112 [1] : vector<16x16xf32> to vector<16xf32>
    %288 = vector.shape_cast %287 : vector<16xf32> to vector<16x1xf32>
    %289 = vector.broadcast %288 : vector<16x1xf32> to vector<16x16xf32>
    %290 = arith.subf %286, %289 : vector<16x16xf32>
    %291 = math.exp %290 : vector<16x16xf32>
    %cst_113 = arith.constant dense<0.000000e+00> : vector<16xf32>
    %292 = vector.multi_reduction <add>, %291, %cst_113 [1] : vector<16x16xf32> to vector<16xf32>
    %293 = vector.shape_cast %292 : vector<16xf32> to vector<16x1xf32>
    %cst_114 = arith.constant 1.000000e+00 : f32
    %294 = vector.broadcast %cst_114 : f32 to vector<16x1xf32>
    %295 = arith.divf %294, %293 : vector<16x1xf32>
    %cst_115 = arith.constant dense<0.000000e+00> : vector<16x16xf32>
    %296 = tpu.matmul %291, %285, %cst_115 {dimension_numbers = #tpu.dot_dimension_numbers<[1], [0], [0], [1], [0, 0, 1, 1], [], []>} : vector<16x16xf32>, vector<16x16xf32>, vector<16x16xf32> -> vector<16x16xf32>
    %297 = vector.broadcast %295 : vector<16x1xf32> to vector<16x16xf32>
    %298 = arith.mulf %296, %297 : vector<16x16xf32>
    %c16_116 = arith.constant 16 : index
    %c112_117 = arith.constant 112 : index
    %299 = vector.load %arg14[%c16_116, %c112_117] : memref<32x128xf32, #tpu.memory_space<vmem>>, vector<16x16xf32>
    tpu.vector_store %arg14[%c16_116, %c112_117], %298 {strides = array<i32>} : memref<32x128xf32, #tpu.memory_space<vmem>>, vector<16x16xf32>,
    %c0_118 = arith.constant 0 : index
    %c0_119 = arith.constant 0 : index
    %300 = vector.load %arg14[%c0_118, %c0_119] : memref<32x128xf32, #tpu.memory_space<vmem>>, vector<32x128xf32>
    %c0_120 = arith.constant 0 : index
    %c0_121 = arith.constant 0 : index
    %301 = vector.load %arg5[%c0_120, %c0_121] : memref<128x128xf32, #tpu.memory_space<vmem>>, vector<128x128xf32>
    %cst_122 = arith.constant dense<0.000000e+00> : vector<32x128xf32>
    %302 = tpu.matmul %300, %301, %cst_122 {dimension_numbers = #tpu.dot_dimension_numbers<[1], [0], [0], [1], [0, 0, 1, 1], [], []>} : vector<32x128xf32>, vector<128x128xf32>, vector<32x128xf32> -> vector<32x128xf32>
    %303 = arith.addf %1, %302 : vector<32x128xf32>
    %c0_123 = arith.constant 0 : index
    %c0_124 = arith.constant 0 : index
    %304 = vector.load %arg6[%c0_123, %c0_124] : memref<1x128xf32, #tpu.memory_space<vmem>>, vector<1x128xf32>
    %305 = vector.broadcast %304 : vector<1x128xf32> to vector<32x128xf32>
    %306 = arith.addf %303, %305 : vector<32x128xf32>
    %c0_125 = arith.constant 0 : index
    %c0_126 = arith.constant 0 : index
    %307 = vector.load %arg7[%c0_125, %c0_126] : memref<1x128xf32, #tpu.memory_space<vmem>>, vector<1x128xf32>
    %c0_127 = arith.constant 0 : index
    %c0_128 = arith.constant 0 : index
    %308 = vector.load %arg8[%c0_127, %c0_128] : memref<1x128xf32, #tpu.memory_space<vmem>>, vector<1x128xf32>
    %cst_129 = arith.constant dense<0.000000e+00> : vector<32xf32>
    %309 = vector.multi_reduction <add>, %306, %cst_129 [1] : vector<32x128xf32> to vector<32xf32>
    %310 = vector.shape_cast %309 : vector<32xf32> to vector<32x1xf32>
    %cst_130 = arith.constant 1.280000e+02 : f32
    %311 = vector.broadcast %cst_130 : f32 to vector<32x1xf32>
    %312 = arith.divf %310, %311 : vector<32x1xf32>
    %313 = vector.broadcast %312 : vector<32x1xf32> to vector<32x128xf32>
    %314 = arith.subf %306, %313 : vector<32x128xf32>
    %315 = arith.mulf %314, %314 : vector<32x128xf32>
    %cst_131 = arith.constant dense<0.000000e+00> : vector<32xf32>
    %316 = vector.multi_reduction <add>, %315, %cst_131 [1] : vector<32x128xf32> to vector<32xf32>
    %317 = vector.shape_cast %316 : vector<32xf32> to vector<32x1xf32>
    %cst_132 = arith.constant 1.280000e+02 : f32
    %318 = vector.broadcast %cst_132 : f32 to vector<32x1xf32>
    %319 = arith.divf %317, %318 : vector<32x1xf32>
    %cst_133 = arith.constant 9.99999974E-6 : f32
    %320 = vector.broadcast %cst_133 : f32 to vector<32x1xf32>
    %321 = arith.addf %319, %320 : vector<32x1xf32>
    %322 = math.rsqrt %321 : vector<32x1xf32>
    %323 = vector.broadcast %322 : vector<32x1xf32> to vector<32x128xf32>
    %324 = arith.mulf %314, %323 : vector<32x128xf32>
    %325 = vector.broadcast %307 : vector<1x128xf32> to vector<32x128xf32>
    %326 = arith.mulf %324, %325 : vector<32x128xf32>
    %327 = vector.broadcast %308 : vector<1x128xf32> to vector<32x128xf32>
    %328 = arith.addf %326, %327 : vector<32x128xf32>
    %c0_134 = arith.constant 0 : index
    %c0_135 = arith.constant 0 : index
    %329 = vector.load %arg9[%c0_134, %c0_135] : memref<128x512xf32, #tpu.memory_space<vmem>>, vector<128x512xf32>
    %cst_136 = arith.constant dense<0.000000e+00> : vector<32x512xf32>
    %330 = tpu.matmul %328, %329, %cst_136 {dimension_numbers = #tpu.dot_dimension_numbers<[1], [0], [0], [1], [0, 0, 1, 1], [], []>} : vector<32x128xf32>, vector<128x512xf32>, vector<32x512xf32> -> vector<32x512xf32>
    %c0_137 = arith.constant 0 : index
    %c0_138 = arith.constant 0 : index
    %331 = vector.load %arg10[%c0_137, %c0_138] : memref<1x512xf32, #tpu.memory_space<vmem>>, vector<1x512xf32>
    %332 = vector.broadcast %331 : vector<1x512xf32> to vector<32x512xf32>
    %333 = arith.addf %330, %332 : vector<32x512xf32>
    %334 = arith.mulf %333, %333 : vector<32x512xf32>
    %335 = arith.mulf %333, %334 : vector<32x512xf32>
    %cst_139 = arith.constant 4.471500e-02 : f32
    %336 = vector.broadcast %cst_139 : f32 to vector<32x512xf32>
    %337 = arith.mulf %336, %335 : vector<32x512xf32>
    %338 = arith.addf %333, %337 : vector<32x512xf32>
    %cst_140 = arith.constant 0.797884583 : f32
    %339 = vector.broadcast %cst_140 : f32 to vector<32x512xf32>
    %340 = arith.mulf %339, %338 : vector<32x512xf32>
    %341 = math.tanh %340 : vector<32x512xf32>
    %cst_141 = arith.constant 1.000000e+00 : f32
    %342 = vector.broadcast %cst_141 : f32 to vector<32x512xf32>
    %343 = arith.addf %342, %341 : vector<32x512xf32>
    %cst_142 = arith.constant 5.000000e-01 : f32
    %344 = vector.broadcast %cst_142 : f32 to vector<32x512xf32>
    %345 = arith.mulf %344, %343 : vector<32x512xf32>
    %346 = arith.mulf %333, %345 : vector<32x512xf32>
    %c0_143 = arith.constant 0 : index
    %c0_144 = arith.constant 0 : index
    %347 = vector.load %arg11[%c0_143, %c0_144] : memref<512x128xf32, #tpu.memory_space<vmem>>, vector<512x128xf32>
    %cst_145 = arith.constant dense<0.000000e+00> : vector<32x128xf32>
    %348 = tpu.matmul %346, %347, %cst_145 {dimension_numbers = #tpu.dot_dimension_numbers<[1], [0], [0], [1], [0, 0, 1, 1], [], []>} : vector<32x512xf32>, vector<512x128xf32>, vector<32x128xf32> -> vector<32x128xf32>
    %c0_146 = arith.constant 0 : index
    %c0_147 = arith.constant 0 : index
    %349 = vector.load %arg12[%c0_146, %c0_147] : memref<1x128xf32, #tpu.memory_space<vmem>>, vector<1x128xf32>
    %350 = vector.broadcast %349 : vector<1x128xf32> to vector<32x128xf32>
    %351 = arith.addf %348, %350 : vector<32x128xf32>
    %352 = arith.addf %306, %351 : vector<32x128xf32>
    %353 = vector.shape_cast %352 : vector<32x128xf32> to vector<2x16x128xf32>
    %c0_148 = arith.constant 0 : index
    %c0_149 = arith.constant 0 : index
    %c0_150 = arith.constant 0 : index
    %354 = vector.load %arg13[%c0_148, %c0_149, %c0_150] : memref<2x16x128xf32, #tpu.memory_space<vmem>>, vector<2x16x128xf32>
    tpu.vector_store %arg13[%c0_148, %c0_149, %c0_150], %353 {strides = array<i32>} : memref<2x16x128xf32, #tpu.memory_space<vmem>>, vector<2x16x128xf32>,
    return
  }
  func.func @transform_0(%arg0: i32) -> (i32, i32, i32) {
    %c0_i32 = arith.constant 0 : i32
    %c0_i32_0 = arith.constant 0 : i32
    %c0_i32_1 = arith.constant 0 : i32
    return %arg0, %c0_i32, %c0_i32_0 : i32, i32, i32
  }
  func.func @transform_1(%arg0: i32) -> (i32, i32) {
    %c0_i32 = arith.constant 0 : i32
    %c0_i32_0 = arith.constant 0 : i32
    %c0_i32_1 = arith.constant 0 : i32
    return %c0_i32, %c0_i32_0 : i32, i32
  }
  func.func @transform_2(%arg0: i32) -> (i32, i32) {
    %c0_i32 = arith.constant 0 : i32
    %c0_i32_0 = arith.constant 0 : i32
    %c0_i32_1 = arith.constant 0 : i32
    return %c0_i32, %c0_i32_0 : i32, i32
  }
  func.func @transform_3(%arg0: i32) -> (i32, i32) {
    %c0_i32 = arith.constant 0 : i32
    %c0_i32_0 = arith.constant 0 : i32
    %c0_i32_1 = arith.constant 0 : i32
    return %c0_i32, %c0_i32_0 : i32, i32
  }
  func.func @transform_4(%arg0: i32) -> (i32, i32) {
    %c0_i32 = arith.constant 0 : i32
    %c0_i32_0 = arith.constant 0 : i32
    %c0_i32_1 = arith.constant 0 : i32
    return %c0_i32, %c0_i32_0 : i32, i32
  }
  func.func @transform_5(%arg0: i32) -> (i32, i32) {
    %c0_i32 = arith.constant 0 : i32
    %c0_i32_0 = arith.constant 0 : i32
    %c0_i32_1 = arith.constant 0 : i32
    return %c0_i32, %c0_i32_0 : i32, i32
  }
  func.func @transform_6(%arg0: i32) -> (i32, i32) {
    %c0_i32 = arith.constant 0 : i32
    %c0_i32_0 = arith.constant 0 : i32
    %c0_i32_1 = arith.constant 0 : i32
    return %c0_i32, %c0_i32_0 : i32, i32
  }
  func.func @transform_7(%arg0: i32) -> (i32, i32) {
    %c0_i32 = arith.constant 0 : i32
    %c0_i32_0 = arith.constant 0 : i32
    %c0_i32_1 = arith.constant 0 : i32
    return %c0_i32, %c0_i32_0 : i32, i32
  }
  func.func @transform_8(%arg0: i32) -> (i32, i32) {
    %c0_i32 = arith.constant 0 : i32
    %c0_i32_0 = arith.constant 0 : i32
    %c0_i32_1 = arith.constant 0 : i32
    return %c0_i32, %c0_i32_0 : i32, i32
  }
  func.func @transform_9(%arg0: i32) -> (i32, i32) {
    %c0_i32 = arith.constant 0 : i32
    %c0_i32_0 = arith.constant 0 : i32
    %c0_i32_1 = arith.constant 0 : i32
    return %c0_i32, %c0_i32_0 : i32, i32
  }
  func.func @transform_10(%arg0: i32) -> (i32, i32) {
    %c0_i32 = arith.constant 0 : i32
    %c0_i32_0 = arith.constant 0 : i32
    %c0_i32_1 = arith.constant 0 : i32
    return %c0_i32, %c0_i32_0 : i32, i32
  }
  func.func @transform_11(%arg0: i32) -> (i32, i32) {
    %c0_i32 = arith.constant 0 : i32
    %c0_i32_0 = arith.constant 0 : i32
    %c0_i32_1 = arith.constant 0 : i32
    return %c0_i32, %c0_i32_0 : i32, i32
  }
  func.func @transform_12(%arg0: i32) -> (i32, i32, i32) {
    %c0_i32 = arith.constant 0 : i32
    %c0_i32_0 = arith.constant 0 : i32
    %c0_i32_1 = arith.constant 0 : i32
    return %arg0, %c0_i32, %c0_i32_0 : i32, i32, i32
  }
}

</mosaic_0001>

<bundles_post_ra>
// kernel: tpu_custom_call.1
= control target key start
LH: loop header
LB: loop body
LE: loop exit
PB: predicated region body
PF: predicated region fallthrough
CT: control target
= control target key end

     0   :  { %17 = vsyncpa [#allocation4], 0  ;;  %s6655_s0 = inlined_call_operand.hbm [shape: f32[2,16,128], index: 0, kind: input, shape index: {}]   ;;  %s6656_s1 = inlined_call_operand.vmem [shape: f32[1,128], index: 1, kind: input, shape index: {}]   ;;  %s6657_s2 = inlined_call_operand.vmem [shape: f32[1,128], index: 2, kind: input, shape index: {}]   ;;  %s6658_s3 = inlined_call_operand.hbm [shape: f32[128,384], index: 3, kind: input, shape index: {}]   ;;  %s6659_s4 = inlined_call_operand.hbm [shape: f32[128,128], index: 4, kind: input, shape index: {}]   ;;  %s6660_s5 = inlined_call_operand.vmem [shape: f32[1,128], index: 5, kind: input, shape index: {}]   ;;  %s6661_s6 = inlined_call_operand.vmem [shape: f32[1,128], index: 6, kind: input, shape index: {}]   ;;  %s6662_s7 = inlined_call_operand.vmem [shape: f32[1,128], index: 7, kind: input, shape index: {}]   ;;  %s6663_s8 = inlined_call_operand.hbm [shape: f32[128,512], index: 8, kind: input, shape index: {}]   ;;  %s6664_s9 = inlined_call_operand.vmem [shape: f32[1,512], index: 9, kind: input, shape index: {}]   ;;  %s6665_s10 = inlined_call_operand.hbm [shape: f32[512,128], index: 10, kind: input, shape index: {}]   ;;  %s6666_s11 = inlined_call_operand.vmem [shape: f32[1,128], index: 11, kind: input, shape index: {}]   ;;  %s6667_s12 = inlined_call_operand.hbm [shape: f32[2,16,128], index: 12, kind: output, shape index: {}]  }
   0x1   :  { %18 = vsyncpa [#allocation7], 0 }
   0x2   :  { %19 = vsyncpa [#allocation10], 0 }
   0x3   :  { %20 = vsyncpa [#allocation5], 0  ;;  %s5618_s21 = smov [#allocation6]  }
   0x4   :  { %s42_s22 = sshll.u32 %s5618_s21, 4  ;;  %s43_s22 = int_to_ptr.vmem [resolvable:$true] %s42_s22 }
   0x5   :  { %s5498_s23 = scalar_lea.vmem %s43_s22, 6144  ;;  %p5503_p1 = scmp.lt.s32.totalorder %s43_s22, %s43_s22 }
   0x6   :  { %p5499_p0 = scmp.ne.s32.totalorder %s43_s22, %s5498_s23  ;;  %p5504_p2 = scmp.lt.s32.totalorder %s5498_s23, %s5498_s23 }
   0x8   :  { %p5505_p3 = por %p5504_p2, %p5503_p1 }
   0xa   :  { %p5506_p4 = pnand %p5505_p3, %p5499_p0 }
   0xc   :  { %5509 = shalt.err (!%p5506_p4)
}
   0xd   :  { %s5619_s24 = smov 384   ;;  %s5620_s25 = smov 24  }
   0xe   :  { %48 = dma.hbm_to_vmem [thread:$0]  %s6658_s3, 6144, %s43_s22, [#allocation7], %s5619_s24, %s5619_s24, %s5620_s25  }
   0xf   :  { %s5621_s28 = smov [#allocation9]  }
  0x10   :  { %s72_s29 = sshll.u32 %s5621_s28, 4  ;;  %s73_s29 = int_to_ptr.vmem [resolvable:$true] %s72_s29 }
  0x11   :  { %s5518_s30 = scalar_lea.vmem %s73_s29, 8192  ;;  %p5523_p6 = scmp.lt.s32.totalorder %s73_s29, %s73_s29 }
  0x12   :  { %p5519_p5 = scmp.ne.s32.totalorder %s73_s29, %s5518_s30  ;;  %p5524_p7 = scmp.lt.s32.totalorder %s5518_s30, %s5518_s30 }
  0x14   :  { %p5525_p8 = por %p5524_p7, %p5523_p6 }
  0x16   :  { %p5526_p9 = pnand %p5525_p8, %p5519_p5 }
  0x18   :  { %5529 = shalt.err (!%p5526_p9)
}
  0x19   :  { %s5622_s13 = smov 512   ;;  %s5623_s14 = smov 32  }
  0x1a   :  { %78 = dma.hbm_to_vmem [thread:$0]  %s6663_s8, 8192, %s73_s29, [#allocation10], %s5622_s13, %s5622_s13, %s5623_s14  }
  0x1b   :  { %s5624_s17 = smov [#allocation3]  }
  0x1c   :  { %s26_s18 = sshll.u32 %s5624_s17, 4  ;;  %s27_s18 = int_to_ptr.vmem [resolvable:$true] %s26_s18 }
  0x1d   :  { %s5538_s3 = scalar_lea.vmem %s27_s18, 512  ;;  %p5543_p11 = scmp.lt.s32.totalorder %s27_s18, %s27_s18 }
  0x1e   :  { %p5539_p10 = scmp.ne.s32.totalorder %s27_s18, %s5538_s3  ;;  %p5544_p12 = scmp.lt.s32.totalorder %s5538_s3, %s5538_s3 }
  0x20   :  { %p5545_p13 = por %p5544_p12, %p5543_p11 }
  0x22   :  { %p5546_p0 = pnand %p5545_p13, %p5539_p10 }
  0x24   :  { %5549 = shalt.err (!%p5546_p0)
}
  0x25   :  { %s5625_s19 = smov 128   ;;  %s5626_s20 = smov 8  }
  0x26   :  { %32 = dma.hbm_to_vmem [thread:$0]  %s6655_s0, 512, %s27_s18, [#allocation4], %s5625_s19, %s5625_s19, %s5626_s20  }
  0x27   :  { %s5627_s8 = smov [#allocation8]   ;;  %s5628_s24 = smov [#allocation11]  }
  0x28   :  { %s54_s23 = sshll.u32 %s5627_s8, 4  ;;  %s86_s25 = sshll.u32 %s5628_s24, 4  ;;  %s55_s23 = int_to_ptr.vmem [resolvable:$true] %s54_s23  ;;  %s87_s25 = int_to_ptr.vmem [resolvable:$true] %s86_s25 }
  0x29   :  { %s5558_s26 = scalar_lea.vmem %s55_s23, 2048  ;;  %p5563_p2 = scmp.lt.s32.totalorder %s55_s23, %s55_s23 }
  0x2a   :  { %p5559_p1 = scmp.ne.s32.totalorder %s55_s23, %s5558_s26  ;;  %p5564_p3 = scmp.lt.s32.totalorder %s5558_s26, %s5558_s26 }
  0x2c   :  { %p5565_p4 = por %p5564_p3, %p5563_p2 }
  0x2e   :  { %p5566_p5 = pnand %p5565_p4, %p5559_p1 }
  0x30   :  { %5569 = shalt.err (!%p5566_p5)
}
  0x31   :  { %60 = dma.hbm_to_vmem [thread:$0]  %s6659_s4, 2048, %s55_s23, [#allocation7], %s5625_s19, %s5625_s19, %s5626_s20  }
  0x32   :  { %s5578_s0 = scalar_lea.vmem %s87_s25, 8192  ;;  %p5583_p7 = scmp.lt.s32.totalorder %s87_s25, %s87_s25 }
  0x33   :  { %p5579_p6 = scmp.ne.s32.totalorder %s87_s25, %s5578_s0  ;;  %p5584_p8 = scmp.lt.s32.totalorder %s5578_s0, %s5578_s0 }
  0x35   :  { %p5585_p9 = por %p5584_p8, %p5583_p7 }
  0x37   :  { %p5586_p10 = pnand %p5585_p9, %p5579_p6 }
  0x39   :  { %5589 = shalt.err (!%p5586_p10)
}
  0x3a   :  { %92 = dma.hbm_to_vmem [thread:$0]  %s6665_s10, 8192, %s87_s25, [#allocation10], %s5625_s19, %s5625_s19, %s5626_s20  }
  0x3b   :  { %5610 = dma.done.wait [#allocation4], 512  }
  0x3c   :  { %5611 = vsyncadd [#allocation4], 4294966784 }
  0x3d   :  { %5612 = dma.done.wait [#allocation7], 8192  }
  0x3e   :  { %5613 = vsyncadd [#allocation7], 4294959104 }
  0x3f   :  { %5614 = dma.done.wait [#allocation10], 16384  }
  0x40   :  { %5615 = vsyncadd [#allocation10], 4294950912  ;;  %v110_v0 = vld [vmem:[#allocation3] sm:$0xff]  ;;  %v111_v1 = vld [vmem:[#allocation3 + $0x8] sm:$0xff]  ;;  %v6668_v62 = vmov 0.0   ;;  %vm403_vm0 = vcmask 130048  }
  0x41   :  { %116 = vadd.xlane.f32.xlu0 %v110_v0  ;;  %v112_v2 = vld [vmem:[#allocation3 + $0x10] sm:$0xff]  ;;  %v226_v4 = vld [vmem:[#allocation6 + $0x168] sm:$0xff]  ;;  %v224_v5 = vld [vmem:[#allocation6 + $0x158] sm:$0xff]  ;;  %293 = vmatprep.mubr.f32.mxu0 %v6668_v62  ;;  %s5632_s16 = smov 80   ;;  %s5633_s17 = smov 64   ;;  %vm810_vm1 = vcmask 261248  }
  0x42   :  { %v227_v3 = vld [vmem:[#allocation6 + $0x170] sm:$0xff]  ;;  %v228_v7 = vld [vmem:[#allocation6 + $0x178] sm:$0xff]  ;;  %v221_v8 = vld [vmem:[#allocation6 + $0x140] sm:$0xff]  ;;  %s5634_s18 = smov 48   ;;  %s5635_s3 = smov 16   ;;  %vm1023_vm2 = vcmask 392448  }
  0x43   :  { %229 = vmatprep.subr.mxu0 %v227_v3  ;;  %v223_v6 = vld [vmem:[#allocation6 + $0x150] sm:$0xff]  ;;  %4991 = vmatprep.subr.mxu1 %v228_v7  ;;  %v225_v9 = vld [vmem:[#allocation6 + $0x160] sm:$0xff]  ;;  %v220_v10 = vld [vmem:[#allocation6 + $0x138] sm:$0xff]  ;;  %vm1236_vm3 = vcmask 523648   ;;  %vm1449_vm4 = vcmask 654848   ;;  %vm1662_vm5 = vcmask 786048  }
  0x44   :  { %230 = vmatpush1.msra.mxu0 %v226_v4  ;;  %4992 = vmatpush3.msra.mxu1 %v228_v7  ;;  %v218_v11 = vld [vmem:[#allocation6 + $0x128] sm:$0xff]  ;;  %v217_v12 = vld [vmem:[#allocation6 + $0x120] sm:$0xff]  ;;  %v5737_v24 = vld [vmem:[#allocation3 + $0x18] sm:$0xff]  ;;  %vm1875_vm6 = vcmask 917248   ;;  %vm2088_vm7 = vcmask 1048448  }
  0x45   :  { %118 = vadd.xlane.f32.xlu0 %v111_v1  ;;  %231 = vmatprep.subr.mxu0 %v224_v5  ;;  %v215_v26 = vld [vmem:[#allocation6 + $0x110] sm:$0xff]  ;;  %v222_v27 = vld [vmem:[#allocation6 + $0x148] sm:$0xff]  ;;  %v212_v29 = vld [vmem:[#allocation6 + $0xf8] sm:$0xff] }
  0x46   :  { %232 = vmatpush1.msra.mxu0 %v223_v6  ;;  %4993 = vmatprep.subr.mxu1 %v225_v9  ;;  %v214_v28 = vld [vmem:[#allocation6 + $0x108] sm:$0xff]  ;;  %v219_v30 = vld [vmem:[#allocation6 + $0x130] sm:$0xff]  ;;  %v209_v32 = vld [vmem:[#allocation6 + $0xe0] sm:$0xff] }
  0x47   :  { %233 = vmatprep.subr.mxu0 %v221_v8  ;;  %4994 = vmatpush3.msra.mxu1 %v225_v9  ;;  %v211_v31 = vld [vmem:[#allocation6 + $0xf0] sm:$0xff]  ;;  %v216_v33 = vld [vmem:[#allocation6 + $0x118] sm:$0xff]  ;;  %v206_v35 = vld [vmem:[#allocation6 + $0xc8] sm:$0xff] }
  0x48   :  { %234 = vmatpush1.msra.mxu0 %v220_v10  ;;  %4995 = vmatprep.subr.mxu1 %v222_v27  ;;  %v208_v34 = vld [vmem:[#allocation6 + $0xd8] sm:$0xff]  ;;  %v213_v36 = vld [vmem:[#allocation6 + $0x100] sm:$0xff]  ;;  %v203_v38 = vld [vmem:[#allocation6 + $0xb0] sm:$0xff] }
  0x49   :  { %120 = vadd.xlane.f32.xlu0 %v112_v2  ;;  %235 = vmatprep.subr.mxu0 %v218_v11  ;;  %v205_v37 = vld [vmem:[#allocation6 + $0xc0] sm:$0xff]  ;;  %v210_v39 = vld [vmem:[#allocation6 + $0xe8] sm:$0xff]  ;;  %v200_v41 = vld [vmem:[#allocation6 + $0x98] sm:$0xff] }
  0x4a   :  { %236 = vmatpush1.msra.mxu0 %v217_v12  ;;  %4996 = vmatpush3.msra.mxu1 %v222_v27  ;;  %v202_v40 = vld [vmem:[#allocation6 + $0xa8] sm:$0xff]  ;;  %v207_v42 = vld [vmem:[#allocation6 + $0xd0] sm:$0xff]  ;;  %v197_v44 = vld [vmem:[#allocation6 + $0x80] sm:$0xff] }
  0x4b   :  { %237 = vmatprep.subr.mxu0 %v215_v26  ;;  %4997 = vmatprep.subr.mxu1 %v219_v30  ;;  %v199_v43 = vld [vmem:[#allocation6 + $0x90] sm:$0xff]  ;;  %v204_v45 = vld [vmem:[#allocation6 + $0xb8] sm:$0xff]  ;;  %v194_v47 = vld [vmem:[#allocation6 + $0x68] sm:$0xff] }
  0x4c   :  { %238 = vmatpush1.msra.mxu0 %v214_v28  ;;  %4998 = vmatpush3.msra.mxu1 %v219_v30  ;;  %v196_v46 = vld [vmem:[#allocation6 + $0x78] sm:$0xff]  ;;  %v201_v48 = vld [vmem:[#allocation6 + $0xa0] sm:$0xff]  ;;  %v191_v50 = vld [vmem:[#allocation6 + $0x50] sm:$0xff] }
  0x4d   :  { %239 = vmatprep.subr.mxu0 %v212_v29  ;;  %4999 = vmatprep.subr.mxu1 %v216_v33  ;;  %v193_v49 = vld [vmem:[#allocation6 + $0x60] sm:$0xff]  ;;  %v198_v51 = vld [vmem:[#allocation6 + $0x88] sm:$0xff]  ;;  %v188_v53 = vld [vmem:[#allocation6 + $0x38] sm:$0xff] }
  0x4e   :  { %240 = vmatpush1.msra.mxu0 %v211_v31  ;;  %5000 = vmatpush3.msra.mxu1 %v216_v33  ;;  %v190_v52 = vld [vmem:[#allocation6 + $0x48] sm:$0xff]  ;;  %v195_v54 = vld [vmem:[#allocation6 + $0x70] sm:$0xff]  ;;  %v185_v56 = vld [vmem:[#allocation6 + $0x20] sm:$0xff] }
  0x4f   :  { %241 = vmatprep.subr.mxu0 %v209_v32  ;;  %5001 = vmatprep.subr.mxu1 %v213_v36  ;;  %v187_v55 = vld [vmem:[#allocation6 + $0x30] sm:$0xff]  ;;  %v192_v57 = vld [vmem:[#allocation6 + $0x58] sm:$0xff]  ;;  %v182_v59 = vld [vmem:[#allocation6 + $0x8] sm:$0xff] }
  0x50   :  { %242 = vmatpush1.msra.mxu0 %v208_v34  ;;  %5002 = vmatpush3.msra.mxu1 %v213_v36  ;;  %v184_v58 = vld [vmem:[#allocation6 + $0x18] sm:$0xff]  ;;  %v189_v60 = vld [vmem:[#allocation6 + $0x40] sm:$0xff]  ;;  %v186_v63 = vld [vmem:[#allocation6 + $0x28] sm:$0xff] }
  0x51   :  { %243 = vmatprep.subr.mxu0 %v206_v35  ;;  %5003 = vmatprep.subr.mxu1 %v210_v39  ;;  %v181_v61 = vld [vmem:[#allocation6] sm:$0xff] }
  0x52   :  { %244 = vmatpush1.msra.mxu0 %v205_v37  ;;  %5004 = vmatpush3.msra.mxu1 %v210_v39 }
  0x53   :  { %245 = vmatprep.subr.mxu0 %v203_v38  ;;  %5005 = vmatprep.subr.mxu1 %v207_v42 }
  0x54   :  { %246 = vmatpush1.msra.mxu0 %v202_v40  ;;  %5006 = vmatpush3.msra.mxu1 %v207_v42 }
  0x55   :  { %247 = vmatprep.subr.mxu0 %v200_v41  ;;  %5007 = vmatprep.subr.mxu1 %v204_v45 }
  0x56   :  { %248 = vmatpush1.msra.mxu0 %v199_v43  ;;  %5008 = vmatpush3.msra.mxu1 %v204_v45 }
  0x57   :  { %249 = vmatprep.subr.mxu0 %v197_v44  ;;  %5009 = vmatprep.subr.mxu1 %v201_v48 }
  0x58   :  { %250 = vmatpush1.msra.mxu0 %v196_v46  ;;  %5010 = vmatpush3.msra.mxu1 %v201_v48 }
  0x59   :  { %251 = vmatprep.subr.mxu0 %v194_v47  ;;  %5011 = vmatprep.subr.mxu1 %v198_v51 }
  0x5a   :  { %252 = vmatpush1.msra.mxu0 %v193_v49  ;;  %5012 = vmatpush3.msra.mxu1 %v198_v51 }
  0x5b   :  { %253 = vmatprep.subr.mxu0 %v191_v50  ;;  %5013 = vmatprep.subr.mxu1 %v195_v54 }
  0x5c   :  { %254 = vmatpush1.msra.mxu0 %v190_v52  ;;  %5014 = vmatpush3.msra.mxu1 %v195_v54 }
  0x5d   :  { %255 = vmatprep.subr.mxu0 %v188_v53  ;;  %5015 = vmatprep.subr.mxu1 %v192_v57 }
  0x5e   :  { %256 = vmatpush1.msra.mxu0 %v187_v55  ;;  %5016 = vmatpush3.msra.mxu1 %v192_v57 }
  0x5f   :  { %257 = vmatprep.subr.mxu0 %v185_v56  ;;  %5017 = vmatprep.subr.mxu1 %v189_v60 }
  0x60   :  { %258 = vmatpush1.msra.mxu0 %v184_v58  ;;  %5018 = vmatpush3.msra.mxu1 %v189_v60 }
  0x61   :  { %259 = vmatprep.subr.mxu0 %v182_v59  ;;  %5019 = vmatprep.subr.mxu1 %v186_v63 }
  0x62   :  { %260 = vmatpush1.msra.mxu0 %v181_v61  ;;  %5020 = vmatpush3.msra.mxu1 %v186_v63 }
  0xca   :  { %v117_v13 = vpop.xlane.xlu0 %116 }
  0xcb   :  { %v125_v14 = vmul.f32 0.0078125, %v117_v13 }
  0xcd   :  { %v5727_v15 = vsub.f32 %v110_v0, %v125_v14  ;;  %v183_v0 = vld [vmem:[#allocation6 + $0x10] sm:$0xff] }
  0xce   :  { %v119_v16 = vpop.xlane.xlu0 %118  ;;  %5021 = vmatprep.subr.mxu1 %v183_v0 }
  0xcf   :  { %v126_v17 = vmul.f32 0.0078125, %v119_v16  ;;  %v133_v18 = vmul.f32 %v5727_v15, %v5727_v15  ;;  %5022 = vmatpush3.msra.mxu1 %v183_v0  ;;  %v4633_v16 = vld [vmem:[%s6656_s1] ss:$0 sm:$0xff]  ;;  %s5630_s1 = smov 112  }
  0xd1   :  { %137 = vadd.xlane.f32.xlu1 %v133_v18  ;;  %v5731_v19 = vsub.f32 %v111_v1, %v126_v17  ;;  %v4634_v18 = vld [vmem:[%s6657_s2] ss:$0 sm:$0xff]  ;;  %s5631_s2 = smov 96  }
  0xd2   :  { %v121_v20 = vpop.xlane.xlu0 %120 }
  0xd3   :  { %v134_v21 = vmul.f32 %v5731_v19, %v5731_v19  ;;  %v127_v22 = vmul.f32 0.0078125, %v121_v20 }
  0xd5   :  { %139 = vadd.xlane.f32.xlu1 %v134_v21  ;;  %v5735_v23 = vsub.f32 %v112_v2, %v127_v22 }
  0xd7   :  { %v135_v25 = vmul.f32 %v5735_v23, %v5735_v23 }
  0xd9   :  { %122 = vadd.xlane.f32.xlu1 %v5737_v24  ;;  %141 = vadd.xlane.f32.xlu0 %v135_v25 }
 0x15a   :  { %v138_v1 = vpop.xlane.xlu1 %137 }
 0x15b   :  { %v145_v2 = vmul.f32 0.0078125, %v138_v1 }
 0x15d   :  { %v149_v3 = vadd.f32 1e-05, %v145_v2 }
 0x15e   :  { %v140_v4 = vpop.xlane.xlu1 %139 }
 0x15f   :  { %5310 = vrsqrt.f32 %v149_v3  ;;  %v146_v5 = vmul.f32 0.0078125, %v140_v4 }
 0x161   :  { %v150_v6 = vadd.f32 1e-05, %v146_v5 }
 0x162   :  { %v123_v7 = vpop.xlane.xlu1 %122  ;;  %v142_v8 = vpop.xlane.xlu0 %141 }
 0x163   :  { %5312 = vrsqrt.f32 %v150_v6  ;;  %v128_v9 = vmul.f32 0.0078125, %v123_v7  ;;  %v147_v10 = vmul.f32 0.0078125, %v142_v8 }
 0x165   :  { %v132_v11 = vsub.f32 %v5737_v24, %v128_v9  ;;  %v151_v12 = vadd.f32 1e-05, %v147_v10 }
 0x167   :  { %v136_v13 = vmul.f32 %v132_v11, %v132_v11  ;;  %5314 = vrsqrt.f32 %v151_v12 }
 0x169   :  { %143 = vadd.xlane.f32.xlu1 %v136_v13 }
 0x16c   :  { %v5311_v14 = vpop.eup %5310 }
 0x16d   :  { %v157_v17 = vmul.f32 %v5311_v14, %v5727_v15 }
 0x16f   :  { %v167_v20 = vmul.f32 %v4633_v16, %v157_v17 }
 0x170   :  { %v5313_v21 = vpop.eup %5312 }
 0x171   :  { %v177_v22 = vadd.f32 %v4634_v18, %v167_v20  ;;  %v158_v24 = vmul.f32 %v5313_v21, %v5731_v19 }
 0x173   :  { %294 = vmatmul.mubr.f32.vlgmr.msra.gmra.mxu0 %v177_v22  ;;  %5023 = vmatprep.mubr.f32.mxu1 %v177_v22  ;;  %v168_v25 = vmul.f32 %v4633_v16, %v158_v24 }
 0x174   :  { %v5315_v26 = vpop.eup %5314  ;;  %299 = vmatprep.mubr.f32.mxu0 %v6668_v62 }
 0x175   :  { %v178_v27 = vadd.f32 %v4634_v18, %v168_v25  ;;  %v159_v28 = vmul.f32 %v5315_v26, %v5735_v23 }
 0x177   :  { %300 = vmatmul.mubr.f32.gmra.mxu0 %v178_v27  ;;  %5024 = vmatmul.mubr.f32.vlgmr.msra.gmra.mxu1 %v178_v27  ;;  %v169_v15 = vmul.f32 %v4633_v16, %v159_v28 }
 0x178   :  { %305 = vmatprep.mubr.f32.mxu0 %v6668_v62 }
 0x179   :  { %v179_v29 = vadd.f32 %v4634_v18, %v169_v15 }
 0x17b   :  { %306 = vmatmul.mubr.f32.gmra.mxu0 %v179_v29  ;;  %5026 = vmatprep.mubr.f32.mxu1 %v179_v29 }
 0x17c   :  { %311 = vmatprep.mubr.f32.mxu0 %v6668_v62 }
 0x1f2   :  { %v144_v19 = vpop.xlane.xlu1 %143 }
 0x1f3   :  { %v148_v30 = vmul.f32 0.0078125, %v144_v19 }
 0x1f5   :  { %v152_v31 = vadd.f32 1e-05, %v148_v30 }
 0x1f7   :  { %5316 = vrsqrt.f32 %v152_v31 }
 0x204   :  { %v5317_v32 = vpop.eup %5316 }
 0x205   :  { %v160_v33 = vmul.f32 %v5317_v32, %v132_v11 }
 0x207   :  { %v170_v34 = vmul.f32 %v4633_v16, %v160_v33 }
 0x209   :  { %v180_v35 = vadd.f32 %v4634_v18, %v170_v34 }
 0x20b   :  { %312 = vmatmul.mubr.f32.gmra.mxu0 %v180_v35  ;;  %5027 = vmatmul.mubr.f32.gmra.mxu1 %v180_v35 }
 0x233   :  { %v5756_v23 = vpop.f32.mrf.mxu0 }
 0x234   :  { %5033 = vmatprep.mubr.msk.f32.mxu1 %vm403_vm0, %v5756_v23 }
 0x235   :  { %v5760_v36 = vpop.f32.mrf.mxu0 }
 0x237   :  { %v5762_v37 = vpop.f32.mrf.mxu0  ;;  %v5772_v39 = vpop.f32.mrf.mxu1 }
 0x239   :  { %v5764_v38 = vpop.f32.mrf.mxu0  ;;  %v5779_v40 = vpop.f32.mrf.mxu1 }
 0x23a   :  { %5029 = vmatprep.subr.msk.mxu1 %vm403_vm0, %v5764_v38 }
 0x23b   :  { %5030 = vmatpush3.xpose.msk.msra.mxu1 %vm403_vm0, %v5764_v38  ;;  %v5826_v0 = vpop.f32.mrf.mxu0 }
 0x23c   :  { %5031 = vmatprep.subr.msk.mxu1 %vm403_vm0, %v5760_v36 }
 0x23d   :  { %v5828_v1 = vpop.f32.mrf.mxu0 }
 0x23f   :  { %5032 = vmatpush3.xpose.msk.msra.mxu1 %vm403_vm0, %v5760_v36 }
 0x240   :  { %5036 = vmatprep.subr.mxu1 %v5772_v39 }
 0x242   :  { %5034 = vmatmul.mubr.msk.f32.vlgmr.msra.gmra.mxu1 %vm403_vm0, %v5762_v37 }
 0x243   :  { %5037 = vmatpush3.msra.mxu1 %v5772_v39 }
 0x244   :  { %5038 = vmatprep.subr.mxu1 %v5779_v40 }
 0x245   :  { %5039 = vmatpush3.msra.mxu1 %v5779_v40 }
 0x2cb   :  { %v5784_v41 = vpop.f32.mrf.mxu1  ;;  %v5830_v2 = vpop.f32.mrf.mxu0 }
 0x2cd   :  { %v5786_v42 = vpop.f32.mrf.mxu1  ;;  %v5832_v3 = vpop.f32.mrf.mxu0 }
 0x302   :  { %v5035_v43 = vpop.f32.mrf.mxu1 }
 0x303   :  { %v494_v44 = vsel %vm403_vm0, %v5035_v43, -inf }
 0x304   :  { %495 = vmax.xlane.f32.xlu1 %v494_v44  ;;  %v482_v45 = vpop.f32.mrf.mxu1 }
 0x305   :  { %v491_v46 = vsel %vm403_vm0, %v482_v45, -inf }
 0x306   :  { %492 = vmax.xlane.f32.xlu0 %v491_v46 }
 0x315   :  { %602 = vrot.lane.b32.xlu1 %v5760_v36, %s5630_s1 }
 0x319   :  { %819 = vrot.lane.b32.xlu1 %v5764_v38, %s5631_s2 }
 0x31c   :  { %604 = vrot.lane.b32.xlu0 %v5764_v38, %s5630_s1 }
 0x31d   :  { %598 = vrot.lane.b32.xlu1 %v5756_v23, %s5630_s1 }
 0x320   :  { %600 = vrot.lane.b32.xlu0 %v5762_v37, %s5630_s1 }
 0x321   :  { %817 = vrot.lane.b32.xlu1 %v5760_v36, %s5631_s2 }
 0x324   :  { %813 = vrot.lane.b32.xlu0 %v5756_v23, %s5631_s2 }
 0x325   :  { %815 = vrot.lane.b32.xlu1 %v5762_v37, %s5631_s2 }
 0x38d   :  { %v496_v47 = vpop.xlane.xlu1 %495 }
 0x38e   :  { %v498_v48 = vsub.f32 %v5035_v43, %v496_v47 }
 0x38f   :  { %v493_v49 = vpop.xlane.xlu0 %492 }
 0x390   :  { %v497_v50 = vsub.f32 %v482_v45, %v493_v49  ;;  %v501_v51 = vmul.f32 1.442695, %v498_v48 }
 0x391   :  { %v603_v52 = vpop.permute.xlu1 %602 }
 0x392   :  { %v499_v53 = vmul.f32 1.442695, %v497_v50 }
 0x393   :  { %v605_v54 = vpop.permute.xlu0 %604 }
 0x394   :  { %5318 = vpow2.f32 %v499_v53  ;;  %5043 = vmatprep.subr.msk.mxu1 %vm403_vm0, %v605_v54 }
 0x395   :  { %5320 = vpow2.f32 %v501_v51  ;;  %v820_v55 = vpop.permute.xlu1 %819 }
 0x396   :  { %5057 = vmatprep.subr.msk.mxu0 %vm403_vm0, %v820_v55 }
 0x397   :  { %5058 = vmatpush3.xpose.msk.msra.mxu0 %vm403_vm0, %v820_v55  ;;  %v601_v56 = vpop.permute.xlu0 %600 }
 0x399   :  { %v599_v57 = vpop.permute.xlu1 %598 }
 0x39b   :  { %v814_v58 = vpop.permute.xlu0 %813 }
 0x39c   :  { %5061 = vmatprep.mubr.msk.f32.mxu0 %vm403_vm0, %v814_v58 }
 0x39d   :  { %v818_v59 = vpop.permute.xlu1 %817 }
 0x39e   :  { %5059 = vmatprep.subr.msk.mxu0 %vm403_vm0, %v818_v59 }
 0x39f   :  { %5060 = vmatpush3.xpose.msk.msra.mxu0 %vm403_vm0, %v818_v59 }
 0x3a1   :  { %v5812_v60 = vpop.eup %5318  ;;  %v816_v61 = vpop.permute.xlu1 %815 }
 0x3a2   :  { %v5814_v63 = vpop.eup %5320  ;;  %5040 = vmatprep.mubr.msk.f32.mxu1 %vm403_vm0, %v5812_v60  ;;  %5062 = vmatmul.mubr.msk.f32.vlgmr.msra.gmra.mxu0 %vm403_vm0, %v816_v61 }
 0x3a3   :  { %5041 = vmatmul.mubr.msk.f32.vlgmr.msra.gmra.mxu1 %vm403_vm0, %v5814_v63 }
 0x3a4   :  { %5044 = vmatpush3.xpose.msk.msra.mxu1 %vm403_vm0, %v605_v54  ;;  %5047 = vmatprep.mubr.msk.f32.mxu1 %vm403_vm0, %v599_v57 }
 0x3a5   :  { %5045 = vmatprep.subr.msk.mxu1 %vm403_vm0, %v603_v52 }
 0x3a8   :  { %5046 = vmatpush3.xpose.msk.msra.mxu1 %vm403_vm0, %v603_v52 }
 0x3ab   :  { %5048 = vmatmul.mubr.msk.f32.vlgmr.msra.gmra.mxu1 %vm403_vm0, %v601_v56 }
 0x462   :  { %v5063_v4 = vpop.f32.mrf.mxu0 }
 0x463   :  { %v907_v5 = vsel %vm403_vm0, %v5063_v4, -inf  ;;  %v5835_v7 = vpop.f32.mrf.mxu1 }
 0x464   :  { %908 = vmax.xlane.f32.xlu0 %v907_v5  ;;  %v895_v6 = vpop.f32.mrf.mxu0  ;;  %6670 = vst [vmem:[#allocation17_spill] sm:$0xff] %v5835_v7 }
 0x465   :  { %v904_v8 = vsel %vm403_vm0, %v895_v6, -inf  ;;  %v5838_v9 = vpop.f32.mrf.mxu1 }
 0x466   :  { %6671 = vst [vmem:[#allocation18_spill] sm:$0xff] %v5838_v9 }
 0x468   :  { %905 = vmax.xlane.f32.xlu0 %v904_v8 }
 0x46b   :  { %v5049_v10 = vpop.f32.mrf.mxu1 }
 0x46c   :  { %v692_v11 = vsel %vm403_vm0, %v5049_v10, -inf }
 0x46d   :  { %693 = vmax.xlane.f32.xlu1 %v692_v11  ;;  %v680_v12 = vpop.f32.mrf.mxu1 }
 0x46e   :  { %v689_v13 = vsel %vm403_vm0, %v680_v12, -inf }
 0x46f   :  { %690 = vmax.xlane.f32.xlu0 %v689_v13 }
 0x47e   :  { %713 = vrot.lane.b32.xlu1 %v5779_v40, %s5630_s1 }
 0x482   :  { %928 = vrot.lane.b32.xlu1 %v5772_v39, %s5631_s2 }
 0x485   :  { %715 = vrot.lane.b32.xlu0 %v5772_v39, %s5630_s1 }
 0x486   :  { %926 = vrot.lane.b32.xlu1 %v5779_v40, %s5631_s2 }
 0x489   :  { %1032 = vrot.lane.b32.xlu0 %v5764_v38, %s5632_s16 }
 0x48a   :  { %1030 = vrot.lane.b32.xlu1 %v5760_v36, %s5632_s16 }
 0x48d   :  { %1026 = vrot.lane.b32.xlu0 %v5756_v23, %s5632_s16 }
 0x48e   :  { %1245 = vrot.lane.b32.xlu1 %v5764_v38, %s5633_s17 }
 0x491   :  { %1028 = vrot.lane.b32.xlu0 %v5762_v37, %s5632_s16 }
 0x492   :  { %1243 = vrot.lane.b32.xlu1 %v5760_v36, %s5633_s17 }
 0x495   :  { %1239 = vrot.lane.b32.xlu0 %v5756_v23, %s5633_s17 }
 0x496   :  { %1241 = vrot.lane.b32.xlu1 %v5762_v37, %s5633_s17 }
 0x499   :  { %1354 = vrot.lane.b32.xlu0 %v5772_v39, %s5633_s17 }
 0x49a   :  { %1352 = vrot.lane.b32.xlu1 %v5779_v40, %s5633_s17 }
 0x4ed   :  { %v909_v14 = vpop.xlane.xlu0 %908 }
 0x4ee   :  { %v911_v24 = vsub.f32 %v5063_v4, %v909_v14 }
 0x4f0   :  { %v914_v29 = vmul.f32 1.442695, %v911_v24 }
 0x4f1   :  { %v906_v16 = vpop.xlane.xlu0 %905 }
 0x4f2   :  { %v910_v18 = vsub.f32 %v895_v6, %v906_v16 }
 0x4f4   :  { %v912_v27 = vmul.f32 1.442695, %v910_v18 }
 0x4f6   :  { %v694_v17 = vpop.xlane.xlu1 %693 }
 0x4f7   :  { %v696_v20 = vsub.f32 %v5049_v10, %v694_v17 }
 0x4f8   :  { %v691_v21 = vpop.xlane.xlu0 %690 }
 0x4f9   :  { %v695_v22 = vsub.f32 %v680_v12, %v691_v21  ;;  %v699_v25 = vmul.f32 1.442695, %v696_v20 }
 0x4fa   :  { %v714_v26 = vpop.permute.xlu1 %713 }
 0x4fb   :  { %v697_v28 = vmul.f32 1.442695, %v695_v22 }
 0x4fc   :  { %v716_v15 = vpop.permute.xlu0 %715 }
 0x4fd   :  { %5322 = vpow2.f32 %v697_v28  ;;  %5050 = vmatprep.subr.mxu1 %v716_v15 }
 0x4fe   :  { %5324 = vpow2.f32 %v699_v25  ;;  %v929_v19 = vpop.permute.xlu1 %928  ;;  %5051 = vmatpush3.msra.mxu1 %v716_v15 }
 0x4ff   :  { %5326 = vpow2.f32 %v912_v27  ;;  %5052 = vmatprep.subr.mxu1 %v714_v26 }
 0x500   :  { %5053 = vmatpush3.msra.mxu1 %v714_v26  ;;  %5328 = vpow2.f32 %v914_v29  ;;  %v1033_v31 = vpop.permute.xlu0 %1032 }
 0x501   :  { %5064 = vmatprep.subr.mxu1 %v929_v19 }
 0x502   :  { %v927_v30 = vpop.permute.xlu1 %926 }
 0x504   :  { %v1027_v35 = vpop.permute.xlu0 %1026 }
 0x506   :  { %v1031_v32 = vpop.permute.xlu1 %1030 }
 0x508   :  { %v1029_v46 = vpop.permute.xlu0 %1028 }
 0x50a   :  { %v5870_v33 = vpop.eup %5322  ;;  %v1246_v45 = vpop.permute.xlu1 %1245 }
 0x50b   :  { %v5872_v34 = vpop.eup %5324  ;;  %5054 = vmatprep.mubr.msk.f32.mxu1 %vm403_vm0, %v5870_v33 }
 0x50c   :  { %v5876_v43 = vpop.eup %5326  ;;  %5055 = vmatmul.mubr.msk.f32.vlgmr.msra.gmra.mxu1 %vm403_vm0, %v5872_v34  ;;  %v1240_v48 = vpop.permute.xlu0 %1239 }
 0x50d   :  { %5065 = vmatpush3.msra.mxu1 %v929_v19  ;;  %5068 = vmatprep.mubr.msk.f32.mxu1 %vm403_vm0, %v5876_v43  ;;  %v5882_v44 = vpop.eup %5328 }
 0x50e   :  { %5066 = vmatprep.subr.mxu1 %v927_v30  ;;  %v1244_v47 = vpop.permute.xlu1 %1243 }
 0x50f   :  { %5067 = vmatpush3.msra.mxu1 %v927_v30 }
 0x510   :  { %5071 = vmatprep.subr.msk.mxu1 %vm403_vm0, %v1033_v31  ;;  %5069 = vmatmul.mubr.msk.f32.vlgmr.msra.gmra.mxu1 %vm403_vm0, %v5882_v44  ;;  %v1355_v50 = vpop.permute.xlu0 %1354 }
 0x511   :  { %5072 = vmatpush3.xpose.msk.msra.mxu1 %vm403_vm0, %v1033_v31  ;;  %5075 = vmatprep.mubr.msk.f32.mxu1 %vm403_vm0, %v1027_v35 }
 0x512   :  { %5073 = vmatprep.subr.msk.mxu1 %vm403_vm0, %v1031_v32  ;;  %v1242_v49 = vpop.permute.xlu1 %1241 }
 0x515   :  { %5074 = vmatpush3.xpose.msk.msra.mxu1 %vm403_vm0, %v1031_v32 }
 0x516   :  { %5085 = vmatprep.subr.msk.mxu1 %vm403_vm0, %v1246_v45  ;;  %v1353_v51 = vpop.permute.xlu1 %1352 }
 0x518   :  { %5076 = vmatmul.mubr.msk.f32.vlgmr.msra.gmra.mxu1 %vm403_vm0, %v1029_v46 }
 0x519   :  { %5086 = vmatpush3.xpose.msk.msra.mxu1 %vm403_vm0, %v1246_v45  ;;  %5089 = vmatprep.mubr.msk.f32.mxu1 %vm403_vm0, %v1240_v48 }
 0x51a   :  { %5087 = vmatprep.subr.msk.mxu1 %vm403_vm0, %v1244_v47 }
 0x51d   :  { %5088 = vmatpush3.xpose.msk.msra.mxu1 %vm403_vm0, %v1244_v47 }
 0x51e   :  { %5092 = vmatprep.subr.mxu1 %v1355_v50 }
 0x520   :  { %5090 = vmatmul.mubr.msk.f32.vlgmr.msra.gmra.mxu1 %vm403_vm0, %v1242_v49 }
 0x521   :  { %5093 = vmatpush3.msra.mxu1 %v1355_v50 }
 0x522   :  { %5094 = vmatprep.subr.mxu1 %v1353_v51 }
 0x523   :  { %5095 = vmatpush3.msra.mxu1 %v1353_v51 }
 0x5cc   :  { %v5898_v52 = vpop.f32.mrf.mxu1 }
 0x5ce   :  { %v5900_v53 = vpop.f32.mrf.mxu1 }
 0x5d0   :  { %v5902_v54 = vpop.f32.mrf.mxu1 }
 0x5d2   :  { %v5904_v55 = vpop.f32.mrf.mxu1 }
 0x5d8   :  { %v5077_v56 = vpop.f32.mrf.mxu1 }
 0x5d9   :  { %v1120_v5 = vsel %vm403_vm0, %v5077_v56, -inf }
 0x5da   :  { %v1108_v57 = vpop.f32.mrf.mxu1 }
 0x5db   :  { %v1117_v6 = vsel %vm403_vm0, %v1108_v57, -inf }
 0x5e0   :  { %v5091_v58 = vpop.f32.mrf.mxu1 }
 0x5e1   :  { %v1333_v59 = vsel %vm403_vm0, %v5091_v58, -inf }
 0x5e2   :  { %1334 = vmax.xlane.f32.xlu1 %v1333_v59  ;;  %v1321_v61 = vpop.f32.mrf.mxu1 }
 0x5e3   :  { %v1330_v4 = vsel %vm403_vm0, %v1321_v61, -inf }
 0x5e4   :  { %1331 = vmax.xlane.f32.xlu0 %v1330_v4 }
 0x5f3   :  { %1456 = vrot.lane.b32.xlu1 %v5760_v36, %s5634_s18 }
 0x5f7   :  { %1454 = vrot.lane.b32.xlu1 %v5762_v37, %s5634_s18 }
 0x5fa   :  { %1458 = vrot.lane.b32.xlu0 %v5764_v38, %s5634_s18 }
 0x5fe   :  { %1452 = vrot.lane.b32.xlu0 %v5756_v23, %s5634_s18 }
 0x61b   :  { %1121 = vmax.xlane.f32.xlu1 %v1120_v5 }
 0x61d   :  { %1118 = vmax.xlane.f32.xlu0 %v1117_v6 }
 0x62c   :  { %1139 = vrot.lane.b32.xlu1 %v5779_v40, %s5632_s16 }
 0x630   :  { %1567 = vrot.lane.b32.xlu1 %v5772_v39, %s5634_s18 }
 0x633   :  { %1141 = vrot.lane.b32.xlu0 %v5772_v39, %s5632_s16 }
 0x634   :  { %1565 = vrot.lane.b32.xlu1 %v5779_v40, %s5634_s18 }
 0x638   :  { %1669 = vrot.lane.b32.xlu1 %v5760_v36, %s5623_s14 }
 0x63c   :  { %1667 = vrot.lane.b32.xlu1 %v5762_v37, %s5623_s14 }
 0x640   :  { %1778 = vrot.lane.b32.xlu1 %v5779_v40, %s5623_s14 }
 0x66b   :  { %v1335_v8 = vpop.xlane.xlu1 %1334 }
 0x66c   :  { %v1337_v10 = vsub.f32 %v5091_v58, %v1335_v8 }
 0x66d   :  { %v1332_v11 = vpop.xlane.xlu0 %1331 }
 0x66e   :  { %v1336_v12 = vsub.f32 %v1321_v61, %v1332_v11  ;;  %v1340_v13 = vmul.f32 1.442695, %v1337_v10 }
 0x66f   :  { %v1457_v21 = vpop.permute.xlu1 %1456 }
 0x670   :  { %v1338_v14 = vmul.f32 1.442695, %v1336_v12 }
 0x671   :  { %v1459_v16 = vpop.permute.xlu0 %1458 }
 0x672   :  { %5330 = vpow2.f32 %v1338_v14  ;;  %5099 = vmatprep.subr.msk.mxu1 %vm403_vm0, %v1459_v16 }
 0x673   :  { %5332 = vpow2.f32 %v1340_v13  ;;  %v1455_v22 = vpop.permute.xlu1 %1454 }
 0x675   :  { %v1453_v20 = vpop.permute.xlu0 %1452 }
 0x67f   :  { %v5933_v17 = vpop.eup %5330 }
 0x680   :  { %v5935_v18 = vpop.eup %5332  ;;  %5096 = vmatprep.mubr.msk.f32.mxu1 %vm403_vm0, %v5933_v17 }
 0x681   :  { %5097 = vmatmul.mubr.msk.f32.vlgmr.msra.gmra.mxu1 %vm403_vm0, %v5935_v18 }
 0x682   :  { %5100 = vmatpush3.xpose.msk.msra.mxu1 %vm403_vm0, %v1459_v16  ;;  %5103 = vmatprep.mubr.msk.f32.mxu1 %vm403_vm0, %v1453_v20 }
 0x683   :  { %5101 = vmatprep.subr.msk.mxu1 %vm403_vm0, %v1457_v21 }
 0x686   :  { %5102 = vmatpush3.xpose.msk.msra.mxu1 %vm403_vm0, %v1457_v21 }
 0x689   :  { %5104 = vmatmul.mubr.msk.f32.vlgmr.msra.gmra.mxu1 %vm403_vm0, %v1455_v22 }
 0x6a4   :  { %v1122_v24 = vpop.xlane.xlu1 %1121 }
 0x6a5   :  { %v1124_v25 = vsub.f32 %v5077_v56, %v1122_v24 }
 0x6a6   :  { %v1119_v26 = vpop.xlane.xlu0 %1118 }
 0x6a7   :  { %v1123_v27 = vsub.f32 %v1108_v57, %v1119_v26  ;;  %v1127_v28 = vmul.f32 1.442695, %v1124_v25 }
 0x6a8   :  { %v1140_v15 = vpop.permute.xlu1 %1139 }
 0x6a9   :  { %v1125_v29 = vmul.f32 1.442695, %v1123_v27 }
 0x6aa   :  { %v1142_v19 = vpop.permute.xlu0 %1141 }
 0x6ab   :  { %5334 = vpow2.f32 %v1125_v29  ;;  %5078 = vmatprep.subr.mxu0 %v1142_v19 }
 0x6ac   :  { %5336 = vpow2.f32 %v1127_v28  ;;  %5079 = vmatpush3.msra.mxu0 %v1142_v19  ;;  %v1568_v30 = vpop.permute.xlu1 %1567 }
 0x6ad   :  { %5080 = vmatprep.subr.mxu0 %v1140_v15 }
 0x6ae   :  { %5081 = vmatpush3.msra.mxu0 %v1140_v15 }
 0x6af   :  { %5106 = vmatprep.subr.mxu0 %v1568_v30 }
 0x6b0   :  { %v1566_v35 = vpop.permute.xlu1 %1565 }
 0x6b4   :  { %v1670_v59 = vpop.permute.xlu1 %1669 }
 0x6b8   :  { %v5946_v31 = vpop.eup %5334  ;;  %v1668_v6 = vpop.permute.xlu1 %1667 }
 0x6b9   :  { %v5948_v32 = vpop.eup %5336  ;;  %5082 = vmatprep.mubr.msk.f32.mxu0 %vm403_vm0, %v5946_v31 }
 0x6ba   :  { %5083 = vmatmul.mubr.msk.f32.vlgmr.msra.gmra.mxu0 %vm403_vm0, %v5948_v32 }
 0x6bb   :  { %5107 = vmatpush3.msra.mxu0 %v1568_v30 }
 0x6bc   :  { %5108 = vmatprep.subr.mxu0 %v1566_v35  ;;  %v1779_v11 = vpop.permute.xlu1 %1778 }
 0x6bd   :  { %5109 = vmatpush3.msra.mxu0 %v1566_v35 }
 0x741   :  { %v5954_v45 = vpop.f32.mrf.mxu1 }
 0x743   :  { %v5956_v46 = vpop.f32.mrf.mxu1 }
 0x749   :  { %v5105_v47 = vpop.f32.mrf.mxu1 }
 0x74a   :  { %v1546_v48 = vsel %vm403_vm0, %v5105_v47, -inf }
 0x74b   :  { %1547 = vmax.xlane.f32.xlu0 %v1546_v48  ;;  %v1534_v49 = vpop.f32.mrf.mxu1 }
 0x74c   :  { %v1543_v50 = vsel %vm403_vm0, %v1534_v49, -inf }
 0x74f   :  { %1544 = vmax.xlane.f32.xlu0 %v1543_v50 }
 0x765   :  { %1671 = vrot.lane.b32.xlu0 %v5764_v38, %s5623_s14 }
 0x769   :  { %1665 = vrot.lane.b32.xlu0 %v5756_v23, %s5623_s14 }
 0x76d   :  { %1780 = vrot.lane.b32.xlu0 %v5772_v39, %s5623_s14 }
 0x77a   :  { %v5980_v14 = vpop.f32.mrf.mxu0 }
 0x77c   :  { %v5982_v16 = vpop.f32.mrf.mxu0 }
 0x7d4   :  { %v1548_v51 = vpop.xlane.xlu0 %1547 }
 0x7d5   :  { %v1550_v56 = vsub.f32 %v5105_v47, %v1548_v51 }
 0x7d7   :  { %v1553_v61 = vmul.f32 1.442695, %v1550_v56 }
 0x7d8   :  { %v1545_v57 = vpop.xlane.xlu0 %1544 }
 0x7d9   :  { %v1549_v58 = vsub.f32 %v1534_v49, %v1545_v57 }
 0x7db   :  { %v1551_v4 = vmul.f32 1.442695, %v1549_v58 }
 0x7dc   :  { %v1672_v5 = vpop.permute.xlu0 %1671 }
 0x7dd   :  { %5338 = vpow2.f32 %v1551_v4  ;;  %5113 = vmatprep.subr.msk.mxu0 %vm403_vm0, %v1672_v5 }
 0x7de   :  { %5340 = vpow2.f32 %v1553_v61 }
 0x7e0   :  { %v1666_v8 = vpop.permute.xlu0 %1665 }
 0x7e4   :  { %v1781_v10 = vpop.permute.xlu0 %1780 }
 0x7e5   :  { %5120 = vmatprep.subr.mxu1 %v1781_v10 }
 0x7e6   :  { %5121 = vmatpush3.msra.mxu1 %v1781_v10 }
 0x7e7   :  { %5122 = vmatprep.subr.mxu1 %v1779_v11 }
 0x7e8   :  { %5123 = vmatpush3.msra.mxu1 %v1779_v11 }
 0x7ea   :  { %v5967_v12 = vpop.eup %5338 }
 0x7eb   :  { %v5969_v13 = vpop.eup %5340  ;;  %5110 = vmatprep.mubr.msk.f32.mxu0 %vm403_vm0, %v5967_v12 }
 0x7ec   :  { %5111 = vmatmul.mubr.msk.f32.vlgmr.msra.gmra.mxu0 %vm403_vm0, %v5969_v13 }
 0x7ed   :  { %5114 = vmatpush3.xpose.msk.msra.mxu0 %vm403_vm0, %v1672_v5  ;;  %5117 = vmatprep.mubr.msk.f32.mxu0 %vm403_vm0, %v1666_v8 }
 0x7ee   :  { %5115 = vmatprep.subr.msk.mxu0 %vm403_vm0, %v1670_v59 }
 0x7f1   :  { %5116 = vmatpush3.xpose.msk.msra.mxu0 %vm403_vm0, %v1670_v59 }
 0x7f4   :  { %5118 = vmatmul.mubr.msk.f32.vlgmr.msra.gmra.mxu0 %vm403_vm0, %v1668_v6 }
 0x8ac   :  { %v5984_v20 = vpop.f32.mrf.mxu0 }
 0x8ae   :  { %v5986_v21 = vpop.f32.mrf.mxu0 }
 0x8b4   :  { %v5119_v22 = vpop.f32.mrf.mxu0 }
 0x8b5   :  { %v1759_v24 = vsel %vm403_vm0, %v5119_v22, -inf }
 0x8b6   :  { %1760 = vmax.xlane.f32.xlu1 %v1759_v24  ;;  %v1747_v25 = vpop.f32.mrf.mxu0 }
 0x8b7   :  { %v1756_v26 = vsel %vm403_vm0, %v1747_v25, -inf }
 0x8b8   :  { %1757 = vmax.xlane.f32.xlu0 %v1756_v26 }
 0x8c7   :  { %1882 = vrot.lane.b32.xlu1 %v5760_v36, %s5635_s3 }
 0x8cb   :  { %1880 = vrot.lane.b32.xlu1 %v5762_v37, %s5635_s3 }
 0x8ce   :  { %1884 = vrot.lane.b32.xlu0 %v5764_v38, %s5635_s3 }
 0x8d2   :  { %1878 = vrot.lane.b32.xlu0 %v5756_v23, %s5635_s3 }
 0x93f   :  { %v1761_v27 = vpop.xlane.xlu1 %1760 }
 0x940   :  { %v1763_v28 = vsub.f32 %v5119_v22, %v1761_v27 }
 0x941   :  { %v1758_v15 = vpop.xlane.xlu0 %1757 }
 0x942   :  { %v1762_v29 = vsub.f32 %v1747_v25, %v1758_v15  ;;  %v1766_v19 = vmul.f32 1.442695, %v1763_v28 }
 0x943   :  { %v1883_v23 = vpop.permute.xlu1 %1882 }
 0x944   :  { %v1764_v30 = vmul.f32 1.442695, %v1762_v29 }
 0x945   :  { %v1885_v35 = vpop.permute.xlu0 %1884 }
 0x946   :  { %5342 = vpow2.f32 %v1764_v30  ;;  %5127 = vmatprep.subr.msk.mxu1 %vm403_vm0, %v1885_v35 }
 0x947   :  { %5344 = vpow2.f32 %v1766_v19  ;;  %v1881_v47 = vpop.permute.xlu1 %1880 }
 0x949   :  { %v1879_v38 = vpop.permute.xlu0 %1878 }
 0x953   :  { %v5999_v36 = vpop.eup %5342 }
 0x954   :  { %v6001_v37 = vpop.eup %5344  ;;  %5124 = vmatprep.mubr.msk.f32.mxu1 %vm403_vm0, %v5999_v36 }
 0x955   :  { %5125 = vmatmul.mubr.msk.f32.vlgmr.msra.gmra.mxu1 %vm403_vm0, %v6001_v37 }
 0x956   :  { %5128 = vmatpush3.xpose.msk.msra.mxu1 %vm403_vm0, %v1885_v35  ;;  %5131 = vmatprep.mubr.msk.f32.mxu1 %vm403_vm0, %v1879_v38 }
 0x957   :  { %5129 = vmatprep.subr.msk.mxu1 %vm403_vm0, %v1883_v23 }
 0x95a   :  { %5130 = vmatpush3.xpose.msk.msra.mxu1 %vm403_vm0, %v1883_v23 }
 0x95b   :  { %5148 = vmatprep.subr.mxu1 %v5784_v41 }
 0x95d   :  { %5132 = vmatmul.mubr.msk.f32.vlgmr.msra.gmra.mxu1 %vm403_vm0, %v1881_v47 }
 0x95e   :  { %5149 = vmatpush3.msra.mxu1 %v5784_v41 }
 0x95f   :  { %5150 = vmatprep.subr.mxu1 %v5786_v42 }
 0x960   :  { %5151 = vmatpush3.msra.mxu1 %v5786_v42 }
 0xa15   :  { %v6016_v48 = vpop.f32.mrf.mxu1 }
 0xa17   :  { %v6018_v49 = vpop.f32.mrf.mxu1 }
 0xa1d   :  { %v5133_v50 = vpop.f32.mrf.mxu1 }
 0xa1e   :  { %v1972_v51 = vsel %vm403_vm0, %v5133_v50, -inf }
 0xa1f   :  { %1973 = vmax.xlane.f32.xlu1 %v1972_v51  ;;  %v1960_v56 = vpop.f32.mrf.mxu1 }
 0xa20   :  { %v1969_v57 = vsel %vm403_vm0, %v1960_v56, -inf }
 0xa21   :  { %1970 = vmax.xlane.f32.xlu0 %v1969_v57 }
 0xa30   :  { %1991 = vrot.lane.b32.xlu1 %v5779_v40, %s5635_s3 }
 0xa37   :  { %1993 = vrot.lane.b32.xlu0 %v5772_v39, %s5635_s3 }
 0xaa8   :  { %v1974_v58 = vpop.xlane.xlu1 %1973 }
 0xaa9   :  { %v1976_v59 = vsub.f32 %v5133_v50, %v1974_v58 }
 0xaaa   :  { %v1971_v61 = vpop.xlane.xlu0 %1970 }
 0xaab   :  { %v1975_v4 = vsub.f32 %v1960_v56, %v1971_v61  ;;  %v1979_v5 = vmul.f32 1.442695, %v1976_v59 }
 0xaac   :  { %v1992_v10 = vpop.permute.xlu1 %1991 }
 0xaad   :  { %v1977_v6 = vmul.f32 1.442695, %v1975_v4 }
 0xaae   :  { %v1994_v8 = vpop.permute.xlu0 %1993 }
 0xaaf   :  { %5346 = vpow2.f32 %v1977_v6  ;;  %5134 = vmatprep.subr.mxu0 %v1994_v8 }
 0xab0   :  { %5348 = vpow2.f32 %v1979_v5  ;;  %5135 = vmatpush3.msra.mxu0 %v1994_v8 }
 0xab1   :  { %5136 = vmatprep.subr.mxu0 %v1992_v10 }
 0xab2   :  { %5137 = vmatpush3.msra.mxu0 %v1992_v10 }
 0xab3   :  { %5141 = vmatprep.subr.msk.mxu0 %vm403_vm0, %v5832_v3 }
 0xabc   :  { %v6028_v40 = vpop.eup %5346 }
 0xabd   :  { %v6030_v39 = vpop.eup %5348  ;;  %5138 = vmatprep.mubr.msk.f32.mxu0 %vm403_vm0, %v6028_v40 }
 0xabe   :  { %5139 = vmatmul.mubr.msk.f32.vlgmr.msra.gmra.mxu0 %vm403_vm0, %v6030_v39 }
 0xabf   :  { %5142 = vmatpush3.xpose.msk.msra.mxu0 %vm403_vm0, %v5832_v3  ;;  %5145 = vmatprep.mubr.msk.f32.mxu0 %vm403_vm0, %v5826_v0 }
 0xac0   :  { %5143 = vmatprep.subr.msk.mxu0 %vm403_vm0, %v5828_v1 }
 0xac3   :  { %5144 = vmatpush3.xpose.msk.msra.mxu0 %vm403_vm0, %v5828_v1 }
 0xac6   :  { %5146 = vmatmul.mubr.msk.f32.vlgmr.msra.gmra.mxu0 %vm403_vm0, %v5830_v2 }
 0xb7e   :  { %v6046_v11 = vpop.f32.mrf.mxu0 }
 0xb80   :  { %v6048_v22 = vpop.f32.mrf.mxu0 }
 0xb86   :  { %v5147_v24 = vpop.f32.mrf.mxu0 }
 0xb87   :  { %v2181_v25 = vsel %vm403_vm0, %v5147_v24, -inf }
 0xb88   :  { %2182 = vmax.xlane.f32.xlu1 %v2181_v25  ;;  %v2169_v26 = vpop.f32.mrf.mxu0 }
 0xb89   :  { %v2178_v27 = vsel %vm403_vm0, %v2169_v26, -inf }
 0xb8a   :  { %2179 = vmax.xlane.f32.xlu0 %v2178_v27 }
 0xb99   :  { %2289 = vrot.lane.b32.xlu1 %v5828_v1, %s5630_s1 }
 0xb9d   :  { %2287 = vrot.lane.b32.xlu1 %v5830_v2, %s5630_s1 }
 0xba0   :  { %2291 = vrot.lane.b32.xlu0 %v5832_v3, %s5630_s1 }
 0xba1   :  { %2400 = vrot.lane.b32.xlu1 %v5786_v42, %s5630_s1 }
 0xba4   :  { %2285 = vrot.lane.b32.xlu0 %v5826_v0, %s5630_s1 }
 0xba8   :  { %2402 = vrot.lane.b32.xlu0 %v5784_v41, %s5630_s1 }
 0xc11   :  { %v2183_v28 = vpop.xlane.xlu1 %2182 }
 0xc12   :  { %v2185_v15 = vsub.f32 %v5147_v24, %v2183_v28 }
 0xc13   :  { %v2180_v29 = vpop.xlane.xlu0 %2179 }
 0xc14   :  { %v2184_v19 = vsub.f32 %v2169_v26, %v2180_v29  ;;  %v2188_v30 = vmul.f32 1.442695, %v2185_v15 }
 0xc15   :  { %v2290_v35 = vpop.permute.xlu1 %2289 }
 0xc16   :  { %v2186_v38 = vmul.f32 1.442695, %v2184_v19 }
 0xc17   :  { %v2292_v23 = vpop.permute.xlu0 %2291 }
 0xc18   :  { %5350 = vpow2.f32 %v2186_v38  ;;  %5155 = vmatprep.subr.msk.mxu1 %vm403_vm0, %v2292_v23 }
 0xc19   :  { %5352 = vpow2.f32 %v2188_v30  ;;  %v2288_v47 = vpop.permute.xlu1 %2287 }
 0xc1b   :  { %v2286_v50 = vpop.permute.xlu0 %2285 }
 0xc1d   :  { %v2401_v56 = vpop.permute.xlu1 %2400 }
 0xc1f   :  { %v2403_v51 = vpop.permute.xlu0 %2402 }
 0xc20   :  { %5162 = vmatprep.subr.mxu0 %v2403_v51 }
 0xc21   :  { %5163 = vmatpush3.msra.mxu0 %v2403_v51 }
 0xc22   :  { %5164 = vmatprep.subr.mxu0 %v2401_v56 }
 0xc23   :  { %5165 = vmatpush3.msra.mxu0 %v2401_v56 }
 0xc25   :  { %v6065_v57 = vpop.eup %5350 }
 0xc26   :  { %v6067_v58 = vpop.eup %5352  ;;  %5152 = vmatprep.mubr.msk.f32.mxu1 %vm403_vm0, %v6065_v57 }
 0xc27   :  { %5153 = vmatmul.mubr.msk.f32.vlgmr.msra.gmra.mxu1 %vm403_vm0, %v6067_v58 }
 0xc28   :  { %5156 = vmatpush3.xpose.msk.msra.mxu1 %vm403_vm0, %v2292_v23  ;;  %5159 = vmatprep.mubr.msk.f32.mxu1 %vm403_vm0, %v2286_v50 }
 0xc29   :  { %5157 = vmatprep.subr.msk.mxu1 %vm403_vm0, %v2290_v35 }
 0xc2c   :  { %5158 = vmatpush3.xpose.msk.msra.mxu1 %vm403_vm0, %v2290_v35 }
 0xc2f   :  { %5160 = vmatmul.mubr.msk.f32.vlgmr.msra.gmra.mxu1 %vm403_vm0, %v2288_v47 }
 0xce7   :  { %v6078_v59 = vpop.f32.mrf.mxu1 }
 0xce8   :  { %6672 = vst [vmem:[#allocation19_spill] sm:$0xff] %v6078_v59 }
 0xce9   :  { %v6080_v61 = vpop.f32.mrf.mxu1 }
 0xcea   :  { %6673 = vst [vmem:[#allocation20_spill] sm:$0xff] %v6080_v61 }
 0xcef   :  { %v5161_v4 = vpop.f32.mrf.mxu1 }
 0xcf0   :  { %v2379_v5 = vsel %vm403_vm0, %v5161_v4, -inf }
 0xcf1   :  { %2380 = vmax.xlane.f32.xlu1 %v2379_v5  ;;  %v2367_v6 = vpop.f32.mrf.mxu1 }
 0xcf2   :  { %v2376_v8 = vsel %vm403_vm0, %v2367_v6, -inf }
 0xcf3   :  { %2377 = vmax.xlane.f32.xlu0 %v2376_v8 }
 0xd02   :  { %2503 = vrot.lane.b32.xlu1 %v5828_v1, %s5631_s2 }
 0xd06   :  { %2501 = vrot.lane.b32.xlu1 %v5830_v2, %s5631_s2 }
 0xd09   :  { %2505 = vrot.lane.b32.xlu0 %v5832_v3, %s5631_s2 }
 0xd0a   :  { %2612 = vrot.lane.b32.xlu1 %v5786_v42, %s5631_s2 }
 0xd0d   :  { %2499 = vrot.lane.b32.xlu0 %v5826_v0, %s5631_s2 }
 0xd11   :  { %2614 = vrot.lane.b32.xlu0 %v5784_v41, %s5631_s2 }
 0xd7a   :  { %v2381_v10 = vpop.xlane.xlu1 %2380 }
 0xd7b   :  { %v2383_v24 = vsub.f32 %v5161_v4, %v2381_v10 }
 0xd7c   :  { %v2378_v25 = vpop.xlane.xlu0 %2377 }
 0xd7d   :  { %v2382_v26 = vsub.f32 %v2367_v6, %v2378_v25  ;;  %v2386_v27 = vmul.f32 1.442695, %v2383_v24 }
 0xd7e   :  { %v2504_v28 = vpop.permute.xlu1 %2503 }
 0xd7f   :  { %v2384_v15 = vmul.f32 1.442695, %v2382_v26 }
 0xd80   :  { %v2506_v29 = vpop.permute.xlu0 %2505 }
 0xd81   :  { %5354 = vpow2.f32 %v2384_v15  ;;  %5169 = vmatprep.subr.msk.mxu0 %vm403_vm0, %v2506_v29 }
 0xd82   :  { %5356 = vpow2.f32 %v2386_v27  ;;  %v2502_v19 = vpop.permute.xlu1 %2501 }
 0xd84   :  { %v2500_v30 = vpop.permute.xlu0 %2499 }
 0xd86   :  { %v2613_v38 = vpop.permute.xlu1 %2612 }
 0xd88   :  { %v2615_v35 = vpop.permute.xlu0 %2614 }
 0xd89   :  { %5176 = vmatprep.subr.mxu1 %v2615_v35 }
 0xd8a   :  { %5177 = vmatpush3.msra.mxu1 %v2615_v35 }
 0xd8b   :  { %5178 = vmatprep.subr.mxu1 %v2613_v38 }
 0xd8c   :  { %5179 = vmatpush3.msra.mxu1 %v2613_v38 }
 0xd8e   :  { %v6097_v23 = vpop.eup %5354 }
 0xd8f   :  { %v6099_v47 = vpop.eup %5356  ;;  %5166 = vmatprep.mubr.msk.f32.mxu0 %vm403_vm0, %v6097_v23 }
 0xd90   :  { %5167 = vmatmul.mubr.msk.f32.vlgmr.msra.gmra.mxu0 %vm403_vm0, %v6099_v47 }
 0xd91   :  { %5170 = vmatpush3.xpose.msk.msra.mxu0 %vm403_vm0, %v2506_v29  ;;  %5173 = vmatprep.mubr.msk.f32.mxu0 %vm403_vm0, %v2500_v30 }
 0xd92   :  { %5171 = vmatprep.subr.msk.mxu0 %vm403_vm0, %v2504_v28 }
 0xd95   :  { %5172 = vmatpush3.xpose.msk.msra.mxu0 %vm403_vm0, %v2504_v28 }
 0xd98   :  { %5174 = vmatmul.mubr.msk.f32.vlgmr.msra.gmra.mxu0 %vm403_vm0, %v2502_v19 }
 0xe50   :  { %v6110_v50 = vpop.f32.mrf.mxu0 }
 0xe52   :  { %v6112_v51 = vpop.f32.mrf.mxu0 }
 0xe58   :  { %v5175_v56 = vpop.f32.mrf.mxu0 }
 0xe59   :  { %v2593_v4 = vsel %vm403_vm0, %v5175_v56, -inf }
 0xe5a   :  { %2594 = vmax.xlane.f32.xlu1 %v2593_v4  ;;  %v2581_v5 = vpop.f32.mrf.mxu0 }
 0xe5b   :  { %v2590_v6 = vsel %vm403_vm0, %v2581_v5, -inf }
 0xe5c   :  { %2591 = vmax.xlane.f32.xlu0 %v2590_v6 }
 0xe6b   :  { %2715 = vrot.lane.b32.xlu1 %v5828_v1, %s5632_s16 }
 0xe6f   :  { %2713 = vrot.lane.b32.xlu1 %v5830_v2, %s5632_s16 }
 0xe72   :  { %2717 = vrot.lane.b32.xlu0 %v5832_v3, %s5632_s16 }
 0xe73   :  { %2824 = vrot.lane.b32.xlu1 %v5786_v42, %s5632_s16 }
 0xe76   :  { %2711 = vrot.lane.b32.xlu0 %v5826_v0, %s5632_s16 }
 0xe7a   :  { %2826 = vrot.lane.b32.xlu0 %v5784_v41, %s5632_s16 }
 0xee3   :  { %v2595_v8 = vpop.xlane.xlu1 %2594 }
 0xee4   :  { %v2597_v10 = vsub.f32 %v5175_v56, %v2595_v8 }
 0xee5   :  { %v2592_v24 = vpop.xlane.xlu0 %2591 }
 0xee6   :  { %v2596_v25 = vsub.f32 %v2581_v5, %v2592_v24  ;;  %v2600_v26 = vmul.f32 1.442695, %v2597_v10 }
 0xee7   :  { %v2716_v27 = vpop.permute.xlu1 %2715 }
 0xee8   :  { %v2598_v28 = vmul.f32 1.442695, %v2596_v25 }
 0xee9   :  { %v2718_v15 = vpop.permute.xlu0 %2717 }
 0xeea   :  { %5358 = vpow2.f32 %v2598_v28  ;;  %5183 = vmatprep.subr.msk.mxu1 %vm403_vm0, %v2718_v15 }
 0xeeb   :  { %5360 = vpow2.f32 %v2600_v26  ;;  %v2714_v29 = vpop.permute.xlu1 %2713 }
 0xeed   :  { %v2712_v19 = vpop.permute.xlu0 %2711 }
 0xeef   :  { %v2825_v35 = vpop.permute.xlu1 %2824 }
 0xef1   :  { %v2827_v30 = vpop.permute.xlu0 %2826 }
 0xef2   :  { %5190 = vmatprep.subr.mxu0 %v2827_v30 }
 0xef3   :  { %5191 = vmatpush3.msra.mxu0 %v2827_v30 }
 0xef4   :  { %5192 = vmatprep.subr.mxu0 %v2825_v35 }
 0xef5   :  { %5193 = vmatpush3.msra.mxu0 %v2825_v35 }
 0xef7   :  { %v6129_v38 = vpop.eup %5358 }
 0xef8   :  { %v6131_v56 = vpop.eup %5360  ;;  %5180 = vmatprep.mubr.msk.f32.mxu1 %vm403_vm0, %v6129_v38 }
 0xef9   :  { %5181 = vmatmul.mubr.msk.f32.vlgmr.msra.gmra.mxu1 %vm403_vm0, %v6131_v56 }
 0xefa   :  { %5184 = vmatpush3.xpose.msk.msra.mxu1 %vm403_vm0, %v2718_v15  ;;  %5187 = vmatprep.mubr.msk.f32.mxu1 %vm403_vm0, %v2712_v19 }
 0xefb   :  { %5185 = vmatprep.subr.msk.mxu1 %vm403_vm0, %v2716_v27 }
 0xefe   :  { %5186 = vmatpush3.xpose.msk.msra.mxu1 %vm403_vm0, %v2716_v27 }
 0xf01   :  { %5188 = vmatmul.mubr.msk.f32.vlgmr.msra.gmra.mxu1 %vm403_vm0, %v2714_v29 }
 0xfb9   :  { %v6142_v4 = vpop.f32.mrf.mxu1 }
 0xfbb   :  { %v6144_v5 = vpop.f32.mrf.mxu1 }
 0xfbc   :  { %6674 = vst [vmem:[#allocation21_spill] sm:$0xff] %v6144_v5 }
 0xfc1   :  { %v5189_v6 = vpop.f32.mrf.mxu1 }
 0xfc2   :  { %v2805_v8 = vsel %vm403_vm0, %v5189_v6, -inf }
 0xfc3   :  { %2806 = vmax.xlane.f32.xlu1 %v2805_v8  ;;  %v2793_v10 = vpop.f32.mrf.mxu1 }
 0xfc4   :  { %v2802_v24 = vsel %vm403_vm0, %v2793_v10, -inf }
 0xfc5   :  { %2803 = vmax.xlane.f32.xlu0 %v2802_v24 }
 0xfd4   :  { %2927 = vrot.lane.b32.xlu1 %v5828_v1, %s5633_s17 }
 0xfd8   :  { %2925 = vrot.lane.b32.xlu1 %v5830_v2, %s5633_s17 }
 0xfdb   :  { %2929 = vrot.lane.b32.xlu0 %v5832_v3, %s5633_s17 }
 0xfdc   :  { %3036 = vrot.lane.b32.xlu1 %v5786_v42, %s5633_s17 }
 0xfdf   :  { %2923 = vrot.lane.b32.xlu0 %v5826_v0, %s5633_s17 }
 0xfe3   :  { %3038 = vrot.lane.b32.xlu0 %v5784_v41, %s5633_s17 }
0x104c   :  { %v2807_v25 = vpop.xlane.xlu1 %2806 }
0x104d   :  { %v2809_v26 = vsub.f32 %v5189_v6, %v2807_v25 }
0x104e   :  { %v2804_v27 = vpop.xlane.xlu0 %2803 }
0x104f   :  { %v2808_v28 = vsub.f32 %v2793_v10, %v2804_v27  ;;  %v2812_v15 = vmul.f32 1.442695, %v2809_v26 }
0x1050   :  { %v2928_v29 = vpop.permute.xlu1 %2927 }
0x1051   :  { %v2810_v19 = vmul.f32 1.442695, %v2808_v28 }
0x1052   :  { %v2930_v30 = vpop.permute.xlu0 %2929 }
0x1053   :  { %5362 = vpow2.f32 %v2810_v19  ;;  %5197 = vmatprep.subr.msk.mxu0 %vm403_vm0, %v2930_v30 }
0x1054   :  { %5364 = vpow2.f32 %v2812_v15  ;;  %v2926_v35 = vpop.permute.xlu1 %2925 }
0x1056   :  { %v2924_v8 = vpop.permute.xlu0 %2923 }
0x1058   :  { %v3037_v62 = vpop.permute.xlu1 %3036 }
0x105a   :  { %v3039_v24 = vpop.permute.xlu0 %3038 }
0x105b   :  { %5204 = vmatprep.subr.mxu1 %v3039_v24 }
0x105c   :  { %5205 = vmatpush3.msra.mxu1 %v3039_v24 }
0x105d   :  { %5206 = vmatprep.subr.mxu1 %v3037_v62 }
0x105e   :  { %5207 = vmatpush3.msra.mxu1 %v3037_v62 }
0x1060   :  { %v6161_v61 = vpop.eup %5362 }
0x1061   :  { %v6163_v6 = vpop.eup %5364  ;;  %5194 = vmatprep.mubr.msk.f32.mxu0 %vm403_vm0, %v6161_v61 }
0x1062   :  { %5195 = vmatmul.mubr.msk.f32.vlgmr.msra.gmra.mxu0 %vm403_vm0, %v6163_v6 }
0x1063   :  { %5198 = vmatpush3.xpose.msk.msra.mxu0 %vm403_vm0, %v2930_v30  ;;  %5201 = vmatprep.mubr.msk.f32.mxu0 %vm403_vm0, %v2924_v8 }
0x1064   :  { %5199 = vmatprep.subr.msk.mxu0 %vm403_vm0, %v2928_v29 }
0x1067   :  { %5200 = vmatpush3.xpose.msk.msra.mxu0 %vm403_vm0, %v2928_v29 }
0x106a   :  { %5202 = vmatmul.mubr.msk.f32.vlgmr.msra.gmra.mxu0 %vm403_vm0, %v2926_v35 }
0x1122   :  { %v6174_v62 = vpop.f32.mrf.mxu0 }
0x1123   :  { %6675 = vst [vmem:[#allocation22_spill] sm:$0xff] %v6174_v62 }
0x1124   :  { %v6176_v10 = vpop.f32.mrf.mxu0 }
0x1125   :  { %6676 = vst [vmem:[#allocation23_spill] sm:$0xff] %v6176_v10 }
0x112a   :  { %v5203_v25 = vpop.f32.mrf.mxu0 }
0x112b   :  { %v3017_v26 = vsel %vm403_vm0, %v5203_v25, -inf }
0x112c   :  { %3018 = vmax.xlane.f32.xlu1 %v3017_v26  ;;  %v3005_v27 = vpop.f32.mrf.mxu0 }
0x112d   :  { %v3014_v28 = vsel %vm403_vm0, %v3005_v27, -inf }
0x112e   :  { %3015 = vmax.xlane.f32.xlu0 %v3014_v28 }
0x113d   :  { %3139 = vrot.lane.b32.xlu1 %v5828_v1, %s5634_s18 }
0x1141   :  { %3137 = vrot.lane.b32.xlu1 %v5830_v2, %s5634_s18 }
0x1144   :  { %3141 = vrot.lane.b32.xlu0 %v5832_v3, %s5634_s18 }
0x1145   :  { %3248 = vrot.lane.b32.xlu1 %v5786_v42, %s5634_s18 }
0x1148   :  { %3135 = vrot.lane.b32.xlu0 %v5826_v0, %s5634_s18 }
0x114c   :  { %3250 = vrot.lane.b32.xlu0 %v5784_v41, %s5634_s18 }
0x11b5   :  { %v3019_v15 = vpop.xlane.xlu1 %3018 }
0x11b6   :  { %v3021_v29 = vsub.f32 %v5203_v25, %v3019_v15 }
0x11b7   :  { %v3016_v19 = vpop.xlane.xlu0 %3015 }
0x11b8   :  { %v3020_v30 = vsub.f32 %v3005_v27, %v3016_v19  ;;  %v3024_v35 = vmul.f32 1.442695, %v3021_v29 }
0x11b9   :  { %v3140_v8 = vpop.permute.xlu1 %3139 }
0x11ba   :  { %v3022_v24 = vmul.f32 1.442695, %v3020_v30 }
0x11bb   :  { %v3142_v26 = vpop.permute.xlu0 %3141 }
0x11bc   :  { %5366 = vpow2.f32 %v3022_v24  ;;  %5211 = vmatprep.subr.msk.mxu1 %vm403_vm0, %v3142_v26 }
0x11bd   :  { %5368 = vpow2.f32 %v3024_v35  ;;  %v3138_v28 = vpop.permute.xlu1 %3137 }
0x11bf   :  { %v3136_v59 = vpop.permute.xlu0 %3135 }
0x11c1   :  { %v3249_v7 = vpop.permute.xlu1 %3248 }
0x11c3   :  { %v3251_v9 = vpop.permute.xlu0 %3250 }
0x11c4   :  { %5218 = vmatprep.subr.mxu0 %v3251_v9 }
0x11c5   :  { %5219 = vmatpush3.msra.mxu0 %v3251_v9 }
0x11c6   :  { %5220 = vmatprep.subr.mxu0 %v3249_v7 }
0x11c7   :  { %5221 = vmatpush3.msra.mxu0 %v3249_v7 }
0x11c9   :  { %v6193_v10 = vpop.eup %5366 }
0x11ca   :  { %v6195_v25 = vpop.eup %5368  ;;  %5208 = vmatprep.mubr.msk.f32.mxu1 %vm403_vm0, %v6193_v10 }
0x11cb   :  { %5209 = vmatmul.mubr.msk.f32.vlgmr.msra.gmra.mxu1 %vm403_vm0, %v6195_v25 }
0x11cc   :  { %5212 = vmatpush3.xpose.msk.msra.mxu1 %vm403_vm0, %v3142_v26  ;;  %5215 = vmatprep.mubr.msk.f32.mxu1 %vm403_vm0, %v3136_v59 }
0x11cd   :  { %5213 = vmatprep.subr.msk.mxu1 %vm403_vm0, %v3140_v8 }
0x11d0   :  { %5214 = vmatpush3.xpose.msk.msra.mxu1 %vm403_vm0, %v3140_v8 }
0x11d3   :  { %5216 = vmatmul.mubr.msk.f32.vlgmr.msra.gmra.mxu1 %vm403_vm0, %v3138_v28 }
0x128b   :  { %v6206_v7 = vpop.f32.mrf.mxu1 }
0x128c   :  { %6677 = vst [vmem:[#allocation24_spill] sm:$0xff] %v6206_v7 }
0x128d   :  { %v6208_v9 = vpop.f32.mrf.mxu1 }
0x128e   :  { %6678 = vst [vmem:[#allocation25_spill] sm:$0xff] %v6208_v9 }
0x1293   :  { %v5217_v27 = vpop.f32.mrf.mxu1 }
0x1294   :  { %v3229_v15 = vsel %vm403_vm0, %v5217_v27, -inf }
0x1295   :  { %3230 = vmax.xlane.f32.xlu1 %v3229_v15  ;;  %v3217_v29 = vpop.f32.mrf.mxu1 }
0x1296   :  { %v3226_v19 = vsel %vm403_vm0, %v3217_v29, -inf }
0x1297   :  { %3227 = vmax.xlane.f32.xlu0 %v3226_v19 }
0x12a6   :  { %3351 = vrot.lane.b32.xlu1 %v5828_v1, %s5623_s14 }
0x12aa   :  { %3349 = vrot.lane.b32.xlu1 %v5830_v2, %s5623_s14 }
0x12ad   :  { %3353 = vrot.lane.b32.xlu0 %v5832_v3, %s5623_s14 }
0x12ae   :  { %3460 = vrot.lane.b32.xlu1 %v5786_v42, %s5623_s14 }
0x12b1   :  { %3347 = vrot.lane.b32.xlu0 %v5826_v0, %s5623_s14 }
0x12b5   :  { %3462 = vrot.lane.b32.xlu0 %v5784_v41, %s5623_s14 }
0x131e   :  { %v3231_v59 = vpop.xlane.xlu1 %3230 }
0x131f   :  { %v3233_v30 = vsub.f32 %v5217_v27, %v3231_v59 }
0x1320   :  { %v3228_v35 = vpop.xlane.xlu0 %3227 }
0x1321   :  { %v3232_v8 = vsub.f32 %v3217_v29, %v3228_v35  ;;  %v3236_v24 = vmul.f32 1.442695, %v3233_v30 }
0x1322   :  { %v3352_v26 = vpop.permute.xlu1 %3351 }
0x1323   :  { %v3234_v28 = vmul.f32 1.442695, %v3232_v8 }
0x1324   :  { %v3354_v15 = vpop.permute.xlu0 %3353 }
0x1325   :  { %5370 = vpow2.f32 %v3234_v28  ;;  %5225 = vmatprep.subr.msk.mxu0 %vm403_vm0, %v3354_v15 }
0x1326   :  { %5372 = vpow2.f32 %v3236_v24  ;;  %v3350_v19 = vpop.permute.xlu1 %3349 }
0x1328   :  { %v3348_v9 = vpop.permute.xlu0 %3347 }
0x132a   :  { %v3461_v62 = vpop.permute.xlu1 %3460 }
0x132c   :  { %v3463_v7 = vpop.permute.xlu0 %3462 }
0x132d   :  { %5232 = vmatprep.subr.mxu1 %v3463_v7 }
0x132e   :  { %5233 = vmatpush3.msra.mxu1 %v3463_v7 }
0x132f   :  { %5234 = vmatprep.subr.mxu1 %v3461_v62 }
0x1330   :  { %5235 = vmatpush3.msra.mxu1 %v3461_v62 }
0x1332   :  { %v6225_v5 = vpop.eup %5370 }
0x1333   :  { %v6227_v27 = vpop.eup %5372  ;;  %5222 = vmatprep.mubr.msk.f32.mxu0 %vm403_vm0, %v6225_v5 }
0x1334   :  { %5223 = vmatmul.mubr.msk.f32.vlgmr.msra.gmra.mxu0 %vm403_vm0, %v6227_v27 }
0x1335   :  { %5226 = vmatpush3.xpose.msk.msra.mxu0 %vm403_vm0, %v3354_v15  ;;  %5229 = vmatprep.mubr.msk.f32.mxu0 %vm403_vm0, %v3348_v9 }
0x1336   :  { %5227 = vmatprep.subr.msk.mxu0 %vm403_vm0, %v3352_v26 }
0x1339   :  { %5228 = vmatpush3.xpose.msk.msra.mxu0 %vm403_vm0, %v3352_v26 }
0x133c   :  { %5230 = vmatmul.mubr.msk.f32.vlgmr.msra.gmra.mxu0 %vm403_vm0, %v3350_v19 }
0x13f4   :  { %v6238_v62 = vpop.f32.mrf.mxu0 }
0x13f6   :  { %v6240_v7 = vpop.f32.mrf.mxu0 }
0x13fc   :  { %v5231_v29 = vpop.f32.mrf.mxu0 }
0x13fd   :  { %v3441_v59 = vsel %vm403_vm0, %v5231_v29, -inf }
0x13fe   :  { %3442 = vmax.xlane.f32.xlu1 %v3441_v59  ;;  %v3429_v30 = vpop.f32.mrf.mxu0  ;;  %v6679_v59 = vmov 0.0  }
0x13ff   :  { %v3438_v35 = vsel %vm403_vm0, %v3429_v30, -inf }
0x1400   :  { %3439 = vmax.xlane.f32.xlu0 %v3438_v35 }
0x140f   :  { %3563 = vrot.lane.b32.xlu1 %v5828_v1, %s5635_s3 }
0x1413   :  { %3561 = vrot.lane.b32.xlu1 %v5830_v2, %s5635_s3 }
0x1416   :  { %3565 = vrot.lane.b32.xlu0 %v5832_v3, %s5635_s3 }
0x141a   :  { %3559 = vrot.lane.b32.xlu0 %v5826_v0, %s5635_s3 }
0x1487   :  { %v3443_v9 = vpop.xlane.xlu1 %3442 }
0x1488   :  { %v3445_v8 = vsub.f32 %v5231_v29, %v3443_v9 }
0x1489   :  { %v3440_v24 = vpop.xlane.xlu0 %3439 }
0x148a   :  { %v3444_v26 = vsub.f32 %v3429_v30, %v3440_v24  ;;  %v3448_v28 = vmul.f32 1.442695, %v3445_v8 }
0x148b   :  { %v3564_v0 = vpop.permute.xlu1 %3563 }
0x148c   :  { %v3446_v15 = vmul.f32 1.442695, %v3444_v26 }
0x148d   :  { %v3566_v19 = vpop.permute.xlu0 %3565 }
0x148e   :  { %5374 = vpow2.f32 %v3446_v15  ;;  %5239 = vmatprep.subr.msk.mxu1 %vm403_vm0, %v3566_v19  ;;  %v701_v15 = vsel %vm403_vm0, %v5870_v33, 0.0  ;;  %v1558_v33 = vsel %vm403_vm0, %v5969_v13, 0.0  ;;  %v1768_v13 = vsel %vm403_vm0, %v5999_v36, 0.0 }
0x148f   :  { %5376 = vpow2.f32 %v3448_v28  ;;  %v3562_v29 = vpop.permute.xlu1 %3561  ;;  %v704_v28 = vsel %vm403_vm0, %v5872_v34, 0.0  ;;  %v1129_v34 = vsel %vm403_vm0, %v5946_v31, 0.0  ;;  %v2391_v31 = vsel %vm403_vm0, %v6099_v47, 0.0 }
0x1490   :  { %v3029_v36 = vsel %vm403_vm0, %v6195_v25, 0.0  ;;  %v2602_v47 = vsel %vm403_vm0, %v6129_v38, 0.0  ;;  %v3238_v38 = vsel %vm403_vm0, %v6225_v5, 0.0 }
0x1491   :  { %v3560_v3 = vpop.permute.xlu0 %3559 }
0x149b   :  { %v6253_v1 = vpop.eup %5374 }
0x149c   :  { %v6255_v2 = vpop.eup %5376  ;;  %5236 = vmatprep.mubr.msk.f32.mxu1 %vm403_vm0, %v6253_v1  ;;  %v3450_v25 = vsel %vm403_vm0, %v6253_v1, 0.0 }
0x149d   :  { %5237 = vmatmul.mubr.msk.f32.vlgmr.msra.gmra.mxu1 %vm403_vm0, %v6255_v2 }
0x149e   :  { %5240 = vmatpush3.xpose.msk.msra.mxu1 %vm403_vm0, %v3566_v19  ;;  %5243 = vmatprep.mubr.msk.f32.mxu1 %vm403_vm0, %v3560_v3  ;;  %v1132_v19 = vsel %vm403_vm0, %v5948_v32, 0.0  ;;  %v916_v3 = vsel %vm403_vm0, %v5876_v43, 0.0  ;;  %v1771_v43 = vsel %vm403_vm0, %v6001_v37, 0.0  ;;  %v1555_v32 = vsel %vm403_vm0, %v5967_v12, 0.0 }
0x149f   :  { %5241 = vmatprep.subr.msk.mxu1 %vm403_vm0, %v3564_v0  ;;  %v1981_v37 = vsel %vm403_vm0, %v6028_v40, 0.0  ;;  %v2817_v12 = vsel %vm403_vm0, %v6163_v6, 0.0  ;;  %v3241_v40 = vsel %vm403_vm0, %v6227_v27, 0.0  ;;  %v3026_v6 = vsel %vm403_vm0, %v6193_v10, 0.0 }
0x14a2   :  { %5242 = vmatpush3.xpose.msk.msra.mxu1 %vm403_vm0, %v3564_v0 }
0x14a5   :  { %5244 = vmatmul.mubr.msk.f32.vlgmr.msra.gmra.mxu1 %vm403_vm0, %v3562_v29 }
0x14a6   :  { %4107 = vmatprep.mubr.f32.mxu1 %v6679_v59 }
0x155d   :  { %v6267_v30 = vpop.f32.mrf.mxu1 }
0x155f   :  { %v6269_v35 = vpop.f32.mrf.mxu1 }
0x1565   :  { %v6271_v9 = vpop.f32.mrf.mxu1 }
0x1566   :  { %v3653_v8 = vsel %vm403_vm0, %v6271_v9, -inf }
0x1567   :  { %3654 = vmax.xlane.f32.xlu1 %v3653_v8  ;;  %v6275_v24 = vpop.f32.mrf.mxu1 }
0x1568   :  { %v3650_v26 = vsel %vm403_vm0, %v6275_v24, -inf }
0x1569   :  { %3651 = vmax.xlane.f32.xlu0 %v3650_v26 }
0x1578   :  { %3672 = vrot.lane.b32.xlu1 %v5786_v42, %s5635_s3  ;;  %v1345_v42 = vsel %vm403_vm0, %v5935_v18, 0.0  ;;  %v1342_v18 = vsel %vm403_vm0, %v5933_v17, 0.0  ;;  %v2605_v17 = vsel %vm403_vm0, %v6131_v56, 0.0  ;;  %v2814_v56 = vsel %vm403_vm0, %v6161_v61, 0.0 }
0x157f   :  { %3674 = vrot.lane.b32.xlu0 %v5784_v41, %s5635_s3  ;;  %v919_v41 = vsel %vm403_vm0, %v5882_v44, 0.0  ;;  %v1984_v44 = vsel %vm403_vm0, %v6030_v39, 0.0  ;;  %v2388_v39 = vsel %vm403_vm0, %v6097_v23, 0.0  ;;  %v3453_v23 = vsel %vm403_vm0, %v6255_v2, 0.0 }
0x159c   :  { %705 = vadd.xlane.f32.xlu1 %v704_v28 }
0x159e   :  { %702 = vadd.xlane.f32.xlu0 %v701_v15  ;;  %v503_v15 = vsel %vm403_vm0, %v5812_v60, 0.0  ;;  %v3789_v60 = vld [vmem:[#allocation8 + $0x70] sm:$0xff] }
0x15a0   :  { %1133 = vadd.xlane.f32.xlu1 %v1132_v19  ;;  %v2193_v19 = vsel %vm403_vm0, %v6067_v58, 0.0 }
0x15a2   :  { %917 = vadd.xlane.f32.xlu0 %v916_v3  ;;  %v2190_v3 = vsel %vm403_vm0, %v6065_v57, 0.0 }
0x15a4   :  { %1346 = vadd.xlane.f32.xlu1 %v1345_v42 }
0x15a6   :  { %920 = vadd.xlane.f32.xlu0 %v919_v41 }
0x15a8   :  { %1559 = vadd.xlane.f32.xlu1 %v1558_v33 }
0x15aa   :  { %1130 = vadd.xlane.f32.xlu0 %v1129_v34 }
0x15ac   :  { %1772 = vadd.xlane.f32.xlu1 %v1771_v43 }
0x15ae   :  { %1343 = vadd.xlane.f32.xlu0 %v1342_v18  ;;  %v3790_v18 = vld [vmem:[#allocation8 + $0x78] sm:$0xff] }
0x15b0   :  { %1985 = vadd.xlane.f32.xlu1 %v1984_v44 }
0x15b2   :  { %1556 = vadd.xlane.f32.xlu0 %v1555_v32  ;;  %v3788_v32 = vld [vmem:[#allocation8 + $0x68] sm:$0xff] }
0x15b4   :  { %2392 = vadd.xlane.f32.xlu1 %v2391_v31  ;;  %v3787_v31 = vld [vmem:[#allocation8 + $0x60] sm:$0xff] }
0x15b6   :  { %1769 = vadd.xlane.f32.xlu0 %v1768_v13 }
0x15b8   :  { %2606 = vadd.xlane.f32.xlu1 %v2605_v17 }
0x15ba   :  { %1982 = vadd.xlane.f32.xlu0 %v1981_v37 }
0x15bc   :  { %2818 = vadd.xlane.f32.xlu1 %v2817_v12 }
0x15be   :  { %2389 = vadd.xlane.f32.xlu0 %v2388_v39 }
0x15c0   :  { %3030 = vadd.xlane.f32.xlu1 %v3029_v36  ;;  %v3786_v36 = vld [vmem:[#allocation8 + $0x58] sm:$0xff] }
0x15c2   :  { %2603 = vadd.xlane.f32.xlu0 %v2602_v47  ;;  %v3785_v47 = vld [vmem:[#allocation8 + $0x50] sm:$0xff] }
0x15c4   :  { %3242 = vadd.xlane.f32.xlu1 %v3241_v40 }
0x15c6   :  { %2815 = vadd.xlane.f32.xlu0 %v2814_v56 }
0x15c8   :  { %3454 = vadd.xlane.f32.xlu1 %v3453_v23 }
0x15ca   :  { %3027 = vadd.xlane.f32.xlu0 %v3026_v6  ;;  %v3784_v6 = vld [vmem:[#allocation8 + $0x48] sm:$0xff] }
0x15ce   :  { %3239 = vadd.xlane.f32.xlu0 %v3238_v38 }
0x15d2   :  { %3451 = vadd.xlane.f32.xlu0 %v3450_v25 }
0x15f0   :  { %v3655_v27 = vpop.xlane.xlu1 %3654 }
0x15f1   :  { %v3657_v61 = vsub.f32 %v6271_v9, %v3655_v27 }
0x15f2   :  { %v3652_v0 = vpop.xlane.xlu0 %3651 }
0x15f3   :  { %v3660_v29 = vmul.f32 1.442695, %v3657_v61  ;;  %v3656_v2 = vsub.f32 %v6275_v24, %v3652_v0  ;;  %v506_v24 = vsel %vm403_vm0, %v5814_v63, 0.0 }
0x15f4   :  { %v3673_v10 = vpop.permute.xlu1 %3672 }
0x15f5   :  { %5378 = vpow2.f32 %v3660_v29  ;;  %v3658_v8 = vmul.f32 1.442695, %v3656_v2  ;;  %v3781_v29 = vld [vmem:[#allocation8 + $0x30] sm:$0xff] }
0x15f6   :  { %v3675_v26 = vpop.permute.xlu0 %3674 }
0x15f7   :  { %5380 = vpow2.f32 %v3658_v8  ;;  %5246 = vmatprep.subr.mxu0 %v3675_v26 }
0x15f8   :  { %5247 = vmatpush3.msra.mxu0 %v3675_v26 }
0x15f9   :  { %5248 = vmatprep.subr.mxu0 %v3673_v10 }
0x15fa   :  { %5249 = vmatpush3.msra.mxu0 %v3673_v10 }
0x15fb   :  { %5253 = vmatprep.subr.mxu0 %v3790_v18 }
0x1602   :  { %v5379_v5 = vpop.eup %5378 }
0x1603   :  { %v3665_v1 = vsel %vm403_vm0, %v5379_v5, 0.0 }
0x1604   :  { %v5381_v28 = vpop.eup %5380  ;;  %3666 = vadd.xlane.f32.xlu1 %v3665_v1  ;;  %v3780_v1 = vld [vmem:[#allocation8 + $0x28] sm:$0xff] }
0x1605   :  { %5250 = vmatprep.mubr.msk.f32.mxu0 %vm403_vm0, %v5381_v28  ;;  %v3662_v9 = vsel %vm403_vm0, %v5381_v28, 0.0 }
0x1606   :  { %3663 = vadd.xlane.f32.xlu0 %v3662_v9  ;;  %5251 = vmatmul.mubr.msk.f32.vlgmr.msra.gmra.mxu0 %vm403_vm0, %v5379_v5 }
0x1607   :  { %5254 = vmatpush3.msra.mxu0 %v3790_v18 }
0x1608   :  { %507 = vadd.xlane.f32.xlu1 %v506_v24  ;;  %5255 = vmatprep.subr.mxu0 %v3789_v60  ;;  %v3779_v24 = vld [vmem:[#allocation8 + $0x20] sm:$0xff] }
0x1609   :  { %5256 = vmatpush3.msra.mxu0 %v3789_v60 }
0x160a   :  { %504 = vadd.xlane.f32.xlu0 %v503_v15  ;;  %5257 = vmatprep.subr.mxu0 %v3788_v32 }
0x160b   :  { %5258 = vmatpush3.msra.mxu0 %v3788_v32 }
0x160c   :  { %2194 = vadd.xlane.f32.xlu1 %v2193_v19  ;;  %5259 = vmatprep.subr.mxu0 %v3787_v31 }
0x160d   :  { %5260 = vmatpush3.msra.mxu0 %v3787_v31 }
0x160e   :  { %2191 = vadd.xlane.f32.xlu0 %v2190_v3  ;;  %5261 = vmatprep.subr.mxu0 %v3786_v36  ;;  %v3778_v3 = vld [vmem:[#allocation8 + $0x18] sm:$0xff] }
0x160f   :  { %5262 = vmatpush3.msra.mxu0 %v3786_v36 }
0x1610   :  { %5263 = vmatprep.subr.mxu0 %v3785_v47 }
0x1611   :  { %5264 = vmatpush3.msra.mxu0 %v3785_v47 }
0x1612   :  { %5265 = vmatprep.subr.mxu0 %v3784_v6 }
0x1613   :  { %5266 = vmatpush3.msra.mxu0 %v3784_v6 }
0x1625   :  { %v706_v42 = vpop.xlane.xlu1 %705 }
0x1626   :  { %5382 = vrcp.f32 %v706_v42 }
0x1627   :  { %v703_v41 = vpop.xlane.xlu0 %702 }
0x1628   :  { %5384 = vrcp.f32 %v703_v41 }
0x1629   :  { %v1134_v33 = vpop.xlane.xlu1 %1133 }
0x162b   :  { %v918_v34 = vpop.xlane.xlu0 %917 }
0x162c   :  { %5386 = vrcp.f32 %v918_v34 }
0x162d   :  { %v1347_v63 = vpop.xlane.xlu1 %1346 }
0x162f   :  { %v921_v43 = vpop.xlane.xlu0 %920 }
0x1630   :  { %5388 = vrcp.f32 %v921_v43  ;;  %v3776_v43 = vld [vmem:[#allocation8 + $0x8] sm:$0xff] }
0x1631   :  { %v1560_v44 = vpop.xlane.xlu1 %1559  ;;  %5390 = vrcp.f32 %v1134_v33 }
0x1633   :  { %v5383_v58 = vpop.eup %5382  ;;  %v1131_v57 = vpop.xlane.xlu0 %1130 }
0x1634   :  { %5392 = vrcp.f32 %v1131_v57  ;;  %v801_v13 = vmul.f32 %v5383_v58, %v5898_v52  ;;  %v3775_v58 = vld [vmem:[#allocation8] sm:$0xff] }
0x1635   :  { %v5385_v17 = vpop.eup %5384  ;;  %v1773_v37 = vpop.xlane.xlu1 %1772  ;;  %5394 = vrcp.f32 %v1347_v63 }
0x1636   :  { %806 = vrot.lane.b32.xlu1 %v801_v13, %s5635_s3  ;;  %v800_v12 = vmul.f32 %v5385_v17, %v5900_v53  ;;  %v3783_v53 = vld [vmem:[#allocation8 + $0x40] sm:$0xff] }
0x1637   :  { %v1344_v39 = vpop.xlane.xlu0 %1343  ;;  %5267 = vmatprep.subr.mxu0 %v3783_v53 }
0x1638   :  { %5396 = vrcp.f32 %v1344_v39  ;;  %804 = vrot.lane.b32.xlu0 %v800_v12, %s5635_s3  ;;  %5268 = vmatpush3.msra.mxu0 %v3783_v53  ;;  %v6682_v53 = vld [vmem:[#allocation23_spill] sm:$0xff] }
0x1639   :  { %v5387_v40 = vpop.eup %5386  ;;  %v1986_v52 = vpop.xlane.xlu1 %1985  ;;  %5398 = vrcp.f32 %v1560_v44 }
0x163a   :  { %v1013_v56 = vmul.f32 %v5387_v40, %v5904_v55  ;;  %v3782_v55 = vld [vmem:[#allocation8 + $0x38] sm:$0xff]  ;;  %v6680_v40 = vld [vmem:[#allocation21_spill] sm:$0xff] }
0x163b   :  { %v1557_v23 = vpop.xlane.xlu0 %1556  ;;  %5269 = vmatprep.subr.mxu0 %v3782_v55 }
0x163c   :  { %5400 = vrcp.f32 %v1557_v23  ;;  %1017 = vrot.lane.b32.xlu1 %v1013_v56, %s5623_s14  ;;  %5270 = vmatpush3.msra.mxu0 %v3782_v55 }
0x163d   :  { %v5389_v38 = vpop.eup %5388  ;;  %v2393_v25 = vpop.xlane.xlu1 %2392  ;;  %5402 = vrcp.f32 %v1773_v37  ;;  %5271 = vmatprep.subr.mxu0 %v3781_v29 }
0x163e   :  { %v1014_v27 = vmul.f32 %v5389_v38, %v5902_v54  ;;  %v5391_v61 = vpop.eup %5390  ;;  %5272 = vmatpush3.msra.mxu0 %v3781_v29 }
0x163f   :  { %v1770_v0 = vpop.xlane.xlu0 %1769  ;;  %v1227_v26 = vmul.f32 %v5391_v61, %v5980_v14  ;;  %5273 = vmatprep.subr.mxu0 %v3780_v1 }
0x1640   :  { %5404 = vrcp.f32 %v1770_v0  ;;  %1019 = vrot.lane.b32.xlu1 %v1014_v27, %s5623_s14  ;;  %5274 = vmatpush3.msra.mxu0 %v3780_v1  ;;  %v6683_v27 = vld [vmem:[#allocation24_spill] sm:$0xff]  ;;  %v6684_v0 = vld [vmem:[#allocation25_spill] sm:$0xff] }
0x1641   :  { %v5393_v2 = vpop.eup %5392  ;;  %v2607_v8 = vpop.xlane.xlu1 %2606  ;;  %5406 = vrcp.f32 %v1986_v52  ;;  %5275 = vmatprep.subr.mxu0 %v3779_v24 }
0x1642   :  { %v1226_v10 = vmul.f32 %v5393_v2, %v5982_v16  ;;  %v5395_v54 = vpop.eup %5394  ;;  %5276 = vmatpush3.msra.mxu0 %v3779_v24 }
0x1643   :  { %v1983_v5 = vpop.xlane.xlu0 %1982  ;;  %v1440_v15 = vmul.f32 %v5395_v54, %v5954_v45  ;;  %5277 = vmatprep.subr.mxu0 %v3778_v3  ;;  %v3777_v45 = vld [vmem:[#allocation8 + $0x10] sm:$0xff] }
0x1644   :  { %5408 = vrcp.f32 %v1983_v5  ;;  %1232 = vrot.lane.b32.xlu1 %v1227_v26, %s5634_s18  ;;  %1230 = vrot.lane.b32.xlu0 %v1226_v10, %s5634_s18 }
0x1645   :  { %v5397_v28 = vpop.eup %5396  ;;  %v2819_v9 = vpop.xlane.xlu1 %2818  ;;  %5410 = vrcp.f32 %v2393_v25  ;;  %5278 = vmatpush3.msra.mxu0 %v3778_v3 }
0x1646   :  { %v1439_v14 = vmul.f32 %v5397_v28, %v5956_v46  ;;  %v5399_v16 = vpop.eup %5398  ;;  %5279 = vmatprep.subr.mxu0 %v3777_v45 }
0x1647   :  { %v2390_v19 = vpop.xlane.xlu0 %2389  ;;  %v1653_v41 = vmul.f32 %v5399_v16, %v5984_v20  ;;  %5280 = vmatpush3.msra.mxu0 %v3777_v45  ;;  %v6685_v16 = vld [vmem:[#allocation17_spill] sm:$0xff] }
0x1648   :  { %5412 = vrcp.f32 %v2390_v19  ;;  %1445 = vrot.lane.b32.xlu1 %v1440_v15, %s5633_s17  ;;  %1443 = vrot.lane.b32.xlu0 %v1439_v14, %s5633_s17 }
0x1649   :  { %v5401_v42 = vpop.eup %5400  ;;  %5414 = vrcp.f32 %v2607_v8  ;;  %v3031_v34 = vpop.xlane.xlu1 %3030  ;;  %5281 = vmatprep.subr.mxu0 %v3776_v43 }
0x164a   :  { %v1652_v33 = vmul.f32 %v5401_v42, %v5986_v21  ;;  %v5403_v46 = vpop.eup %5402  ;;  %5282 = vmatpush3.msra.mxu0 %v3776_v43 }
0x164b   :  { %v2604_v63 = vpop.xlane.xlu0 %2603  ;;  %v1866_v60 = vmul.f32 %v5403_v46, %v6016_v48  ;;  %5283 = vmatprep.subr.mxu0 %v3775_v58  ;;  %v6688_v46 = vld [vmem:[#allocation20_spill] sm:$0xff] }
0x164c   :  { %5416 = vrcp.f32 %v2604_v63  ;;  %1658 = vrot.lane.b32.xlu1 %v1653_v41, %s5632_s16  ;;  %1656 = vrot.lane.b32.xlu0 %v1652_v33, %s5632_s16  ;;  %v6687_v41 = vld [vmem:[#allocation19_spill] sm:$0xff] }
0x164d   :  { %v5405_v18 = vpop.eup %5404  ;;  %5418 = vrcp.f32 %v2819_v9  ;;  %v3243_v32 = vpop.xlane.xlu1 %3242  ;;  %5284 = vmatpush3.msra.mxu0 %v3775_v58 }
0x164e   :  { %v1865_v20 = vmul.f32 %v5405_v18, %v6018_v49  ;;  %v5407_v21 = vpop.eup %5406 }
0x164f   :  { %v2816_v44 = vpop.xlane.xlu0 %2815  ;;  %v2079_v31 = vmul.f32 %v5407_v21, %v6046_v11 }
0x1650   :  { %5420 = vrcp.f32 %v2816_v44  ;;  %1871 = vrot.lane.b32.xlu1 %v1866_v60, %s5631_s2  ;;  %1869 = vrot.lane.b32.xlu0 %v1865_v20, %s5631_s2 }
0x1651   :  { %v5409_v57 = vpop.eup %5408  ;;  %5422 = vrcp.f32 %v3031_v34  ;;  %v3455_v36 = vpop.xlane.xlu1 %3454 }
0x1652   :  { %v2078_v48 = vmul.f32 %v5409_v57, %v6048_v22  ;;  %v5411_v49 = vpop.eup %5410 }
0x1653   :  { %v3028_v13 = vpop.xlane.xlu0 %3027  ;;  %v2488_v37 = vmul.f32 %v5411_v49, %v6110_v50 }
0x1654   :  { %5424 = vrcp.f32 %v3028_v13  ;;  %2084 = vrot.lane.b32.xlu1 %v2079_v31, %s5630_s1  ;;  %2082 = vrot.lane.b32.xlu0 %v2078_v48, %s5630_s1 }
0x1655   :  { %v5413_v17 = vpop.eup %5412  ;;  %5426 = vrcp.f32 %v3243_v32 }
0x1656   :  { %v2487_v12 = vmul.f32 %v5413_v17, %v6112_v51  ;;  %v5415_v39 = vpop.eup %5414  ;;  %v6681_v51 = vld [vmem:[#allocation22_spill] sm:$0xff] }
0x1657   :  { %v3240_v11 = vpop.xlane.xlu0 %3239  ;;  %v2700_v47 = vmul.f32 %v5415_v39, %v6142_v4 }
0x1658   :  { %5428 = vrcp.f32 %v3240_v11  ;;  %2493 = vrot.lane.b32.xlu1 %v2488_v37, %s5635_s3  ;;  %2491 = vrot.lane.b32.xlu0 %v2487_v12, %s5635_s3 }
0x1659   :  { %v5417_v22 = vpop.eup %5416  ;;  %5430 = vrcp.f32 %v3455_v36 }
0x165a   :  { %v2699_v52 = vmul.f32 %v5417_v22, %v6680_v40  ;;  %v5419_v56 = vpop.eup %5418 }
0x165b   :  { %v3452_v23 = vpop.xlane.xlu0 %3451  ;;  %v2912_v6 = vmul.f32 %v5419_v56, %v6681_v51 }
0x165c   :  { %5432 = vrcp.f32 %v3452_v23  ;;  %2705 = vrot.lane.b32.xlu1 %v2700_v47, %s5623_s14  ;;  %2703 = vrot.lane.b32.xlu0 %v2699_v52, %s5623_s14 }
0x165d   :  { %v5421_v50 = vpop.eup %5420 }
0x165e   :  { %v2911_v38 = vmul.f32 %v5421_v50, %v6682_v53  ;;  %v5423_v25 = vpop.eup %5422 }
0x165f   :  { %v3124_v61 = vmul.f32 %v5423_v25, %v6683_v27 }
0x1660   :  { %2917 = vrot.lane.b32.xlu1 %v2912_v6, %s5634_s18  ;;  %2915 = vrot.lane.b32.xlu0 %v2911_v38, %s5634_s18 }
0x1661   :  { %v5425_v4 = vpop.eup %5424 }
0x1662   :  { %v3123_v55 = vmul.f32 %v5425_v4, %v6684_v0  ;;  %v5427_v29 = vpop.eup %5426 }
0x1663   :  { %v3336_v8 = vmul.f32 %v5427_v29, %v6238_v62 }
0x1664   :  { %3129 = vrot.lane.b32.xlu1 %v3124_v61, %s5633_s17  ;;  %3127 = vrot.lane.b32.xlu0 %v3123_v55, %s5633_s17 }
0x1665   :  { %v5429_v2 = vpop.eup %5428 }
0x1666   :  { %v3335_v26 = vmul.f32 %v5429_v2, %v6240_v7  ;;  %v5431_v10 = vpop.eup %5430 }
0x1667   :  { %v3548_v5 = vmul.f32 %v5431_v10, %v6267_v30 }
0x1668   :  { %3341 = vrot.lane.b32.xlu1 %v3336_v8, %s5632_s16  ;;  %3339 = vrot.lane.b32.xlu0 %v3335_v26, %s5632_s16  ;;  %v4731_v8 = vld [vmem:[%s6660_s5] ss:$0 sm:$0xff]  ;;  %v5486_v26 = vld [vmem:[#allocation3 + $0x8] sm:$0xff] }
0x1669   :  { %v5433_v54 = vpop.eup %5432 }
0x166a   :  { %v3547_v1 = vmul.f32 %v5433_v54, %v6269_v35  ;;  %v6686_v35 = vld [vmem:[#allocation18_spill] sm:$0xff] }
0x166c   :  { %3553 = vrot.lane.b32.xlu1 %v3548_v5, %s5631_s2  ;;  %3551 = vrot.lane.b32.xlu0 %v3547_v1, %s5631_s2  ;;  %v5487_v1 = vld [vmem:[#allocation3] sm:$0xff] }
0x168d   :  { %v3667_v28 = vpop.xlane.xlu1 %3666 }
0x168f   :  { %v3664_v9 = vpop.xlane.xlu0 %3663 }
0x1691   :  { %v508_v24 = vpop.xlane.xlu1 %507 }
0x1692   :  { %5434 = vrcp.f32 %v508_v24 }
0x1693   :  { %v505_v62 = vpop.xlane.xlu0 %504 }
0x1694   :  { %5436 = vrcp.f32 %v505_v62 }
0x1695   :  { %v2195_v7 = vpop.xlane.xlu1 %2194 }
0x1696   :  { %5438 = vrcp.f32 %v2195_v7  ;;  %v5488_v7 = vld [vmem:[#allocation3 + $0x10] sm:$0xff] }
0x1697   :  { %v2192_v15 = vpop.xlane.xlu0 %2191 }
0x1698   :  { %5440 = vrcp.f32 %v2192_v15 }
0x1699   :  { %5442 = vrcp.f32 %v3667_v28 }
0x169a   :  { %5444 = vrcp.f32 %v3664_v9 }
0x169f   :  { %v5435_v14 = vpop.eup %5434 }
0x16a0   :  { %v595_v19 = vmul.f32 %v5435_v14, %v6685_v16  ;;  %v5489_v14 = vld [vmem:[#allocation3 + $0x18] sm:$0xff] }
0x16a1   :  { %v5437_v30 = vpop.eup %5436 }
0x16a2   :  { %597 = vst.msk [vmem:[#allocation2 + $0x8] sm:$0xff] %vm403_vm0, %v595_v19  ;;  %v594_v3 = vmul.f32 %v5437_v30, %v6686_v35 }
0x16a3   :  { %v5439_v42 = vpop.eup %5438 }
0x16a4   :  { %596 = vst.msk [vmem:[#allocation2] sm:$0xff] %vm403_vm0, %v594_v3  ;;  %v2282_v33 = vmul.f32 %v5439_v42, %v6687_v41 }
0x16a5   :  { %v5441_v45 = vpop.eup %5440 }
0x16a6   :  { %2284 = vst.msk [vmem:[#allocation2 + $0x18] sm:$0xff] %vm403_vm0, %v2282_v33  ;;  %v2281_v34 = vmul.f32 %v5441_v45, %v6688_v46  ;;  %v5443_v49 = vpop.eup %5442  ;;  %v4018_v45 = vld [vmem:[#allocation9 + $0x1e8] sm:$0xff]  ;;  %v4020_v46 = vld [vmem:[#allocation9 + $0x1f8] sm:$0xff] }
0x16a7   :  { %v5445_v39 = vpop.eup %5444  ;;  %4043 = vmatprep.subr.mxu1 %v4018_v45  ;;  %4132 = vmatprep.subr.mxu0 %v4020_v46  ;;  %v3967_v45 = vld [vmem:[#allocation9 + $0x50] sm:$0xff]  ;;  %v3962_v46 = vld [vmem:[#allocation9 + $0x28] sm:$0xff] }
0x16a8   :  { %v807_v63 = vpop.permute.xlu1 %806  ;;  %2283 = vst.msk [vmem:[#allocation2 + $0x10] sm:$0xff] %vm403_vm0, %v2281_v34  ;;  %v4017_v34 = vld [vmem:[#allocation9 + $0x1e0] sm:$0xff] }
0x16a9   :  { %812 = vst.msk [vmem:[#allocation2 + $0x8] sm:$0xff] %vm810_vm1, %v807_v63  ;;  %v4019_v63 = vld [vmem:[#allocation9 + $0x1f0] sm:$0xff]  ;;  %4044 = vmatpush1.msra.mxu1 %v4017_v34  ;;  %v3964_v34 = vld [vmem:[#allocation9 + $0x38] sm:$0xff] }
0x16aa   :  { %v805_v43 = vpop.permute.xlu0 %804 }
0x16ab   :  { %811 = vst.msk [vmem:[#allocation2] sm:$0xff] %vm810_vm1, %v805_v43  ;;  %v4014_v43 = vld [vmem:[#allocation9 + $0x1c8] sm:$0xff] }
0x16ac   :  { %4045 = vmatprep.subr.mxu1 %v4014_v43  ;;  %v3963_v43 = vld [vmem:[#allocation9 + $0x30] sm:$0xff] }
0x16ae   :  { %v1018_v18 = vpop.permute.xlu1 %1017 }
0x16af   :  { %1024 = vst.msk [vmem:[#allocation2] sm:$0xff] %vm1023_vm2, %v1018_v18  ;;  %v4016_v18 = vld [vmem:[#allocation9 + $0x1d8] sm:$0xff] }
0x16b2   :  { %v1020_v60 = vpop.permute.xlu1 %1019 }
0x16b3   :  { %1025 = vst.msk [vmem:[#allocation2 + $0x8] sm:$0xff] %vm1023_vm2, %v1020_v60 }
0x16b6   :  { %v1233_v20 = vpop.permute.xlu1 %1232  ;;  %v1231_v21 = vpop.permute.xlu0 %1230 }
0x16b7   :  { %1238 = vst.msk [vmem:[#allocation2 + $0x8] sm:$0xff] %vm1236_vm3, %v1233_v20  ;;  %1237 = vst.msk [vmem:[#allocation2] sm:$0xff] %vm1236_vm3, %v1231_v21  ;;  %v4013_v21 = vld [vmem:[#allocation9 + $0x1c0] sm:$0xff] }
0x16b8   :  { %4046 = vmatpush1.msra.mxu1 %v4013_v21  ;;  %v3957_v21 = vld [vmem:[#allocation9] sm:$0xff] }
0x16ba   :  { %v1446_v44 = vpop.permute.xlu1 %1445  ;;  %v1444_v58 = vpop.permute.xlu0 %1443 }
0x16bb   :  { %1451 = vst.msk [vmem:[#allocation2 + $0x8] sm:$0xff] %vm1449_vm4, %v1446_v44  ;;  %1450 = vst.msk [vmem:[#allocation2] sm:$0xff] %vm1449_vm4, %v1444_v58  ;;  %v4015_v44 = vld [vmem:[#allocation9 + $0x1d0] sm:$0xff]  ;;  %v4010_v58 = vld [vmem:[#allocation9 + $0x1a8] sm:$0xff] }
0x16bc   :  { %4047 = vmatprep.subr.mxu1 %v4010_v58 }
0x16be   :  { %v1659_v57 = vpop.permute.xlu1 %1658  ;;  %v1657_v32 = vpop.permute.xlu0 %1656 }
0x16bf   :  { %1664 = vst.msk [vmem:[#allocation2 + $0x8] sm:$0xff] %vm1662_vm5, %v1659_v57  ;;  %1663 = vst.msk [vmem:[#allocation2] sm:$0xff] %vm1662_vm5, %v1657_v32  ;;  %v4012_v57 = vld [vmem:[#allocation9 + $0x1b8] sm:$0xff] }
0x16c2   :  { %v1872_v31 = vpop.permute.xlu1 %1871  ;;  %v1870_v48 = vpop.permute.xlu0 %1869 }
0x16c3   :  { %1877 = vst.msk [vmem:[#allocation2 + $0x8] sm:$0xff] %vm1875_vm6, %v1872_v31  ;;  %1876 = vst.msk [vmem:[#allocation2] sm:$0xff] %vm1875_vm6, %v1870_v48  ;;  %v4009_v31 = vld [vmem:[#allocation9 + $0x1a0] sm:$0xff]  ;;  %v4011_v48 = vld [vmem:[#allocation9 + $0x1b0] sm:$0xff] }
0x16c4   :  { %4048 = vmatpush1.msra.mxu1 %v4009_v31 }
0x16c6   :  { %v5252_v13 = vpop.f32.mrf.mxu0  ;;  %v2085_v17 = vpop.permute.xlu1 %2084 }
0x16c7   :  { %v3760_v37 = vmul.f32 %v5443_v49, %v5252_v13  ;;  %2090 = vst.msk [vmem:[#allocation2 + $0x8] sm:$0xff] %vm2088_vm7, %v2085_v17  ;;  %v2083_v12 = vpop.permute.xlu0 %2082  ;;  %v4006_v49 = vld [vmem:[#allocation9 + $0x188] sm:$0xff]  ;;  %v4008_v13 = vld [vmem:[#allocation9 + $0x198] sm:$0xff]  ;;  %v4005_v17 = vld [vmem:[#allocation9 + $0x180] sm:$0xff] }
0x16c8   :  { %2089 = vst.msk [vmem:[#allocation2] sm:$0xff] %vm2088_vm7, %v2083_v12  ;;  %v3750_v36 = vpop.f32.mrf.mxu0  ;;  %4049 = vmatprep.subr.mxu1 %v4006_v49  ;;  %v4002_v12 = vld [vmem:[#allocation9 + $0x168] sm:$0xff] }
0x16c9   :  { %v3759_v11 = vmul.f32 %v5445_v39, %v3750_v36  ;;  %3765 = vrot.lane.b32.xlu1 %v3760_v37, %s5630_s1  ;;  %v4007_v37 = vld [vmem:[#allocation9 + $0x190] sm:$0xff]  ;;  %4050 = vmatpush1.msra.mxu1 %v4005_v17  ;;  %v4004_v39 = vld [vmem:[#allocation9 + $0x178] sm:$0xff]  ;;  %v4001_v36 = vld [vmem:[#allocation9 + $0x160] sm:$0xff] }
0x16ca   :  { %v2494_v22 = vpop.permute.xlu1 %2493  ;;  %4051 = vmatprep.subr.mxu1 %v4002_v12 }
0x16cb   :  { %2498 = vst.msk [vmem:[#allocation2 + $0x18] sm:$0xff] %vm810_vm1, %v2494_v22  ;;  %v2492_v47 = vpop.permute.xlu0 %2491  ;;  %3763 = vrot.lane.b32.xlu0 %v3759_v11, %s5630_s1  ;;  %v4003_v11 = vld [vmem:[#allocation9 + $0x170] sm:$0xff]  ;;  %4052 = vmatpush1.msra.mxu1 %v4001_v36  ;;  %v3998_v22 = vld [vmem:[#allocation9 + $0x148] sm:$0xff] }
0x16cc   :  { %2497 = vst.msk [vmem:[#allocation2 + $0x10] sm:$0xff] %vm810_vm1, %v2492_v47  ;;  %v4000_v47 = vld [vmem:[#allocation9 + $0x158] sm:$0xff]  ;;  %4053 = vmatprep.subr.mxu1 %v3998_v22 }
0x16ce   :  { %v2706_v40 = vpop.permute.xlu1 %2705  ;;  %v3772_v52 = vld [vmem:[#allocation2 + $0x8] sm:$0xff] }
0x16cf   :  { %2710 = vst.msk [vmem:[#allocation2 + $0x18] sm:$0xff] %vm1023_vm2, %v2706_v40  ;;  %v2704_v56 = vpop.permute.xlu0 %2703  ;;  %v3771_v23 = vld [vmem:[#allocation2] sm:$0xff] }
0x16d0   :  { %2709 = vst.msk [vmem:[#allocation2 + $0x10] sm:$0xff] %vm1023_vm2, %v2704_v56  ;;  %5285 = vmatprep.mubr.f32.mxu0 %v3771_v23  ;;  %v3997_v40 = vld [vmem:[#allocation9 + $0x140] sm:$0xff]  ;;  %v3994_v56 = vld [vmem:[#allocation9 + $0x128] sm:$0xff]  ;;  %v3996_v23 = vld [vmem:[#allocation9 + $0x138] sm:$0xff] }
0x16d1   :  { %5286 = vmatmul.mubr.f32.vlgmr.msra.gmra.mxu0 %v3772_v52  ;;  %v3999_v52 = vld [vmem:[#allocation9 + $0x150] sm:$0xff]  ;;  %4054 = vmatpush1.msra.mxu1 %v3997_v40 }
0x16d2   :  { %v2918_v50 = vpop.permute.xlu1 %2917  ;;  %4133 = vmatpush1.msra.mxu0 %v4019_v63  ;;  %4055 = vmatprep.subr.mxu1 %v3994_v56  ;;  %v3961_v63 = vld [vmem:[#allocation9 + $0x20] sm:$0xff] }
0x16d3   :  { %2922 = vst.msk [vmem:[#allocation2 + $0x18] sm:$0xff] %vm1236_vm3, %v2918_v50  ;;  %v2916_v51 = vpop.permute.xlu0 %2915  ;;  %4134 = vmatprep.subr.mxu0 %v4016_v18  ;;  %v3993_v50 = vld [vmem:[#allocation9 + $0x120] sm:$0xff]  ;;  %v3958_v18 = vld [vmem:[#allocation9 + $0x8] sm:$0xff] }
0x16d4   :  { %2921 = vst.msk [vmem:[#allocation2 + $0x10] sm:$0xff] %vm1236_vm3, %v2916_v51  ;;  %4135 = vmatpush1.msra.mxu0 %v4015_v44  ;;  %v3995_v51 = vld [vmem:[#allocation9 + $0x130] sm:$0xff]  ;;  %4056 = vmatpush1.msra.mxu1 %v3993_v50 }
0x16d5   :  { %4136 = vmatprep.subr.mxu0 %v4012_v57  ;;  %v3959_v44 = vld [vmem:[#allocation9 + $0x10] sm:$0xff] }
0x16d6   :  { %v3130_v6 = vpop.permute.xlu1 %3129  ;;  %4137 = vmatpush1.msra.mxu0 %v4011_v48 }
0x16d7   :  { %3134 = vst.msk [vmem:[#allocation2 + $0x18] sm:$0xff] %vm1449_vm4, %v3130_v6  ;;  %v3128_v53 = vpop.permute.xlu0 %3127  ;;  %4138 = vmatprep.subr.mxu0 %v4008_v13  ;;  %v3990_v6 = vld [vmem:[#allocation9 + $0x108] sm:$0xff] }
0x16d8   :  { %3133 = vst.msk [vmem:[#allocation2 + $0x10] sm:$0xff] %vm1449_vm4, %v3128_v53  ;;  %4139 = vmatpush1.msra.mxu0 %v4007_v37  ;;  %v3992_v53 = vld [vmem:[#allocation9 + $0x118] sm:$0xff]  ;;  %4057 = vmatprep.subr.mxu1 %v3990_v6 }
0x16d9   :  { %4140 = vmatprep.subr.mxu0 %v4004_v39 }
0x16da   :  { %v3342_v38 = vpop.permute.xlu1 %3341  ;;  %4141 = vmatpush1.msra.mxu0 %v4003_v11 }
0x16db   :  { %3346 = vst.msk [vmem:[#allocation2 + $0x18] sm:$0xff] %vm1662_vm5, %v3342_v38  ;;  %v3340_v25 = vpop.permute.xlu0 %3339  ;;  %4142 = vmatprep.subr.mxu0 %v4000_v47  ;;  %v3989_v38 = vld [vmem:[#allocation9 + $0x100] sm:$0xff] }
0x16dc   :  { %3345 = vst.msk [vmem:[#allocation2 + $0x10] sm:$0xff] %vm1662_vm5, %v3340_v25  ;;  %4143 = vmatpush1.msra.mxu0 %v3999_v52  ;;  %v3991_v25 = vld [vmem:[#allocation9 + $0x110] sm:$0xff]  ;;  %4058 = vmatpush1.msra.mxu1 %v3989_v38  ;;  %v4428_v38 = vld [vmem:[#allocation11 + $0x1f8] sm:$0xff] }
0x16dd   :  { %4144 = vmatprep.subr.mxu0 %v3996_v23  ;;  %v6480_v23 = vld [vmem:[%s6661_s6] ss:$0 sm:$0xff] }
0x16de   :  { %v3554_v4 = vpop.permute.xlu1 %3553  ;;  %4145 = vmatpush1.msra.mxu0 %v3995_v51  ;;  %v6486_v51 = vld [vmem:[%s6662_s7] ss:$0 sm:$0xff] }
0x16df   :  { %3558 = vst.msk [vmem:[#allocation2 + $0x18] sm:$0xff] %vm1875_vm6, %v3554_v4  ;;  %v3552_v27 = vpop.permute.xlu0 %3551  ;;  %4146 = vmatprep.subr.mxu0 %v3992_v53  ;;  %v3986_v4 = vld [vmem:[#allocation9 + $0xe8] sm:$0xff] }
0x16e0   :  { %3557 = vst.msk [vmem:[#allocation2 + $0x10] sm:$0xff] %vm1875_vm6, %v3552_v27  ;;  %v3988_v27 = vld [vmem:[#allocation9 + $0xf8] sm:$0xff]  ;;  %4147 = vmatpush1.msra.mxu0 %v3991_v25  ;;  %4059 = vmatprep.subr.mxu1 %v3986_v4 }
0x16e1   :  { %4148 = vmatprep.subr.mxu0 %v3988_v27  ;;  %v4380_v25 = vld [vmem:[#allocation11 + $0x78] sm:$0xff]  ;;  %v4395_v27 = vld [vmem:[#allocation11 + $0xf0] sm:$0xff] }
0x16e2   :  { %v4412_v4 = vld [vmem:[#allocation11 + $0x178] sm:$0xff] }
0x173b   :  { %v3766_v61 = vpop.permute.xlu1 %3765 }
0x173c   :  { %3770 = vst.msk [vmem:[#allocation2 + $0x18] sm:$0xff] %vm2088_vm7, %v3766_v61  ;;  %v3985_v61 = vld [vmem:[#allocation9 + $0xe0] sm:$0xff] }
0x173d   :  { %v3764_v0 = vpop.permute.xlu0 %3763  ;;  %4060 = vmatpush1.msra.mxu1 %v3985_v61  ;;  %v4427_v61 = vld [vmem:[#allocation11 + $0x1f0] sm:$0xff] }
0x173e   :  { %3769 = vst.msk [vmem:[#allocation2 + $0x10] sm:$0xff] %vm2088_vm7, %v3764_v0  ;;  %v3987_v0 = vld [vmem:[#allocation9 + $0xf0] sm:$0xff] }
0x173f   :  { %4149 = vmatpush1.msra.mxu0 %v3987_v0  ;;  %v4379_v0 = vld [vmem:[#allocation11 + $0x70] sm:$0xff] }
0x1743   :  { %v3774_v29 = vld [vmem:[#allocation2 + $0x18] sm:$0xff] }
0x1745   :  { %v3773_v55 = vld [vmem:[#allocation2 + $0x10] sm:$0xff] }
0x1746   :  { %5288 = vmatprep.mubr.f32.mxu0 %v3773_v55  ;;  %v3982_v55 = vld [vmem:[#allocation9 + $0xc8] sm:$0xff] }
0x1747   :  { %5289 = vmatmul.mubr.f32.gmra.mxu0 %v3774_v29  ;;  %v3984_v29 = vld [vmem:[#allocation9 + $0xd8] sm:$0xff]  ;;  %4061 = vmatprep.subr.mxu1 %v3982_v55  ;;  %v4411_v55 = vld [vmem:[#allocation11 + $0x170] sm:$0xff] }
0x1748   :  { %4196 = vmatprep.mubr.f32.mxu0 %v6679_v59  ;;  %4150 = vmatprep.subr.mxu0 %v3984_v29  ;;  %v4394_v29 = vld [vmem:[#allocation11 + $0xe8] sm:$0xff] }
0x1791   :  { %v5287_v2 = vpop.f32.mrf.mxu0 }
0x1792   :  { %v3877_v10 = vadd.f32 %v5486_v26, %v5287_v2  ;;  %v3981_v2 = vld [vmem:[#allocation9 + $0xc0] sm:$0xff]  ;;  %v3978_v26 = vld [vmem:[#allocation9 + $0xa8] sm:$0xff] }
0x1793   :  { %v3857_v54 = vpop.f32.mrf.mxu0  ;;  %4062 = vmatpush1.msra.mxu1 %v3981_v2  ;;  %v4426_v2 = vld [vmem:[#allocation11 + $0x1e8] sm:$0xff] }
0x1794   :  { %v6443_v5 = vadd.f32 %v4731_v8, %v3877_v10  ;;  %v3876_v28 = vadd.f32 %v5487_v1, %v3857_v54  ;;  %v3980_v10 = vld [vmem:[#allocation9 + $0xb8] sm:$0xff]  ;;  %v3977_v54 = vld [vmem:[#allocation9 + $0xa0] sm:$0xff]  ;;  %v3979_v1 = vld [vmem:[#allocation9 + $0xb0] sm:$0xff]  ;;  %4063 = vmatprep.subr.mxu1 %v3978_v26 }
0x1795   :  { %4064 = vmatpush1.msra.mxu1 %v3977_v54  ;;  %v4410_v26 = vld [vmem:[#allocation11 + $0x168] sm:$0xff]  ;;  %v4425_v54 = vld [vmem:[#allocation11 + $0x1e0] sm:$0xff] }
0x1796   :  { %v6445_v9 = vadd.f32 %v4731_v8, %v3876_v28  ;;  %3895 = vadd.xlane.f32.xlu1 %v6443_v5  ;;  %v3974_v28 = vld [vmem:[#allocation9 + $0x88] sm:$0xff] }
0x1797   :  { %4065 = vmatprep.subr.mxu1 %v3974_v28  ;;  %v4409_v28 = vld [vmem:[#allocation11 + $0x160] sm:$0xff] }
0x1798   :  { %3893 = vadd.xlane.f32.xlu0 %v6445_v9 }
0x1807   :  { %v5290_v24 = vpop.f32.mrf.mxu0 }
0x1808   :  { %v3879_v16 = vadd.f32 %v5489_v14, %v5290_v24  ;;  %v3976_v24 = vld [vmem:[#allocation9 + $0x98] sm:$0xff] }
0x1809   :  { %v3867_v62 = vpop.f32.mrf.mxu0  ;;  %v3972_v14 = vld [vmem:[#allocation9 + $0x78] sm:$0xff] }
0x180a   :  { %v3878_v15 = vadd.f32 %v5488_v7, %v3867_v62  ;;  %v6452_v30 = vadd.f32 %v4731_v8, %v3879_v16  ;;  %v3973_v62 = vld [vmem:[#allocation9 + $0x80] sm:$0xff]  ;;  %v3975_v7 = vld [vmem:[#allocation9 + $0x90] sm:$0xff] }
0x180b   :  { %v3969_v16 = vld [vmem:[#allocation9 + $0x60] sm:$0xff]  ;;  %4066 = vmatpush1.msra.mxu1 %v3973_v62  ;;  %v4424_v62 = vld [vmem:[#allocation11 + $0x1d8] sm:$0xff] }
0x180c   :  { %v6449_v19 = vadd.f32 %v4731_v8, %v3878_v15  ;;  %v3983_v8 = vld [vmem:[#allocation9 + $0xd0] sm:$0xff]  ;;  %v3970_v15 = vld [vmem:[#allocation9 + $0x68] sm:$0xff] }
0x180d   :  { %4151 = vmatpush1.msra.mxu0 %v3983_v8  ;;  %4067 = vmatprep.subr.mxu1 %v3970_v15  ;;  %v4378_v8 = vld [vmem:[#allocation11 + $0x68] sm:$0xff]  ;;  %v4408_v15 = vld [vmem:[#allocation11 + $0x158] sm:$0xff] }
0x180e   :  { %3897 = vadd.xlane.f32.xlu0 %v6449_v19  ;;  %4152 = vmatprep.subr.mxu0 %v3980_v10  ;;  %v4393_v10 = vld [vmem:[#allocation11 + $0xe0] sm:$0xff] }
0x180f   :  { %4153 = vmatpush1.msra.mxu0 %v3979_v1  ;;  %4068 = vmatpush1.msra.mxu1 %v3969_v16  ;;  %v4377_v1 = vld [vmem:[#allocation11 + $0x60] sm:$0xff]  ;;  %v4423_v16 = vld [vmem:[#allocation11 + $0x1d0] sm:$0xff] }
0x1810   :  { %4154 = vmatprep.subr.mxu0 %v3976_v24  ;;  %v4392_v24 = vld [vmem:[#allocation11 + $0xd8] sm:$0xff] }
0x1811   :  { %4155 = vmatpush1.msra.mxu0 %v3975_v7  ;;  %v4376_v7 = vld [vmem:[#allocation11 + $0x58] sm:$0xff] }
0x1812   :  { %3899 = vadd.xlane.f32.xlu0 %v6452_v30  ;;  %4156 = vmatprep.subr.mxu0 %v3972_v14  ;;  %v4391_v14 = vld [vmem:[#allocation11 + $0xd0] sm:$0xff] }
0x181f   :  { %v3896_v35 = vpop.xlane.xlu1 %3895 }
0x1820   :  { %v3902_v3 = vmul.f32 0.0078125, %v3896_v35  ;;  %v3971_v35 = vld [vmem:[#allocation9 + $0x70] sm:$0xff] }
0x1821   :  { %v3894_v42 = vpop.xlane.xlu0 %3893  ;;  %4157 = vmatpush1.msra.mxu0 %v3971_v35  ;;  %v4375_v35 = vld [vmem:[#allocation11 + $0x50] sm:$0xff] }
0x1822   :  { %v6456_v41 = vsub.f32 %v6443_v5, %v3902_v3  ;;  %v3901_v33 = vmul.f32 0.0078125, %v3894_v42  ;;  %v3966_v3 = vld [vmem:[#allocation9 + $0x48] sm:$0xff]  ;;  %v3968_v42 = vld [vmem:[#allocation9 + $0x58] sm:$0xff] }
0x1823   :  { %4069 = vmatprep.subr.mxu1 %v3966_v3  ;;  %4158 = vmatprep.subr.mxu0 %v3968_v42  ;;  %v4407_v3 = vld [vmem:[#allocation11 + $0x150] sm:$0xff]  ;;  %v4390_v42 = vld [vmem:[#allocation11 + $0xc8] sm:$0xff] }
0x1824   :  { %v6459_v60 = vsub.f32 %v6445_v9, %v3901_v33  ;;  %v3910_v20 = vmul.f32 %v6456_v41, %v6456_v41  ;;  %v3965_v33 = vld [vmem:[#allocation9 + $0x40] sm:$0xff]  ;;  %4159 = vmatpush1.msra.mxu0 %v3967_v45  ;;  %v4374_v45 = vld [vmem:[#allocation11 + $0x48] sm:$0xff] }
0x1825   :  { %4070 = vmatpush1.msra.mxu1 %v3965_v33  ;;  %4160 = vmatprep.subr.mxu0 %v3964_v34  ;;  %v4422_v33 = vld [vmem:[#allocation11 + $0x1c8] sm:$0xff]  ;;  %v4389_v34 = vld [vmem:[#allocation11 + $0xc0] sm:$0xff] }
0x1826   :  { %3915 = vadd.xlane.f32.xlu1 %v3910_v20  ;;  %v3909_v32 = vmul.f32 %v6459_v60, %v6459_v60  ;;  %v3960_v20 = vld [vmem:[#allocation9 + $0x18] sm:$0xff]  ;;  %4071 = vmatprep.subr.mxu1 %v3962_v46  ;;  %v4406_v46 = vld [vmem:[#allocation11 + $0x148] sm:$0xff] }
0x1827   :  { %4072 = vmatpush1.msra.mxu1 %v3961_v63  ;;  %4161 = vmatpush1.msra.mxu0 %v3963_v43  ;;  %v4421_v63 = vld [vmem:[#allocation11 + $0x1c0] sm:$0xff] }
0x1828   :  { %3913 = vadd.xlane.f32.xlu0 %v3909_v32  ;;  %4073 = vmatprep.subr.mxu1 %v3958_v18  ;;  %v4373_v43 = vld [vmem:[#allocation11 + $0x40] sm:$0xff] }
0x1829   :  { %4162 = vmatprep.subr.mxu0 %v3960_v20  ;;  %4074 = vmatpush1.msra.mxu1 %v3957_v21  ;;  %v4405_v18 = vld [vmem:[#allocation11 + $0x140] sm:$0xff]  ;;  %v4388_v20 = vld [vmem:[#allocation11 + $0xb8] sm:$0xff] }
0x182a   :  { %4163 = vmatpush1.msra.mxu0 %v3959_v44  ;;  %v4420_v21 = vld [vmem:[#allocation11 + $0x1b8] sm:$0xff] }
0x182b   :  { %4947 = vmatprep.subr.mxu0 %v4428_v38  ;;  %v4372_v44 = vld [vmem:[#allocation11 + $0x38] sm:$0xff] }
0x1897   :  { %v3898_v58 = vpop.xlane.xlu0 %3897 }
0x1898   :  { %v3903_v57 = vmul.f32 0.0078125, %v3898_v58  ;;  %v4404_v58 = vld [vmem:[#allocation11 + $0x138] sm:$0xff] }
0x189a   :  { %v6466_v32 = vsub.f32 %v6449_v19, %v3903_v57  ;;  %v4387_v57 = vld [vmem:[#allocation11 + $0xb0] sm:$0xff] }
0x189b   :  { %v3900_v31 = vpop.xlane.xlu0 %3899 }
0x189c   :  { %v3904_v48 = vmul.f32 0.0078125, %v3900_v31  ;;  %v3911_v49 = vmul.f32 %v6466_v32, %v6466_v32  ;;  %v4419_v31 = vld [vmem:[#allocation11 + $0x1b0] sm:$0xff] }
0x189e   :  { %v6471_v13 = vsub.f32 %v6452_v30, %v3904_v48  ;;  %3917 = vadd.xlane.f32.xlu0 %v3911_v49  ;;  %v4371_v48 = vld [vmem:[#allocation11 + $0x30] sm:$0xff] }
0x189f   :  { %v4403_v49 = vld [vmem:[#allocation11 + $0x130] sm:$0xff] }
0x18a0   :  { %v3912_v17 = vmul.f32 %v6471_v13, %v6471_v13 }
0x18a2   :  { %3919 = vadd.xlane.f32.xlu1 %v3912_v17  ;;  %v4386_v17 = vld [vmem:[#allocation11 + $0xa8] sm:$0xff] }
0x18af   :  { %v3916_v37 = vpop.xlane.xlu1 %3915 }
0x18b0   :  { %v3922_v12 = vmul.f32 0.0078125, %v3916_v37  ;;  %v4418_v37 = vld [vmem:[#allocation11 + $0x1a8] sm:$0xff] }
0x18b1   :  { %v3914_v39 = vpop.xlane.xlu0 %3913 }
0x18b2   :  { %v3926_v36 = vadd.f32 1e-05, %v3922_v12  ;;  %v3921_v11 = vmul.f32 0.0078125, %v3914_v39  ;;  %v4370_v12 = vld [vmem:[#allocation11 + $0x28] sm:$0xff] }
0x18b3   :  { %v4402_v39 = vld [vmem:[#allocation11 + $0x128] sm:$0xff] }
0x18b4   :  { %5446 = vrsqrt.f32 %v3926_v36  ;;  %v3925_v22 = vadd.f32 1e-05, %v3921_v11  ;;  %v4385_v36 = vld [vmem:[#allocation11 + $0xa0] sm:$0xff] }
0x18b5   :  { %v4417_v11 = vld [vmem:[#allocation11 + $0x1a0] sm:$0xff] }
0x18b6   :  { %5448 = vrsqrt.f32 %v3925_v22  ;;  %v4369_v22 = vld [vmem:[#allocation11 + $0x20] sm:$0xff] }
0x18c1   :  { %v5447_v47 = vpop.eup %5446 }
0x18c2   :  { %v3934_v56 = vmul.f32 %v5447_v47, %v6456_v41  ;;  %v4401_v47 = vld [vmem:[#allocation11 + $0x120] sm:$0xff] }
0x18c3   :  { %v5449_v40 = vpop.eup %5448 }
0x18c4   :  { %v3933_v52 = vmul.f32 %v5449_v40, %v6459_v60  ;;  %v3944_v53 = vmul.f32 %v6480_v23, %v3934_v56  ;;  %v4396_v60 = vld [vmem:[#allocation11 + $0xf8] sm:$0xff] }
0x18c5   :  { %4903 = vmatprep.subr.mxu1 %v4396_v60  ;;  %v4416_v56 = vld [vmem:[#allocation11 + $0x198] sm:$0xff]  ;;  %v4415_v60 = vld [vmem:[#allocation11 + $0x190] sm:$0xff] }
0x18c6   :  { %v3943_v50 = vmul.f32 %v6480_v23, %v3933_v52  ;;  %v3954_v41 = vadd.f32 %v6486_v51, %v3944_v53  ;;  %v4384_v52 = vld [vmem:[#allocation11 + $0x98] sm:$0xff] }
0x18c7   :  { %v4400_v53 = vld [vmem:[#allocation11 + $0x118] sm:$0xff] }
0x18c8   :  { %v3953_v6 = vadd.f32 %v6486_v51, %v3943_v50 }
0x18ca   :  { %4108 = vmatmul.mubr.f32.vlgmr.msra.gmra.mxu1 %v3953_v6  ;;  %4197 = vmatmul.mubr.f32.vlgmr.msra.gmra.mxu0 %v3953_v6  ;;  %v4368_v6 = vld [vmem:[#allocation11 + $0x18] sm:$0xff] }
0x18cb   :  { %4113 = vmatprep.mubr.f32.mxu1 %v6679_v59  ;;  %4202 = vmatprep.mubr.f32.mxu0 %v6679_v59 }
0x18cc   :  { %4904 = vmatpush3.msra.mxu1 %v4380_v25  ;;  %4948 = vmatpush3.msra.mxu0 %v4412_v4  ;;  %v4367_v25 = vld [vmem:[#allocation11 + $0x10] sm:$0xff] }
0x18cd   :  { %4905 = vmatprep.subr.mxu1 %v4395_v27  ;;  %4949 = vmatprep.subr.mxu0 %v4427_v61  ;;  %v4399_v4 = vld [vmem:[#allocation11 + $0x110] sm:$0xff]  ;;  %v4382_v27 = vld [vmem:[#allocation11 + $0x88] sm:$0xff] }
0x18ce   :  { %4114 = vmatmul.mubr.f32.gmra.mxu1 %v3954_v41  ;;  %4203 = vmatmul.mubr.f32.gmra.mxu0 %v3954_v41  ;;  %v4383_v41 = vld [vmem:[#allocation11 + $0x90] sm:$0xff] }
0x18cf   :  { %4119 = vmatprep.mubr.f32.mxu1 %v6679_v59  ;;  %4208 = vmatprep.mubr.f32.mxu0 %v6679_v59 }
0x18d0   :  { %4906 = vmatpush3.msra.mxu1 %v4379_v0  ;;  %4950 = vmatpush3.msra.mxu0 %v4411_v55  ;;  %v4414_v0 = vld [vmem:[#allocation11 + $0x188] sm:$0xff] }
0x18d1   :  { %4907 = vmatprep.subr.mxu1 %v4394_v29  ;;  %4951 = vmatprep.subr.mxu0 %v4426_v2  ;;  %v4366_v55 = vld [vmem:[#allocation11 + $0x8] sm:$0xff] }
0x18d2   :  { %4908 = vmatpush3.msra.mxu1 %v4378_v8  ;;  %4952 = vmatpush3.msra.mxu0 %v4410_v26  ;;  %v4398_v29 = vld [vmem:[#allocation11 + $0x108] sm:$0xff]  ;;  %v4381_v8 = vld [vmem:[#allocation11 + $0x80] sm:$0xff] }
0x18d3   :  { %4909 = vmatprep.subr.mxu1 %v4393_v10  ;;  %4953 = vmatprep.subr.mxu0 %v4425_v54  ;;  %v4413_v26 = vld [vmem:[#allocation11 + $0x180] sm:$0xff] }
0x18d4   :  { %4910 = vmatpush3.msra.mxu1 %v4377_v1  ;;  %4954 = vmatpush3.msra.mxu0 %v4409_v28  ;;  %v4365_v10 = vld [vmem:[#allocation11] sm:$0xff] }
0x18d5   :  { %4911 = vmatprep.subr.mxu1 %v4392_v24  ;;  %4955 = vmatprep.subr.mxu0 %v4424_v62  ;;  %v4397_v54 = vld [vmem:[#allocation11 + $0x100] sm:$0xff] }
0x18d6   :  { %4912 = vmatpush3.msra.mxu1 %v4376_v7  ;;  %4956 = vmatpush3.msra.mxu0 %v4408_v15 }
0x18d7   :  { %4913 = vmatprep.subr.mxu1 %v4391_v14  ;;  %4957 = vmatprep.subr.mxu0 %v4423_v16 }
0x18d8   :  { %4914 = vmatpush3.msra.mxu1 %v4375_v35  ;;  %4958 = vmatpush3.msra.mxu0 %v4407_v3 }
0x18d9   :  { %4915 = vmatprep.subr.mxu1 %v4390_v42  ;;  %4959 = vmatprep.subr.mxu0 %v4422_v33 }
0x18da   :  { %4916 = vmatpush3.msra.mxu1 %v4374_v45  ;;  %4960 = vmatpush3.msra.mxu0 %v4406_v46 }
0x18db   :  { %4917 = vmatprep.subr.mxu1 %v4389_v34  ;;  %4961 = vmatprep.subr.mxu0 %v4421_v63 }
0x18dc   :  { %4918 = vmatpush3.msra.mxu1 %v4373_v43  ;;  %4962 = vmatpush3.msra.mxu0 %v4405_v18 }
0x18dd   :  { %4919 = vmatprep.subr.mxu1 %v4388_v20  ;;  %4963 = vmatprep.subr.mxu0 %v4420_v21 }
0x18de   :  { %4920 = vmatpush3.msra.mxu1 %v4372_v44  ;;  %4964 = vmatpush3.msra.mxu0 %v4404_v58 }
0x18df   :  { %4921 = vmatprep.subr.mxu1 %v4387_v57  ;;  %4965 = vmatprep.subr.mxu0 %v4419_v31 }
0x18e0   :  { %4922 = vmatpush3.msra.mxu1 %v4371_v48  ;;  %4966 = vmatpush3.msra.mxu0 %v4403_v49 }
0x18e1   :  { %4923 = vmatprep.subr.mxu1 %v4386_v17  ;;  %4967 = vmatprep.subr.mxu0 %v4418_v37 }
0x18e2   :  { %4924 = vmatpush3.msra.mxu1 %v4370_v12  ;;  %4968 = vmatpush3.msra.mxu0 %v4402_v39 }
0x18e3   :  { %4925 = vmatprep.subr.mxu1 %v4385_v36  ;;  %4969 = vmatprep.subr.mxu0 %v4417_v11 }
0x18e4   :  { %4926 = vmatpush3.msra.mxu1 %v4369_v22  ;;  %4970 = vmatpush3.msra.mxu0 %v4401_v47 }
0x18e5   :  { %4927 = vmatprep.subr.mxu1 %v4384_v52  ;;  %4971 = vmatprep.subr.mxu0 %v4416_v56 }
0x18e6   :  { %4928 = vmatpush3.msra.mxu1 %v4368_v6  ;;  %4972 = vmatpush3.msra.mxu0 %v4400_v53 }
0x18e7   :  { %4929 = vmatprep.subr.mxu1 %v4383_v41  ;;  %4973 = vmatprep.subr.mxu0 %v4415_v60 }
0x18e8   :  { %4930 = vmatpush3.msra.mxu1 %v4367_v25  ;;  %4974 = vmatpush3.msra.mxu0 %v4399_v4 }
0x18e9   :  { %4931 = vmatprep.subr.mxu1 %v4382_v27  ;;  %4975 = vmatprep.subr.mxu0 %v4414_v0 }
0x18ea   :  { %4932 = vmatpush3.msra.mxu1 %v4366_v55  ;;  %4976 = vmatpush3.msra.mxu0 %v4398_v29 }
0x18eb   :  { %4933 = vmatprep.subr.mxu1 %v4381_v8  ;;  %4977 = vmatprep.subr.mxu0 %v4413_v26 }
0x18ec   :  { %4934 = vmatpush3.msra.mxu1 %v4365_v10  ;;  %4978 = vmatpush3.msra.mxu0 %v4397_v54 }
0x1927   :  { %v3918_v40 = vpop.xlane.xlu0 %3917 }
0x1928   :  { %v3923_v50 = vmul.f32 0.0078125, %v3918_v40 }
0x192a   :  { %v3927_v38 = vadd.f32 1e-05, %v3923_v50 }
0x192b   :  { %v3920_v61 = vpop.xlane.xlu1 %3919 }
0x192c   :  { %5450 = vrsqrt.f32 %v3927_v38  ;;  %v3924_v2 = vmul.f32 0.0078125, %v3920_v61 }
0x192e   :  { %v3928_v1 = vadd.f32 1e-05, %v3924_v2 }
0x1930   :  { %5452 = vrsqrt.f32 %v3928_v1 }
0x1939   :  { %v5451_v28 = vpop.eup %5450 }
0x193a   :  { %v3935_v24 = vmul.f32 %v5451_v28, %v6466_v32  ;;  %v4023_v32 = vlaneseq }
0x193c   :  { %v3945_v62 = vmul.f32 %v6480_v23, %v3935_v24  ;;  %v4024_v3 = vshrl.u32 %v4023_v32, 7 }
0x193d   :  { %v5453_v7 = vpop.eup %5452 }
0x193e   :  { %v3955_v15 = vadd.f32 %v6486_v51, %v3945_v62  ;;  %v3936_v14 = vmul.f32 %v5453_v7, %v6471_v13  ;;  %v4025_v42 = vsub.s32 0, %v4024_v3  ;;  %v4033_v33 = vsub.s32 2, %v4024_v3  ;;  %v4021_v13 = vld [vmem:[%s6664_s9] sm:$0xf] }
0x193f   :  { %v4029_v45 = vsub.s32 1, %v4024_v3  ;;  %v4037_v46 = vsub.s32 3, %v4024_v3 }
0x1940   :  { %4120 = vmatmul.mubr.f32.gmra.mxu1 %v3955_v15  ;;  %4209 = vmatmul.mubr.f32.gmra.mxu0 %v3955_v15  ;;  %v3946_v16 = vmul.f32 %v6480_v23, %v3936_v14  ;;  %v6506_v34 = vrot.slane %v4021_v13, %v4025_v42  ;;  %v6508_v23 = vrot.slane %v4021_v13, %v4033_v33 }
0x1941   :  { %4125 = vmatprep.mubr.f32.mxu1 %v6679_v59  ;;  %4214 = vmatprep.mubr.f32.mxu0 %v6679_v59  ;;  %v6510_v63 = vrot.slane %v4021_v13, %v4029_v45  ;;  %v6512_v59 = vrot.slane %v4021_v13, %v4037_v46 }
0x1942   :  { %v3956_v35 = vadd.f32 %v6486_v51, %v3946_v16 }
0x1944   :  { %4126 = vmatmul.mubr.f32.gmra.mxu1 %v3956_v35  ;;  %4215 = vmatmul.mubr.f32.gmra.mxu0 %v3956_v35 }
0x198a   :  { %v4109_v51 = vpop.f32.mrf.mxu1  ;;  %v4198_v43 = vpop.f32.mrf.mxu0 }
0x198b   :  { %v6515_v18 = vadd.f32 %v4109_v51, %v6506_v34  ;;  %v6518_v20 = vadd.f32 %v4198_v43, %v6508_v23 }
0x198c   :  { %v4111_v21 = vpop.f32.mrf.mxu1  ;;  %v4200_v44 = vpop.f32.mrf.mxu0 }
0x198d   :  { %v4221_v58 = vmul.f32 %v6515_v18, %v6515_v18  ;;  %v4223_v57 = vmul.f32 %v6518_v20, %v6518_v20  ;;  %v6525_v31 = vadd.f32 %v4111_v21, %v6510_v63  ;;  %v6528_v48 = vadd.f32 %v4200_v44, %v6512_v59 }
0x198e   :  { %v4115_v49 = vpop.f32.mrf.mxu1  ;;  %v4204_v17 = vpop.f32.mrf.mxu0 }
0x198f   :  { %v4237_v37 = vmul.f32 %v4221_v58, %v6515_v18  ;;  %v4239_v12 = vmul.f32 %v4223_v57, %v6518_v20  ;;  %v4222_v39 = vmul.f32 %v6525_v31, %v6525_v31  ;;  %v4224_v36 = vmul.f32 %v6528_v48, %v6528_v48 }
0x1990   :  { %v6537_v11 = vadd.f32 %v4115_v49, %v6506_v34  ;;  %v6540_v22 = vadd.f32 %v4204_v17, %v6508_v23  ;;  %v4117_v47 = vpop.f32.mrf.mxu1  ;;  %v4206_v40 = vpop.f32.mrf.mxu0 }
0x1991   :  { %v4253_v52 = vmul.f32 0.044715, %v4237_v37  ;;  %v4255_v56 = vmul.f32 0.044715, %v4239_v12  ;;  %v4238_v50 = vmul.f32 %v4222_v39, %v6525_v31  ;;  %v4240_v6 = vmul.f32 %v4224_v36, %v6528_v48 }
0x1992   :  { %v4225_v53 = vmul.f32 %v6537_v11, %v6537_v11  ;;  %v4227_v41 = vmul.f32 %v6540_v22, %v6540_v22  ;;  %v6549_v60 = vadd.f32 %v4117_v47, %v6510_v63  ;;  %v6552_v38 = vadd.f32 %v4206_v40, %v6512_v59 }
0x1993   :  { %v4269_v25 = vadd.f32 %v4253_v52, %v6515_v18  ;;  %v4271_v4 = vadd.f32 %v4255_v56, %v6518_v20  ;;  %v4254_v27 = vmul.f32 0.044715, %v4238_v50  ;;  %v4256_v61 = vmul.f32 0.044715, %v4240_v6 }
0x1994   :  { %v4241_v0 = vmul.f32 %v4225_v53, %v6537_v11  ;;  %v4243_v55 = vmul.f32 %v4227_v41, %v6540_v22  ;;  %v4226_v29 = vmul.f32 %v6549_v60, %v6549_v60  ;;  %v4228_v2 = vmul.f32 %v6552_v38, %v6552_v38 }
0x1995   :  { %v4285_v8 = vmul.f32 0.7978846, %v4269_v25  ;;  %v4287_v26 = vmul.f32 0.7978846, %v4271_v4  ;;  %v4270_v10 = vadd.f32 %v4254_v27, %v6525_v31  ;;  %v4272_v54 = vadd.f32 %v4256_v61, %v6528_v48 }
0x1996   :  { %v4257_v1 = vmul.f32 0.044715, %v4241_v0  ;;  %v4259_v28 = vmul.f32 0.044715, %v4243_v55  ;;  %v4242_v24 = vmul.f32 %v4226_v29, %v6549_v60  ;;  %v4244_v62 = vmul.f32 %v4228_v2, %v6552_v38 }
0x1997   :  { %5454 = vtanh.f32 %v4285_v8  ;;  %v4286_v7 = vmul.f32 0.7978846, %v4270_v10  ;;  %v4288_v15 = vmul.f32 0.7978846, %v4272_v54 }
0x1998   :  { %5456 = vtanh.f32 %v4287_v26  ;;  %v4273_v14 = vadd.f32 %v4257_v1, %v6537_v11  ;;  %v4275_v16 = vadd.f32 %v4259_v28, %v6540_v22  ;;  %v4258_v35 = vmul.f32 0.044715, %v4242_v24 }
0x1999   :  { %5458 = vtanh.f32 %v4286_v7  ;;  %v4260_v32 = vmul.f32 0.044715, %v4244_v62 }
0x199a   :  { %5460 = vtanh.f32 %v4288_v15  ;;  %v4289_v3 = vmul.f32 0.7978846, %v4273_v14  ;;  %v4291_v42 = vmul.f32 0.7978846, %v4275_v16  ;;  %v4274_v33 = vadd.f32 %v4258_v35, %v6549_v60 }
0x199b   :  { %v4276_v13 = vadd.f32 %v4260_v32, %v6552_v38 }
0x199c   :  { %5462 = vtanh.f32 %v4289_v3  ;;  %v4290_v45 = vmul.f32 0.7978846, %v4274_v33 }
0x199d   :  { %5464 = vtanh.f32 %v4291_v42  ;;  %v4292_v46 = vmul.f32 0.7978846, %v4276_v13 }
0x199e   :  { %5466 = vtanh.f32 %v4290_v45 }
0x199f   :  { %5468 = vtanh.f32 %v4292_v46 }
0x19a4   :  { %v5455_v51 = vpop.eup %5454 }
0x19a5   :  { %v5457_v43 = vpop.eup %5456  ;;  %v4317_v21 = vadd.f32 1.0, %v5455_v51 }
0x19a6   :  { %v5459_v44 = vpop.eup %5458  ;;  %v4319_v58 = vadd.f32 1.0, %v5457_v43 }
0x19a7   :  { %v5461_v57 = vpop.eup %5460  ;;  %v4318_v49 = vadd.f32 1.0, %v5459_v44  ;;  %v4333_v17 = vmul.f32 0.5, %v4317_v21 }
0x19a8   :  { %v4320_v37 = vadd.f32 1.0, %v5461_v57  ;;  %v4335_v39 = vmul.f32 0.5, %v4319_v58 }
0x19a9   :  { %v5463_v12 = vpop.eup %5462  ;;  %v4334_v36 = vmul.f32 0.5, %v4318_v49  ;;  %v4349_v41 = vmul.f32 %v4333_v17, %v6515_v18 }
0x19aa   :  { %v5465_v47 = vpop.eup %5464  ;;  %v4336_v40 = vmul.f32 0.5, %v4320_v37  ;;  %v4321_v52 = vadd.f32 1.0, %v5463_v12  ;;  %v4351_v27 = vmul.f32 %v4335_v39, %v6518_v20 }
0x19ab   :  { %v5467_v56 = vpop.eup %5466  ;;  %v4350_v50 = vmul.f32 %v4334_v36, %v6525_v31  ;;  %v4323_v6 = vadd.f32 1.0, %v5465_v47 }
0x19ac   :  { %v5469_v53 = vpop.eup %5468  ;;  %v4352_v25 = vmul.f32 %v4336_v40, %v6528_v48  ;;  %v4322_v4 = vadd.f32 1.0, %v5467_v56  ;;  %v4337_v0 = vmul.f32 0.5, %v4321_v52 }
0x19ad   :  { %4500 = vmatprep.mubr.f32.mxu1 %v4350_v50  ;;  %v4324_v61 = vadd.f32 1.0, %v5469_v53  ;;  %v4339_v29 = vmul.f32 0.5, %v4323_v6 }
0x19ae   :  { %4585 = vmatprep.mubr.f32.mxu0 %v4352_v25  ;;  %4501 = vmatmul.mubr.f32.vlgmr.msra.gmra.mxu1 %v4349_v41  ;;  %v4338_v55 = vmul.f32 0.5, %v4322_v4  ;;  %v4353_v18 = vmul.f32 %v4337_v0, %v6537_v11 }
0x19af   :  { %4586 = vmatmul.mubr.f32.vlgmr.msra.gmra.mxu0 %v4351_v27  ;;  %v4340_v2 = vmul.f32 0.5, %v4324_v61  ;;  %v4355_v48 = vmul.f32 %v4339_v29, %v6540_v22 }
0x19b0   :  { %v4354_v31 = vmul.f32 %v4338_v55, %v6549_v60 }
0x19b1   :  { %v4356_v8 = vmul.f32 %v4340_v2, %v6552_v38 }
0x19b2   :  { %4505 = vmatprep.mubr.f32.mxu1 %v4354_v31 }
0x19b3   :  { %4590 = vmatprep.mubr.f32.mxu0 %v4356_v8  ;;  %4506 = vmatmul.mubr.f32.gmra.mxu1 %v4353_v18 }
0x19b4   :  { %4591 = vmatmul.mubr.f32.gmra.mxu0 %v4355_v48 }
0x1a00   :  { %v4121_v20 = vpop.f32.mrf.mxu1  ;;  %v4210_v26 = vpop.f32.mrf.mxu0 }
0x1a01   :  { %v6579_v10 = vadd.f32 %v4121_v20, %v6506_v34  ;;  %v6582_v54 = vadd.f32 %v4210_v26, %v6508_v23 }
0x1a02   :  { %v4123_v1 = vpop.f32.mrf.mxu1  ;;  %v4212_v60 = vpop.f32.mrf.mxu0 }
0x1a03   :  { %v4229_v38 = vmul.f32 %v6579_v10, %v6579_v10  ;;  %v4231_v11 = vmul.f32 %v6582_v54, %v6582_v54  ;;  %v6589_v22 = vadd.f32 %v4123_v1, %v6510_v63  ;;  %v6592_v28 = vadd.f32 %v4212_v60, %v6512_v59 }
0x1a04   :  { %v4127_v24 = vpop.f32.mrf.mxu1  ;;  %v4216_v62 = vpop.f32.mrf.mxu0 }
0x1a05   :  { %v4245_v7 = vmul.f32 %v4229_v38, %v6579_v10  ;;  %v4247_v15 = vmul.f32 %v4231_v11, %v6582_v54  ;;  %v4230_v14 = vmul.f32 %v6589_v22, %v6589_v22  ;;  %v4232_v16 = vmul.f32 %v6592_v28, %v6592_v28 }
0x1a06   :  { %v6601_v35 = vadd.f32 %v4127_v24, %v6506_v34  ;;  %v6604_v32 = vadd.f32 %v4216_v62, %v6508_v23  ;;  %v4129_v3 = vpop.f32.mrf.mxu1  ;;  %v4218_v42 = vpop.f32.mrf.mxu0 }
0x1a07   :  { %v4261_v33 = vmul.f32 0.044715, %v4245_v7  ;;  %v4263_v13 = vmul.f32 0.044715, %v4247_v15  ;;  %v4246_v45 = vmul.f32 %v4230_v14, %v6589_v22  ;;  %v4248_v46 = vmul.f32 %v4232_v16, %v6592_v28 }
0x1a08   :  { %v4233_v51 = vmul.f32 %v6601_v35, %v6601_v35  ;;  %v4235_v43 = vmul.f32 %v6604_v32, %v6604_v32  ;;  %v6613_v34 = vadd.f32 %v4129_v3, %v6510_v63  ;;  %v6616_v23 = vadd.f32 %v4218_v42, %v6512_v59 }
0x1a09   :  { %v4277_v21 = vadd.f32 %v4261_v33, %v6579_v10  ;;  %v4279_v44 = vadd.f32 %v4263_v13, %v6582_v54  ;;  %v4262_v58 = vmul.f32 0.044715, %v4246_v45  ;;  %v4264_v57 = vmul.f32 0.044715, %v4248_v46 }
0x1a0a   :  { %v4249_v49 = vmul.f32 %v4233_v51, %v6601_v35  ;;  %v4251_v17 = vmul.f32 %v4235_v43, %v6604_v32  ;;  %v4234_v37 = vmul.f32 %v6613_v34, %v6613_v34  ;;  %v4236_v63 = vmul.f32 %v6616_v23, %v6616_v23 }
0x1a0b   :  { %v4293_v12 = vmul.f32 0.7978846, %v4277_v21  ;;  %v4295_v39 = vmul.f32 0.7978846, %v4279_v44  ;;  %v4278_v59 = vadd.f32 %v4262_v58, %v6589_v22  ;;  %v4280_v36 = vadd.f32 %v4264_v57, %v6592_v28 }
0x1a0c   :  { %v4265_v47 = vmul.f32 0.044715, %v4249_v49  ;;  %v4267_v40 = vmul.f32 0.044715, %v4251_v17  ;;  %v4250_v52 = vmul.f32 %v4234_v37, %v6613_v34  ;;  %v4252_v56 = vmul.f32 %v4236_v63, %v6616_v23  ;;  %v4734_v37 = vld [vmem:[%s6666_s11] ss:$0 sm:$0xff] }
0x1a0d   :  { %5470 = vtanh.f32 %v4293_v12  ;;  %v4294_v50 = vmul.f32 0.7978846, %v4278_v59  ;;  %v4296_v6 = vmul.f32 0.7978846, %v4280_v36  ;;  %s5636_s11 = smov [#allocation12]  }
0x1a0e   :  { %5472 = vtanh.f32 %v4295_v39  ;;  %v4281_v53 = vadd.f32 %v4265_v47, %v6601_v35  ;;  %v4283_v41 = vadd.f32 %v4267_v40, %v6604_v32  ;;  %v4266_v25 = vmul.f32 0.044715, %v4250_v52  ;;  %s4619_s25 = sshll.u32 %s5636_s11, 4  ;;  %s4620_s25 = int_to_ptr.vmem [resolvable:$true] %s4619_s25 }
0x1a0f   :  { %5474 = vtanh.f32 %v4294_v50  ;;  %v4268_v4 = vmul.f32 0.044715, %v4252_v56  ;;  %s5590_s26 = scalar_lea.vmem %s4620_s25, 512  ;;  %p5595_p12 = scmp.lt.s32.totalorder %s4620_s25, %s4620_s25 }
0x1a10   :  { %5476 = vtanh.f32 %v4296_v6  ;;  %v4297_v27 = vmul.f32 0.7978846, %v4281_v53  ;;  %v4299_v61 = vmul.f32 0.7978846, %v4283_v41  ;;  %v4282_v0 = vadd.f32 %v4266_v25, %v6613_v34  ;;  %p5591_p11 = scmp.ne.s32.totalorder %s4620_s25, %s5590_s26  ;;  %p5596_p13 = scmp.lt.s32.totalorder %s5590_s26, %s5590_s26 }
0x1a11   :  { %v4284_v55 = vadd.f32 %v4268_v4, %v6616_v23 }
0x1a12   :  { %5478 = vtanh.f32 %v4297_v27  ;;  %v4298_v29 = vmul.f32 0.7978846, %v4282_v0  ;;  %p5597_p0 = por %p5596_p13, %p5595_p12 }
0x1a13   :  { %5480 = vtanh.f32 %v4299_v61  ;;  %v4300_v2 = vmul.f32 0.7978846, %v4284_v55 }
0x1a14   :  { %5482 = vtanh.f32 %v4298_v29  ;;  %p5598_p1 = pnand %p5597_p0, %p5591_p11 }
0x1a15   :  { %5484 = vtanh.f32 %v4300_v2 }
0x1a1a   :  { %v5471_v31 = vpop.eup %5470 }
0x1a1b   :  { %v5473_v8 = vpop.eup %5472  ;;  %v4325_v18 = vadd.f32 1.0, %v5471_v31 }
0x1a1c   :  { %v5475_v48 = vpop.eup %5474  ;;  %v4327_v20 = vadd.f32 1.0, %v5473_v8 }
0x1a1d   :  { %v5477_v26 = vpop.eup %5476  ;;  %v4326_v1 = vadd.f32 1.0, %v5475_v48  ;;  %v4341_v38 = vmul.f32 0.5, %v4325_v18 }
0x1a1e   :  { %v4328_v60 = vadd.f32 1.0, %v5477_v26  ;;  %v4343_v62 = vmul.f32 0.5, %v4327_v20 }
0x1a1f   :  { %v5479_v11 = vpop.eup %5478  ;;  %v4342_v24 = vmul.f32 0.5, %v4326_v1  ;;  %v4357_v45 = vmul.f32 %v4341_v38, %v6579_v10 }
0x1a20   :  { %v5481_v7 = vpop.eup %5480  ;;  %v4344_v15 = vmul.f32 0.5, %v4328_v60  ;;  %v4329_v14 = vadd.f32 1.0, %v5479_v11  ;;  %v4359_v51 = vmul.f32 %v4343_v62, %v6582_v54 }
0x1a21   :  { %v5483_v16 = vpop.eup %5482  ;;  %v4358_v3 = vmul.f32 %v4342_v24, %v6589_v22  ;;  %v4331_v42 = vadd.f32 1.0, %v5481_v7 }
0x1a22   :  { %v5485_v33 = vpop.eup %5484  ;;  %v4360_v13 = vmul.f32 %v4344_v15, %v6592_v28  ;;  %v4330_v46 = vadd.f32 1.0, %v5483_v16  ;;  %v4345_v21 = vmul.f32 0.5, %v4329_v14 }
0x1a23   :  { %4510 = vmatprep.mubr.f32.mxu1 %v4358_v3  ;;  %v4332_v43 = vadd.f32 1.0, %v5485_v33  ;;  %v4347_v58 = vmul.f32 0.5, %v4331_v42 }
0x1a24   :  { %4595 = vmatprep.mubr.f32.mxu0 %v4360_v13  ;;  %4511 = vmatmul.mubr.f32.gmra.mxu1 %v4357_v45  ;;  %v4346_v44 = vmul.f32 0.5, %v4330_v46  ;;  %v4361_v28 = vmul.f32 %v4345_v21, %v6601_v35 }
0x1a25   :  { %4596 = vmatmul.mubr.f32.gmra.mxu0 %v4359_v51  ;;  %v4348_v57 = vmul.f32 0.5, %v4332_v43  ;;  %v4363_v10 = vmul.f32 %v4347_v58, %v6604_v32 }
0x1a26   :  { %v4362_v22 = vmul.f32 %v4346_v44, %v6613_v34 }
0x1a27   :  { %v4364_v49 = vmul.f32 %v4348_v57, %v6616_v23 }
0x1a28   :  { %4515 = vmatprep.mubr.f32.mxu1 %v4362_v22 }
0x1a29   :  { %4600 = vmatprep.mubr.f32.mxu0 %v4364_v49  ;;  %4516 = vmatmul.mubr.f32.gmra.mxu1 %v4361_v28 }
0x1a2a   :  { %4601 = vmatmul.mubr.f32.gmra.mxu0 %v4363_v10 }
0x1a6e   :  { %v4935_v54 = vpop.f32.mrf.mxu1 }
0x1a6f   :  { %v4979_v17 = vpop.f32.mrf.mxu0 }
0x1a70   :  { %v4936_v63 = vpop.f32.mrf.mxu1 }
0x1a71   :  { %v4937_v12 = vadd.f32 %v4936_v63, %v4935_v54  ;;  %v4980_v39 = vpop.f32.mrf.mxu0 }
0x1a72   :  { %v4981_v59 = vadd.f32 %v4980_v39, %v4979_v17 }
0x1a73   :  { %v4503_v34 = vadd.f32 %v4937_v12, %v4734_v37  ;;  %v4938_v23 = vpop.f32.mrf.mxu1 }
0x1a74   :  { %v4982_v36 = vpop.f32.mrf.mxu0 }
0x1a75   :  { %v4588_v35 = vadd.f32 %v4981_v59, %v4503_v34  ;;  %v4939_v47 = vpop.f32.mrf.mxu1 }
0x1a76   :  { %v4940_v40 = vadd.f32 %v4939_v47, %v4938_v23  ;;  %v4983_v32 = vpop.f32.mrf.mxu0 }
0x1a77   :  { %v4606_v52 = vadd.f32 %v4588_v35, %v6445_v9  ;;  %v4984_v50 = vadd.f32 %v4983_v32, %v4982_v36 }
0x1a78   :  { %v4508_v56 = vadd.f32 %v4940_v40, %v4734_v37 }
0x1a79   :  { %4610 = vst [vmem:[#allocation12] sm:$0xff] %v4606_v52 }
0x1a7a   :  { %v4593_v6 = vadd.f32 %v4984_v50, %v4508_v56 }
0x1a7c   :  { %v4607_v53 = vadd.f32 %v4593_v6, %v6443_v5 }
0x1a7e   :  { %4611 = vst [vmem:[#allocation12 + $0x8] sm:$0xff] %v4607_v53 }
0x1ae4   :  { %v4941_v41 = vpop.f32.mrf.mxu1 }
0x1ae5   :  { %v4985_v25 = vpop.f32.mrf.mxu0 }
0x1ae6   :  { %v4942_v4 = vpop.f32.mrf.mxu1 }
0x1ae7   :  { %v4943_v27 = vadd.f32 %v4942_v4, %v4941_v41  ;;  %v4986_v61 = vpop.f32.mrf.mxu0 }
0x1ae8   :  { %v4987_v55 = vadd.f32 %v4986_v61, %v4985_v25 }
0x1ae9   :  { %v4513_v0 = vadd.f32 %v4943_v27, %v4734_v37  ;;  %v4944_v29 = vpop.f32.mrf.mxu1 }
0x1aea   :  { %v4988_v2 = vpop.f32.mrf.mxu0 }
0x1aeb   :  { %v4598_v31 = vadd.f32 %v4987_v55, %v4513_v0  ;;  %v4945_v8 = vpop.f32.mrf.mxu1 }
0x1aec   :  { %v4946_v18 = vadd.f32 %v4945_v8, %v4944_v29  ;;  %v4989_v9 = vpop.f32.mrf.mxu0 }
0x1aed   :  { %v4608_v48 = vadd.f32 %v4598_v31, %v6449_v19  ;;  %v4990_v26 = vadd.f32 %v4989_v9, %v4988_v2 }
0x1aee   :  { %v4518_v20 = vadd.f32 %v4946_v18, %v4734_v37 }
0x1aef   :  { %4612 = vst [vmem:[#allocation12 + $0x10] sm:$0xff] %v4608_v48 }
0x1af0   :  { %v4603_v5 = vadd.f32 %v4990_v26, %v4518_v20 }
0x1af2   :  { %v4609_v1 = vadd.f32 %v4603_v5, %v6452_v30 }
0x1af4   :  { %4613 = vst [vmem:[#allocation12 + $0x18] sm:$0xff] %v4609_v1 }
0x1af5   :  { %5601 = shalt.err (!%p5598_p1)
}
0x1af6   :  { %4625 = dma.vmem_to_hbm [thread:$0]  %s4620_s25, 512, %s6667_s12, [#allocation5], %s5625_s19, %s5625_s19, %s5626_s20  }
0x1af7   :  { %5616 = dma.done.wait [#allocation5], 512  }
0x1af8   :  { %5617 = vsyncadd [#allocation5], 4294966784 }
0x1af9   :  { %4629 = vsyncpa [#allocation4], 1 }
0x1afa   :  { %4630 = vsyncpa [#allocation7], 1 }
0x1afb   :  { %4631 = vsyncpa [#allocation10], 1 }
0x1afc   :  { %4632 = vsyncpa [#allocation5], 1 }

</bundles_post_ra>
